<compile_context>
chip_gen: v7x
topology: tpu7x:2x2x1
jax: 0.10.0
libtpu: 0.0.40
codegen_flags: <defaults>
</compile_context>

<pallas_src>
import functools
import numpy as np
import jax
import jax.numpy as jnp
from jax.experimental import pallas as pl
from jax.experimental.pallas import tpu as pltpu


def _smtl_kernel(x_ref, lab_ref, g_ref, chain_ref, loss_ref, cnt_ref,
                 loss_sc, cnt_sc, *, ignore_label, n_rows, tile_m,
                 tiles_per_split):
    s = pl.program_id(0)      # row split (parallel; one per TensorCore on v7x)
    i = pl.program_id(1)      # tile within split (reduction axis)

    @pl.when(i == 0)
    def _():
        loss_sc[...] = jnp.zeros_like(loss_sc)
        cnt_sc[...] = jnp.zeros_like(cnt_sc)

    x = x_ref[...].astype(jnp.float32)          # (tm, C)
    labels = lab_ref[...]                       # (tm, 1) int32
    tm, C = x.shape

    # --- hierarchical (per-group) softmax log-probs along the node axis ---
    # logp = (x - rowmax) - log(sum_{same group} exp(x - rowmax)); the global
    # per-row max shift cancels exactly inside each group softmax.
    # NOTE: if an entire group's logits sit ~88 below the row max, exp()
    # underflows and that group's logp saturates (the Caffe reference uses a
    # per-group max); unlikely for real logits, documented here.
    rowmax = jnp.max(x, axis=-1, keepdims=True)
    shifted = x - rowmax
    ex = jnp.exp(shifted)

    # gsum = ex @ G with G a 0/1 matrix: exact-enough hi/lo f32 -> 2x bf16
    # split keeps the MXU in native bf16 (2 passes) and avoids re-casting G
    # to f32 every grid step.
    g = g_ref[...]                              # (C, C) bf16 0/1 same-group
    ex_hi = ex.astype(jnp.bfloat16)
    ex_lo = (ex - ex_hi.astype(jnp.float32)).astype(jnp.bfloat16)
    gsum = (jnp.dot(ex_hi, g, preferred_element_type=jnp.float32)
            + jnp.dot(ex_lo, g, preferred_element_type=jnp.float32))
    tiny = jnp.float32(np.finfo(np.float32).tiny)
    logp = shifted - jnp.log(jnp.maximum(gsum, tiny))

    # --- validity: real (non-padded) rows that are not the ignore label ---
    row0 = (s * tiles_per_split + i) * tile_m
    ridx = row0 + jax.lax.broadcasted_iota(jnp.int32, (tm, 1), 0)
    valid = ridx < n_rows
    if ignore_label is not None:
        valid = valid & (labels != ignore_label)

    # --- tree-walk NLL: gather each label's ancestor chain (incl. itself)
    #     with one bf16 MXU matmul (exact: both operands are 0/1) ---
    cids = jax.lax.broadcasted_iota(jnp.int32, (tm, C), 1)
    onehot = ((labels == cids) & valid).astype(jnp.bfloat16)      # (tm, C)
    chain_w = jnp.dot(onehot, chain_ref[...],
                      preferred_element_type=jnp.float32)         # (tm, C)

    # --- online accumulation: sublane-axis partial sums only (VPU vreg adds
    #     + one intra-vreg collapse); the expensive cross-lane reduce to a
    #     scalar is hoisted out of the loop to the final step. ---
    loss_sc[...] = loss_sc[...] - jnp.sum(chain_w * logp, axis=0,
                                          keepdims=True)            # (1, C)
    cnt_sc[...] = cnt_sc[...] + jnp.sum(valid.astype(jnp.float32), axis=0,
                                        keepdims=True)              # (1, 1)

    @pl.when(i == pl.num_programs(1) - 1)
    def _():
        loss_ref[...] = jnp.sum(loss_sc[...], axis=1, keepdims=True)  # (1, 1)
        cnt_ref[...] = cnt_sc[...]


@functools.partial(
    jax.jit,
    static_argnames=("ignore_label", "n_rows", "tm", "tiles_per_split",
                     "num_splits", "pad_rows", "valid_normalization",
                     "loss_weight", "batch"))
def _smtl_forward(x, label, g_mat, chain, *, ignore_label, n_rows, tm,
                  tiles_per_split, num_splits, pad_rows, valid_normalization,
                  loss_weight, batch):
    N, C, H, W = x.shape
    M = n_rows

    # rows on sublanes, tree-node axis on lanes; keep the producer dtype.
    # The node axis is NOT padded -- only rows are padded up to the grid.
    xr = jnp.transpose(x, (0, 2, 3, 1)).reshape(M, C)
    lab = label.reshape(M, 1).astype(jnp.int32)
    if pad_rows:
        xr = jnp.pad(xr, ((0, pad_rows), (0, 0)))
        lab = jnp.pad(lab, ((0, pad_rows), (0, 0)), constant_values=-1)

    # explicit VMEM budget: x/label double buffers + bf16 structure matrices +
    # headroom for the live f32 temps; clamped so raised row tiles keep
    # compiling on every generation (v5e default scoped 16 MiB, v7x phys 64).
    lanes = ((C + 127) // 128) * 128
    est = (2 * tm * lanes * jnp.dtype(x.dtype).itemsize   # x double buffer
           + 2 * tm * 128 * 4                             # label double buffer
           + 2 * 2 * ((C + 15) // 16 * 16) * lanes * 2    # g + chain (bf16)
           + 8 * tm * lanes * 4)                          # live f32 temps
    vmem_limit = int(min(max(2 * est, 32 * 1024 * 1024), 64 * 1024 * 1024))

    kernel = functools.partial(_smtl_kernel, ignore_label=ignore_label,
                               n_rows=M, tile_m=tm,
                               tiles_per_split=tiles_per_split)

    loss_parts, cnt_parts = pl.pallas_call(
        kernel,
        out_shape=(jax.ShapeDtypeStruct((num_splits, 1, 1), jnp.float32),
                   jax.ShapeDtypeStruct((num_splits, 1, 1), jnp.float32)),
        grid_spec=pltpu.PrefetchScalarGridSpec(
            num_scalar_prefetch=0,
            grid=(num_splits, tiles_per_split),
            in_specs=[
                pl.BlockSpec((tm, C), lambda s, i: (s * tiles_per_split + i, 0)),
                pl.BlockSpec((tm, 1), lambda s, i: (s * tiles_per_split + i, 0)),
                # constant structure matrices: index_map is (0,0) for every
                # grid point, so the pipeline skips re-DMA between steps.
                pl.BlockSpec((C, C), lambda s, i: (0, 0)),
                pl.BlockSpec((C, C), lambda s, i: (0, 0)),
            ],
            out_specs=(pl.BlockSpec((None, 1, 1), lambda s, i: (s, 0, 0)),
                       pl.BlockSpec((None, 1, 1), lambda s, i: (s, 0, 0))),
            scratch_shapes=[pltpu.VMEM((1, C), jnp.float32),
                            pltpu.VMEM((1, 1), jnp.float32)]),
        compiler_params=pltpu.CompilerParams(
            dimension_semantics=("parallel", "arbitrary"),
            vmem_limit_bytes=vmem_limit),
    )(xr, lab, g_mat, chain)

    loss_sum = jnp.sum(loss_parts)
    cnt = jnp.sum(cnt_parts)
    if valid_normalization:
        norm = jnp.maximum(cnt, jnp.float32(1.0))   # VALID normalization
    else:
        norm = jnp.float32(batch)                   # BATCH_SIZE normalization
    return (loss_sum / norm) * jnp.float32(loss_weight)


def softmax_tree_with_loss(x, label, group_offsets, group_sizes, cid_groups,
                           parents, ignore_label=None, axis=1, loss_weight=1.0,
                           valid_normalization=False, tile_m=None,
                           num_splits=1):
    assert axis == 1, "kernel assumes the tree-node axis is the channel axis (axis=1)"
    N, C, H, W = x.shape
    node_count = len(cid_groups)
    assert C == node_count, "channel count must match tree node count"
    M = N * H * W

    # num_splits: leading 'parallel' grid axis. 1 on single-TC parts
    # (v5e/v6e); use 2 on v7x so both TensorCores run (keep >=8 tiles/split).
    num_splits = max(1, int(num_splits))

    # Big row tiles when the node axis fits one lane group (amortize the
    # ~0.35us per-grid-step overhead); smaller when C is large.
    if tile_m is None:
        tile_m = 1024 if C <= 128 else 256

    rows_per_split = -(-M // num_splits)
    tm = max(8, min(int(tile_m), ((rows_per_split + 7) // 8) * 8))
    tm = ((tm + 7) // 8) * 8
    tiles_per_split = -(-rows_per_split // tm)
    Mp = num_splits * tiles_per_split * tm

    # static tree structure -> dense 0/1 matrices (bf16 is lossless for 0/1)
    # TODO(synk): dense (C,C) only scales to modest trees; YOLO9000-size trees
    # need the (C,G) membership matrix + C-tiled chain gather instead.
    cid_np = np.asarray(cid_groups, np.int32)
    par_np = np.asarray(parents, np.int32)
    g_np = (cid_np[:, None] == cid_np[None, :]).astype(np.float32)
    chain_np = np.zeros((C, C), np.float32)
    for c in range(C):
        p = c
        while p >= 0:
            chain_np[c, p] = 1.0
            p = int(par_np[p])
    g_mat = jnp.asarray(g_np, jnp.bfloat16)
    chain = jnp.asarray(chain_np, jnp.bfloat16)

    return _smtl_forward(
        x, label, g_mat, chain,
        ignore_label=None if ignore_label is None else int(ignore_label),
        n_rows=M, tm=tm, tiles_per_split=tiles_per_split,
        num_splits=num_splits, pad_rows=Mp - M,
        valid_normalization=bool(valid_normalization),
        loss_weight=float(loss_weight), batch=N)


def _reference_loss(x, label, group_offsets, group_sizes, parents,
                    ignore_label, valid_normalization, loss_weight):
    x = np.asarray(x, np.float32)
    N, C, H, W = x.shape
    lab = np.asarray(label).reshape(N, H * W)
    prob = np.zeros_like(x)
    for o, s in zip(group_offsets, group_sizes):
        sub = x[:, o:o + s]
        m = sub.max(axis=1, keepdims=True)
        e = np.exp(sub - m)
        prob[:, o:o + s] = e / e.sum(axis=1, keepdims=True)
    probf = prob.reshape(N, C, H * W)
    tiny = np.finfo(np.float32).tiny
    loss = 0.0
    count = 0
    for n in range(N):
        for s in range(H * W):
            lv = int(lab[n, s])
            if ignore_label is not None and lv == ignore_label:
                continue
            count += 1
            while lv >= 0:
                loss -= np.log(max(probf[n, lv, s], tiny))
                lv = int(parents[lv])
    norm = max(count, 1) if valid_normalization else N
    return loss / norm * loss_weight


if __name__ == "__main__":
    # synthetic softmax tree:
    #   root group {0,1,2}; children of 0: {3,4}; children of 1: {5,6,7}
    group_offsets = [0, 3, 5]
    group_sizes = [3, 2, 3]
    cid_groups = [0, 0, 0, 1, 1, 2, 2, 2]
    parents = [-1, -1, -1, 0, 0, 1, 1, 1]

    N, C, H, W = 2, 8, 16, 16
    ignore_label = -1
    valid_normalization = True
    loss_weight = 1.0

    key = jax.random.PRNGKey(0)
    kx, kl, km = jax.random.split(key, 3)
    x = jax.random.normal(kx, (N, C, H, W), dtype=jnp.float32)
    label = jax.random.randint(kl, (N, 1, H, W), 0, C)
    ign_mask = jax.random.bernoulli(km, 0.2, (N, 1, H, W))
    label = jnp.where(ign_mask, ignore_label, label).astype(jnp.int32)

    loss = softmax_tree_with_loss(
        x, label, group_offsets, group_sizes, cid_groups, parents,
        ignore_label=ignore_label, loss_weight=loss_weight,
        valid_normalization=valid_normalization)
    loss = jax.block_until_ready(loss)

    ref = _reference_loss(np.asarray(x), np.asarray(label), group_offsets,
                          group_sizes, parents, ignore_label,
                          valid_normalization, loss_weight)
    assert np.allclose(float(loss), ref, rtol=2e-4, atol=1e-5), (float(loss), ref)
    print("KERNEL_OK")
</pallas_src>

<mosaic_0001>
module attributes {stable_mosaic.version = 11 : i64} {
  func.func @_smtl_kernel(%arg0: i32, %arg1: i32, %arg2: memref<512x8xf32, #tpu.memory_space<vmem>>, %arg3: memref<512x1xi32, #tpu.memory_space<vmem>>, %arg4: memref<8x8xbf16, #tpu.memory_space<vmem>>, %arg5: memref<8x8xbf16, #tpu.memory_space<vmem>>, %arg6: memref<1x1x1xf32, #tpu.memory_space<vmem>>, %arg7: memref<1x1x1xf32, #tpu.memory_space<vmem>>, %arg8: memref<1x8xf32, #tpu.memory_space<vmem>>, %arg9: memref<1x1xf32, #tpu.memory_space<vmem>>) attributes {dimension_semantics = [#tpu.dimension_semantics<parallel>, #tpu.dimension_semantics<arbitrary>], iteration_bounds = array<i64: 1, 1>, scalar_prefetch = 0 : i64, scratch_operands = 2 : i64, tpu.core_type = #tpu.core_type<tc>, window_params = [{transform_indices = @transform_0, window_bounds = array<i64: 512, 8>}, {transform_indices = @transform_1, window_bounds = array<i64: 512, 1>}, {pipeline_mode = #tpu.pipeline_mode<synchronous>, transform_indices = @transform_2, window_bounds = array<i64: 8, 8>}, {pipeline_mode = #tpu.pipeline_mode<synchronous>, transform_indices = @transform_3, window_bounds = array<i64: 8, 8>}, {transform_indices = @transform_4, window_bounds = array<i64: 1, 1, 1>}, {transform_indices = @transform_5, window_bounds = array<i64: 1, 1, 1>}]} {
    %c0_i32 = arith.constant 0 : i32
    %0 = arith.cmpi eq, %arg1, %c0_i32 : i32
    %1 = arith.extui %0 : i1 to i32
    %c0_i32_0 = arith.constant 0 : i32
    %2 = arith.cmpi ne, %1, %c0_i32_0 : i32
    scf.if %2 {
      %cst_25 = arith.constant 0.000000e+00 : f32
      %59 = vector.broadcast %cst_25 : f32 to vector<1x8xf32>
      %c0_26 = arith.constant 0 : index
      %c0_27 = arith.constant 0 : index
      %60 = vector.load %arg8[%c0_26, %c0_27] : memref<1x8xf32, #tpu.memory_space<vmem>>, vector<1x8xf32>
      tpu.vector_store %arg8[%c0_26, %c0_27], %59 {strides = array<i32>} : memref<1x8xf32, #tpu.memory_space<vmem>>, vector<1x8xf32>,
      %cst_28 = arith.constant 0.000000e+00 : f32
      %61 = vector.broadcast %cst_28 : f32 to vector<1x1xf32>
      %c0_29 = arith.constant 0 : index
      %c0_30 = arith.constant 0 : index
      %62 = vector.load %arg9[%c0_29, %c0_30] : memref<1x1xf32, #tpu.memory_space<vmem>>, vector<1x1xf32>
      tpu.vector_store %arg9[%c0_29, %c0_30], %61 {strides = array<i32>} : memref<1x1xf32, #tpu.memory_space<vmem>>, vector<1x1xf32>,
    } else {
    }
    %c0 = arith.constant 0 : index
    %c0_1 = arith.constant 0 : index
    %3 = vector.load %arg2[%c0, %c0_1] : memref<512x8xf32, #tpu.memory_space<vmem>>, vector<512x8xf32>
    %c0_2 = arith.constant 0 : index
    %c0_3 = arith.constant 0 : index
    %4 = vector.load %arg3[%c0_2, %c0_3] : memref<512x1xi32, #tpu.memory_space<vmem>>, vector<512x1xi32>
    %cst = arith.constant dense<0xFF800000> : vector<512xf32>
    %5 = vector.multi_reduction <maximumf>, %3, %cst [1] : vector<512x8xf32> to vector<512xf32>
    %6 = vector.shape_cast %5 : vector<512xf32> to vector<512x1xf32>
    %7 = vector.broadcast %6 : vector<512x1xf32> to vector<512x8xf32>
    %8 = arith.subf %3, %7 : vector<512x8xf32>
    %9 = math.exp %8 : vector<512x8xf32>
    %c0_4 = arith.constant 0 : index
    %c0_5 = arith.constant 0 : index
    %10 = vector.load %arg4[%c0_4, %c0_5] : memref<8x8xbf16, #tpu.memory_space<vmem>>, vector<8x8xbf16>
    %11 = arith.truncf %9 : vector<512x8xf32> to vector<512x8xbf16>
    %12 = arith.extf %11 : vector<512x8xbf16> to vector<512x8xf32>
    %13 = arith.subf %9, %12 : vector<512x8xf32>
    %14 = arith.truncf %13 : vector<512x8xf32> to vector<512x8xbf16>
    %cst_6 = arith.constant dense<0.000000e+00> : vector<512x8xf32>
    %15 = tpu.matmul %11, %10, %cst_6 {dimension_numbers = #tpu.dot_dimension_numbers<[1], [0], [0], [1], [0, 0, 1, 1], [], []>} : vector<512x8xbf16>, vector<8x8xbf16>, vector<512x8xf32> -> vector<512x8xf32>
    %cst_7 = arith.constant dense<0.000000e+00> : vector<512x8xf32>
    %16 = tpu.matmul %14, %10, %cst_7 {dimension_numbers = #tpu.dot_dimension_numbers<[1], [0], [0], [1], [0, 0, 1, 1], [], []>} : vector<512x8xbf16>, vector<8x8xbf16>, vector<512x8xf32> -> vector<512x8xf32>
    %17 = arith.addf %15, %16 : vector<512x8xf32>
    %cst_8 = arith.constant 1.17549435E-38 : f32
    %18 = vector.broadcast %cst_8 : f32 to vector<512x8xf32>
    %19 = arith.maximumf %17, %18 : vector<512x8xf32>
    %20 = math.log %19 : vector<512x8xf32>
    %21 = arith.subf %8, %20 : vector<512x8xf32>
    %c1_i32 = arith.constant 1 : i32
    %22 = arith.muli %arg0, %c1_i32 : i32
    %23 = arith.addi %22, %arg1 : i32
    %c512_i32 = arith.constant 512 : i32
    %24 = arith.muli %23, %c512_i32 : i32
    %25 = tpu.iota {dimensions = array<i32: 0>} : vector<512x1xi32>
    %26 = vector.broadcast %24 : i32 to vector<512x1xi32>
    %27 = arith.addi %26, %25 : vector<512x1xi32>
    %c512_i32_9 = arith.constant 512 : i32
    %28 = vector.broadcast %c512_i32_9 : i32 to vector<512x1xi32>
    %29 = arith.cmpi slt, %27, %28 : vector<512x1xi32>
    %c-1_i32 = arith.constant -1 : i32
    %30 = vector.broadcast %c-1_i32 : i32 to vector<512x1xi32>
    %31 = arith.cmpi ne, %4, %30 : vector<512x1xi32>
    %32 = arith.andi %29, %31 : vector<512x1xi1>
    %33 = tpu.iota {dimensions = array<i32: 1>} : vector<512x8xi32>
    %34 = vector.broadcast %4 : vector<512x1xi32> to vector<512x8xi32>
    %35 = arith.cmpi eq, %34, %33 : vector<512x8xi32>
    %36 = vector.broadcast %32 : vector<512x1xi1> to vector<512x8xi1>
    %37 = arith.andi %35, %36 : vector<512x8xi1>
    %38 = arith.extui %37 : vector<512x8xi1> to vector<512x8xi32>
    %39 = arith.sitofp %38 : vector<512x8xi32> to vector<512x8xf32>
    %40 = arith.truncf %39 : vector<512x8xf32> to vector<512x8xbf16>
    %c0_10 = arith.constant 0 : index
    %c0_11 = arith.constant 0 : index
    %41 = vector.load %arg5[%c0_10, %c0_11] : memref<8x8xbf16, #tpu.memory_space<vmem>>, vector<8x8xbf16>
    %cst_12 = arith.constant dense<0.000000e+00> : vector<512x8xf32>
    %42 = tpu.matmul %40, %41, %cst_12 {dimension_numbers = #tpu.dot_dimension_numbers<[1], [0], [0], [1], [0, 0, 1, 1], [], []>} : vector<512x8xbf16>, vector<8x8xbf16>, vector<512x8xf32> -> vector<512x8xf32>
    %c0_13 = arith.constant 0 : index
    %c0_14 = arith.constant 0 : index
    %43 = vector.load %arg8[%c0_13, %c0_14] : memref<1x8xf32, #tpu.memory_space<vmem>>, vector<1x8xf32>
    %44 = arith.mulf %42, %21 : vector<512x8xf32>
    %cst_15 = arith.constant dense<0.000000e+00> : vector<8xf32>
    %45 = vector.multi_reduction <add>, %44, %cst_15 [0] : vector<512x8xf32> to vector<8xf32>
    %46 = vector.shape_cast %45 : vector<8xf32> to vector<1x8xf32>
    %47 = arith.subf %43, %46 : vector<1x8xf32>
    %c0_16 = arith.constant 0 : index
    %c0_17 = arith.constant 0 : index
    %48 = vector.load %arg8[%c0_16, %c0_17] : memref<1x8xf32, #tpu.memory_space<vmem>>, vector<1x8xf32>
    tpu.vector_store %arg8[%c0_16, %c0_17], %47 {strides = array<i32>} : memref<1x8xf32, #tpu.memory_space<vmem>>, vector<1x8xf32>,
    %c0_18 = arith.constant 0 : index
    %c0_19 = arith.constant 0 : index
    %49 = vector.load %arg9[%c0_18, %c0_19] : memref<1x1xf32, #tpu.memory_space<vmem>>, vector<1x1xf32>
    %50 = arith.extui %32 : vector<512x1xi1> to vector<512x1xi32>
    %51 = arith.sitofp %50 : vector<512x1xi32> to vector<512x1xf32>
    %cst_20 = arith.constant dense<0.000000e+00> : vector<1xf32>
    %52 = vector.multi_reduction <add>, %51, %cst_20 [0] : vector<512x1xf32> to vector<1xf32>
    %53 = vector.shape_cast %52 : vector<1xf32> to vector<1x1xf32>
    %54 = arith.addf %49, %53 : vector<1x1xf32>
    %c0_21 = arith.constant 0 : index
    %c0_22 = arith.constant 0 : index
    %55 = vector.load %arg9[%c0_21, %c0_22] : memref<1x1xf32, #tpu.memory_space<vmem>>, vector<1x1xf32>
    tpu.vector_store %arg9[%c0_21, %c0_22], %54 {strides = array<i32>} : memref<1x1xf32, #tpu.memory_space<vmem>>, vector<1x1xf32>,
    %c0_i32_23 = arith.constant 0 : i32
    %56 = arith.cmpi eq, %arg1, %c0_i32_23 : i32
    %57 = arith.extui %56 : i1 to i32
    %c0_i32_24 = arith.constant 0 : i32
    %58 = arith.cmpi ne, %57, %c0_i32_24 : i32
    scf.if %58 {
      %c0_25 = arith.constant 0 : index
      %c0_26 = arith.constant 0 : index
      %59 = vector.load %arg8[%c0_25, %c0_26] : memref<1x8xf32, #tpu.memory_space<vmem>>, vector<1x8xf32>
      %cst_27 = arith.constant dense<0.000000e+00> : vector<1xf32>
      %60 = vector.multi_reduction <add>, %59, %cst_27 [1] : vector<1x8xf32> to vector<1xf32>
      %61 = vector.shape_cast %60 : vector<1xf32> to vector<1x1xf32>
      %c0_28 = arith.constant 0 : index
      %c0_29 = arith.constant 0 : index
      %c0_30 = arith.constant 0 : index
      %62 = vector.load %arg6[%c0_28, %c0_29, %c0_30] : memref<1x1x1xf32, #tpu.memory_space<vmem>>, vector<1x1x1xf32>
      %63 = vector.shape_cast %62 : vector<1x1x1xf32> to vector<1x1xf32>
      %64 = vector.shape_cast %61 : vector<1x1xf32> to vector<1x1x1xf32>
      tpu.vector_store %arg6[%c0_28, %c0_29, %c0_30], %64 {strides = array<i32>} : memref<1x1x1xf32, #tpu.memory_space<vmem>>, vector<1x1x1xf32>,
      %c0_31 = arith.constant 0 : index
      %c0_32 = arith.constant 0 : index
      %65 = vector.load %arg9[%c0_31, %c0_32] : memref<1x1xf32, #tpu.memory_space<vmem>>, vector<1x1xf32>
      %c0_33 = arith.constant 0 : index
      %c0_34 = arith.constant 0 : index
      %c0_35 = arith.constant 0 : index
      %66 = vector.load %arg7[%c0_33, %c0_34, %c0_35] : memref<1x1x1xf32, #tpu.memory_space<vmem>>, vector<1x1x1xf32>
      %67 = vector.shape_cast %66 : vector<1x1x1xf32> to vector<1x1xf32>
      %68 = vector.shape_cast %65 : vector<1x1xf32> to vector<1x1x1xf32>
      tpu.vector_store %arg7[%c0_33, %c0_34, %c0_35], %68 {strides = array<i32>} : memref<1x1x1xf32, #tpu.memory_space<vmem>>, vector<1x1x1xf32>,
    } else {
    }
    return
  }
  func.func @transform_0(%arg0: i32, %arg1: i32) -> (i32, i32) {
    %c1_i32 = arith.constant 1 : i32
    %0 = arith.muli %arg0, %c1_i32 : i32
    %1 = arith.addi %0, %arg1 : i32
    %c0_i32 = arith.constant 0 : i32
    %c0_i32_0 = arith.constant 0 : i32
    return %1, %c0_i32 : i32, i32
  }
  func.func @transform_1(%arg0: i32, %arg1: i32) -> (i32, i32) {
    %c1_i32 = arith.constant 1 : i32
    %0 = arith.muli %arg0, %c1_i32 : i32
    %1 = arith.addi %0, %arg1 : i32
    %c0_i32 = arith.constant 0 : i32
    %c0_i32_0 = arith.constant 0 : i32
    return %1, %c0_i32 : i32, i32
  }
  func.func @transform_2(%arg0: i32, %arg1: i32) -> (i32, i32) {
    %c0_i32 = arith.constant 0 : i32
    %c0_i32_0 = arith.constant 0 : i32
    %c0_i32_1 = arith.constant 0 : i32
    return %c0_i32, %c0_i32_0 : i32, i32
  }
  func.func @transform_3(%arg0: i32, %arg1: i32) -> (i32, i32) {
    %c0_i32 = arith.constant 0 : i32
    %c0_i32_0 = arith.constant 0 : i32
    %c0_i32_1 = arith.constant 0 : i32
    return %c0_i32, %c0_i32_0 : i32, i32
  }
  func.func @transform_4(%arg0: i32, %arg1: i32) -> (i32, i32, i32) {
    %c0_i32 = arith.constant 0 : i32
    %c0_i32_0 = arith.constant 0 : i32
    %c0_i32_1 = arith.constant 0 : i32
    return %arg0, %c0_i32, %c0_i32_0 : i32, i32, i32
  }
  func.func @transform_5(%arg0: i32, %arg1: i32) -> (i32, i32, i32) {
    %c0_i32 = arith.constant 0 : i32
    %c0_i32_0 = arith.constant 0 : i32
    %c0_i32_1 = arith.constant 0 : i32
    return %arg0, %c0_i32, %c0_i32_0 : i32, i32, i32
  }
}

</mosaic_0001>

<bundles_post_ra>
// kernel: _smtl_forward.1
= control target key start
LH: loop header
LB: loop body
LE: loop exit
PB: predicated region body
PF: predicated region fallthrough
CT: control target
= control target key end

     0   :  { %11 = vsyncpa [#allocation5], 0  ;;  %vm7435_vm0 = vcmask 64512   ;;  %v7438_v6 = vmov 0   ;;  %s7418_s0 = inlined_call_operand.vmem [shape: f32[512,8], index: 0, kind: input, shape index: {}]   ;;  %s7419_s1 = inlined_call_operand.vmem [shape: s32[512,1], index: 1, kind: input, shape index: {}]   ;;  %s7420_s2 = inlined_call_operand.vmem [shape: bf16[8,8], index: 2, kind: input, shape index: {}]   ;;  %s7421_s3 = inlined_call_operand.vmem [shape: bf16[8,8], index: 3, kind: input, shape index: {}]   ;;  %s7422_s4 = inlined_call_operand.hbm [shape: f32[1,1,1], index: 4, kind: output, shape index: {0}]   ;;  %s7423_s5 = inlined_call_operand.hbm [shape: f32[1,1,1], index: 5, kind: output, shape index: {1}]  }
   0x1   :  { %v4781_v0 = vld [vmem:[%s7418_s0 + $0x10] sm:$0xff]  ;;  %v4786_v1 = vld [vmem:[%s7418_s0] sm:$0xff]  ;;  %v4791_v2 = vld [vmem:[%s7418_s0 + $0x18] sm:$0xff]  ;;  %4374 = vset.pattern.permute.xlu1 %v7438_v6  ;;  %4373 = vset.pattern.permute.xlu0 %v7438_v6 }
   0x2   :  { %v209_v3 = vsel %vm7435_vm0, %v4781_v0, -inf  ;;  %v203_v4 = vsel %vm7435_vm0, %v4786_v1, -inf  ;;  %v4800_v5 = vld [vmem:[%s7418_s0 + $0x8] sm:$0xff]  ;;  %v212_v7 = vsel %vm7435_vm0, %v4791_v2, -inf  ;;  %v4816_v10 = vld [vmem:[%s7418_s0 + $0x20] sm:$0xff]  ;;  %v4825_v13 = vld [vmem:[%s7418_s0 + $0x38] sm:$0xff] }
   0x3   :  { %210 = vmax.xlane.f32.xlu1 %v209_v3  ;;  %204 = vmax.xlane.f32.xlu0 %v203_v4  ;;  %v206_v8 = vsel %vm7435_vm0, %v4800_v5, -inf  ;;  %v4811_v9 = vld [vmem:[%s7418_s0 + $0x28] sm:$0xff]  ;;  %v215_v12 = vsel %vm7435_vm0, %v4816_v10, -inf  ;;  %v4830_v14 = vld [vmem:[%s7418_s0 + $0x30] sm:$0xff]  ;;  %v224_v15 = vsel %vm7435_vm0, %v4825_v13, -inf  ;;  %v4844_v18 = vld [vmem:[%s7418_s0 + $0x40] sm:$0xff] }
   0x4   :  { %v218_v11 = vsel %vm7435_vm0, %v4811_v9, -inf  ;;  %v221_v16 = vsel %vm7435_vm0, %v4830_v14, -inf  ;;  %v4839_v17 = vld [vmem:[%s7418_s0 + $0x48] sm:$0xff]  ;;  %v227_v20 = vsel %vm7435_vm0, %v4844_v18, -inf  ;;  %v4853_v21 = vld [vmem:[%s7418_s0 + $0x58] sm:$0xff]  ;;  %v4858_v22 = vld [vmem:[%s7418_s0 + $0x50] sm:$0xff] }
   0x5   :  { %v230_v19 = vsel %vm7435_vm0, %v4839_v17, -inf  ;;  %v236_v23 = vsel %vm7435_vm0, %v4853_v21, -inf  ;;  %v233_v24 = vsel %vm7435_vm0, %v4858_v22, -inf  ;;  %v4867_v25 = vld [vmem:[%s7418_s0 + $0x68] sm:$0xff]  ;;  %v4872_v26 = vld [vmem:[%s7418_s0 + $0x60] sm:$0xff] }
   0x7   :  { %213 = vmax.xlane.f32.xlu1 %v212_v7  ;;  %207 = vmax.xlane.f32.xlu0 %v206_v8 }
   0xb   :  { %219 = vmax.xlane.f32.xlu1 %v218_v11  ;;  %216 = vmax.xlane.f32.xlu0 %v215_v12 }
   0xf   :  { %225 = vmax.xlane.f32.xlu1 %v224_v15  ;;  %222 = vmax.xlane.f32.xlu0 %v221_v16 }
  0x13   :  { %231 = vmax.xlane.f32.xlu1 %v230_v19  ;;  %228 = vmax.xlane.f32.xlu0 %v227_v20 }
  0x17   :  { %237 = vmax.xlane.f32.xlu1 %v236_v23  ;;  %234 = vmax.xlane.f32.xlu0 %v233_v24 }
  0x18   :  { %12 = vsyncpa [#allocation7], 0  ;;  %v242_v27 = vsel %vm7435_vm0, %v4867_v25, -inf  ;;  %v239_v28 = vsel %vm7435_vm0, %v4872_v26, -inf  ;;  %v4881_v29 = vld [vmem:[%s7418_s0 + $0x78] sm:$0xff]  ;;  %v4886_v30 = vld [vmem:[%s7418_s0 + $0x70] sm:$0xff] }
  0x19   :  { %v248_v31 = vsel %vm7435_vm0, %v4881_v29, -inf  ;;  %v245_v32 = vsel %vm7435_vm0, %v4886_v30, -inf  ;;  %v4895_v33 = vld [vmem:[%s7418_s0 + $0x88] sm:$0xff]  ;;  %v4900_v34 = vld [vmem:[%s7418_s0 + $0x80] sm:$0xff]  ;;  %v4909_v37 = vld [vmem:[%s7418_s0 + $0x98] sm:$0xff]  ;;  %vm7424_vm1 = vcmask 1043456  }
  0x1a   :  { %v254_v35 = vsel %vm7435_vm0, %v4895_v33, -inf  ;;  %v251_v36 = vsel %vm7435_vm0, %v4900_v34, -inf  ;;  %v4914_v38 = vld [vmem:[%s7418_s0 + $0x90] sm:$0xff]  ;;  %v260_v39 = vsel %vm7435_vm0, %v4909_v37, -inf  ;;  %v4923_v41 = vld [vmem:[%s7418_s0 + $0xa8] sm:$0xff]  ;;  %v4928_v42 = vld [vmem:[%s7418_s0 + $0xa0] sm:$0xff] }
  0x1b   :  { %243 = vmax.xlane.f32.xlu1 %v242_v27  ;;  %240 = vmax.xlane.f32.xlu0 %v239_v28  ;;  %v257_v40 = vsel %vm7435_vm0, %v4914_v38, -inf  ;;  %v266_v43 = vsel %vm7435_vm0, %v4923_v41, -inf  ;;  %v263_v44 = vsel %vm7435_vm0, %v4928_v42, -inf  ;;  %v97_v45 = vld [vmem:[%s7418_s0 + $0xb8] sm:$0xff]  ;;  %v96_v46 = vld [vmem:[%s7418_s0 + $0xb0] sm:$0xff]  ;;  %v4953_v51 = vld [vmem:[%s7419_s1] sm:$0xff] }
  0x1c   :  { %v587_v47 = vld [vmem:[%s7420_s2] sm:$0xf]  ;;  %v272_v49 = vsel %vm7435_vm0, %v97_v45, -inf  ;;  %v269_v50 = vsel %vm7435_vm0, %v96_v46, -inf  ;;  %v99_v52 = vld [vmem:[%s7418_s0 + $0xc8] sm:$0xff]  ;;  %vm3591_vm2 = vcmask 7168  }
  0x1d   :  { %4365 = vmatprep.subr.msk.bf16.mxu0 %vm7424_vm1, %v587_v47  ;;  %v4945_v48 = vsel %vm7424_vm1, %v587_v47, 0  ;;  %4366 = vmatprep.subr.msk.bf16.mxu1 %vm7424_vm1, %v587_v47  ;;  %v98_v53 = vld [vmem:[%s7418_s0 + $0xc0] sm:$0xff]  ;;  %vm2006_vm3 = vcmp.ne.s32.totalorder %v4953_v51, 4294967295  ;;  %v7443_v54 = vmov 0.0   ;;  %v4971_v56 = vld [vmem:[%s7419_s1 + $0x8] sm:$0xff]  ;;  %v278_v57 = vsel %vm7435_vm0, %v99_v52, -inf }
  0x1e   :  { %4102 = vmatpush3.bf16.msra.mxu0 %v4945_v48  ;;  %4300 = vmatpush3.bf16.msra.mxu1 %v4945_v48  ;;  %v3938_v55 = vsel %vm2006_vm3, 1.0, %v7443_v54  ;;  %v275_v58 = vsel %vm7435_vm0, %v98_v53, -inf  ;;  %vm2007_vm4 = vcmp.ne.s32.totalorder %v4971_v56, 4294967295  ;;  %v101_v60 = vld [vmem:[%s7418_s0 + $0xd8] sm:$0xff]  ;;  %v100_v61 = vld [vmem:[%s7418_s0 + $0xd0] sm:$0xff]  ;;  %v103_v11 = vld [vmem:[%s7418_s0 + $0xe8] sm:$0xff] }
  0x1f   :  { %249 = vmax.xlane.f32.xlu1 %v248_v31  ;;  %246 = vmax.xlane.f32.xlu0 %v245_v32  ;;  %v3592_v59 = vsel %vm3591_vm2, %v3938_v55, 0.0  ;;  %v3939_v62 = vsel %vm2007_vm4, 1.0, %v7443_v54  ;;  %v4990_v3 = vld [vmem:[%s7419_s1 + $0x10] sm:$0xff]  ;;  %v284_v7 = vsel %vm7435_vm0, %v101_v60, -inf  ;;  %v281_v8 = vsel %vm7435_vm0, %v100_v61, -inf  ;;  %v102_v12 = vld [vmem:[%s7418_s0 + $0xe0] sm:$0xff] }
  0x20   :  { %4367 = vmatprep.subr.msk.bf16.mxu0 %vm7424_vm1, %v587_v47  ;;  %v3593_v63 = vsel %vm3591_vm2, %v3939_v62, 0.0  ;;  %vm2008_vm5 = vcmp.ne.s32.totalorder %v4990_v3, 4294967295  ;;  %v5008_v19 = vld [vmem:[%s7419_s1 + $0x18] sm:$0xff]  ;;  %v290_v23 = vsel %vm7435_vm0, %v103_v11, -inf  ;;  %v287_v24 = vsel %vm7435_vm0, %v102_v12, -inf  ;;  %v104_v28 = vld [vmem:[%s7418_s0 + $0xf0] sm:$0xff] }
  0x21   :  { %v3594_v4 = vadd.f32 %v3593_v63, %v3592_v59  ;;  %v3940_v15 = vsel %vm2008_vm5, 1.0, %v7443_v54  ;;  %vm2009_vm6 = vcmp.ne.s32.totalorder %v5008_v19, 4294967295  ;;  %v105_v27 = vld [vmem:[%s7418_s0 + $0xf8] sm:$0xff]  ;;  %v5040_v45 = vld [vmem:[%s7419_s1 + $0x28] sm:$0xff]  ;;  %v5062_v59 = vld [vmem:[%s7419_s1 + $0x30] sm:$0xff] }
  0x22   :  { %v3595_v16 = vsel %vm3591_vm2, %v3940_v15, 0.0  ;;  %v3941_v31 = vsel %vm2009_vm6, 1.0, %v7443_v54  ;;  %vm2011_vm8 = vcmp.ne.s32.totalorder %v5040_v45, 4294967295  ;;  %v109_v55 = vld [vmem:[%s7418_s0 + $0x118] sm:$0xff]  ;;  %vm2012_vm9 = vcmp.ne.s32.totalorder %v5062_v59, 4294967295  ;;  %v111_v62 = vld [vmem:[%s7418_s0 + $0x128] sm:$0xff] }
  0x23   :  { %255 = vmax.xlane.f32.xlu1 %v254_v35  ;;  %252 = vmax.xlane.f32.xlu0 %v251_v36  ;;  %v3596_v20 = vadd.f32 %v3595_v16, %v3594_v4  ;;  %v3597_v32 = vsel %vm3591_vm2, %v3941_v31, 0.0  ;;  %v5026_v35 = vld [vmem:[%s7419_s1 + $0x20] sm:$0xff]  ;;  %v308_v60 = vsel %vm7435_vm0, %v109_v55, -inf  ;;  %v5076_v4 = vld [vmem:[%s7419_s1 + $0x38] sm:$0xff]  ;;  %v314_v16 = vsel %vm7435_vm0, %v111_v62, -inf  ;;  %v116_v55 = vld [vmem:[%s7418_s0 + $0x150] sm:$0xff] }
  0x24   :  { %vm2010_vm7 = vcmp.ne.s32.totalorder %v5026_v35, 4294967295  ;;  %v110_v63 = vld [vmem:[%s7418_s0 + $0x120] sm:$0xff]  ;;  %vm2013_vm10 = vcmp.ne.s32.totalorder %v5076_v4, 4294967295  ;;  %v119_v62 = vld [vmem:[%s7418_s0 + $0x168] sm:$0xff] }
  0x25   :  { %v3598_v36 = vadd.f32 %v3597_v32, %v3596_v20  ;;  %v3942_v46 = vsel %vm2010_vm7, 1.0, %v7443_v54  ;;  %v3945_v12 = vsel %vm2013_vm10, 1.0, %v7443_v54  ;;  %v311_v20 = vsel %vm7435_vm0, %v110_v63, -inf  ;;  %v118_v63 = vld [vmem:[%s7418_s0 + $0x160] sm:$0xff] }
  0x26   :  { %v3599_v47 = vsel %vm3591_vm2, %v3942_v46, 0.0 }
  0x27   :  { %261 = vmax.xlane.f32.xlu1 %v260_v39  ;;  %258 = vmax.xlane.f32.xlu0 %v257_v40  ;;  %v296_v39 = vsel %vm7435_vm0, %v105_v27, -inf  ;;  %v293_v40 = vsel %vm7435_vm0, %v104_v28, -inf  ;;  %v3605_v27 = vsel %vm3591_vm2, %v3945_v12, 0.0  ;;  %v5098_v28 = vld [vmem:[%s7419_s1 + $0x40] sm:$0xff] }
  0x28   :  { %vm2014_vm11 = vcmp.ne.s32.totalorder %v5098_v28, 4294967295 }
  0x2b   :  { %267 = vmax.xlane.f32.xlu1 %v266_v43  ;;  %264 = vmax.xlane.f32.xlu0 %v263_v44  ;;  %v107_v43 = vld [vmem:[%s7418_s0 + $0x108] sm:$0xff]  ;;  %v106_v44 = vld [vmem:[%s7418_s0 + $0x100] sm:$0xff] }
  0x2c   :  { %v302_v52 = vsel %vm7435_vm0, %v107_v43, -inf  ;;  %v299_v53 = vsel %vm7435_vm0, %v106_v44, -inf  ;;  %v3946_v43 = vsel %vm2014_vm11, 1.0, %v7443_v54 }
  0x2d   :  { %v3607_v46 = vsel %vm3591_vm2, %v3946_v43, 0.0 }
  0x2f   :  { %273 = vmax.xlane.f32.xlu1 %v272_v49  ;;  %270 = vmax.xlane.f32.xlu0 %v269_v50  ;;  %v3943_v49 = vsel %vm2011_vm8, 1.0, %v7443_v54  ;;  %v3600_v50 = vadd.f32 %v3599_v47, %v3598_v36  ;;  %v115_v36 = vld [vmem:[%s7418_s0 + $0x148] sm:$0xff] }
  0x33   :  { %279 = vmax.xlane.f32.xlu1 %v278_v57  ;;  %276 = vmax.xlane.f32.xlu0 %v275_v58  ;;  %v108_v57 = vld [vmem:[%s7418_s0 + $0x110] sm:$0xff]  ;;  %v3601_v58 = vsel %vm3591_vm2, %v3943_v49, 0.0 }
  0x34   :  { %v305_v61 = vsel %vm7435_vm0, %v108_v57, -inf }
  0x37   :  { %285 = vmax.xlane.f32.xlu1 %v284_v7  ;;  %282 = vmax.xlane.f32.xlu0 %v281_v8  ;;  %v3944_v7 = vsel %vm2012_vm9, 1.0, %v7443_v54  ;;  %v3602_v8 = vadd.f32 %v3601_v58, %v3600_v50  ;;  %v326_v50 = vsel %vm7435_vm0, %v115_v36, -inf  ;;  %v5134_v58 = vld [vmem:[%s7419_s1 + $0x50] sm:$0xff] }
  0x38   :  { %v3603_v11 = vsel %vm3591_vm2, %v3944_v7, 0.0  ;;  %vm7426_vm13 = vcmp.ne.s32.totalorder %v5134_v58, 4294967295  ;;  %v5148_v7 = vld [vmem:[%s7419_s1 + $0x58] sm:$0xff] }
  0x39   :  { %v3604_v15 = vadd.f32 %v3603_v11, %v3602_v8  ;;  %v3948_v8 = vsel %vm7426_vm13, 1.0, %v7443_v54  ;;  %vm2017_vm14 = vcmp.ne.s32.totalorder %v5148_v7, 4294967295 }
  0x3a   :  { %v3611_v12 = vsel %vm3591_vm2, %v3948_v8, 0.0 }
  0x3b   :  { %291 = vmax.xlane.f32.xlu1 %v290_v23  ;;  %288 = vmax.xlane.f32.xlu0 %v287_v24  ;;  %v113_v23 = vld [vmem:[%s7418_s0 + $0x138] sm:$0xff]  ;;  %v112_v24 = vld [vmem:[%s7418_s0 + $0x130] sm:$0xff]  ;;  %v3606_v44 = vadd.f32 %v3605_v27, %v3604_v15  ;;  %v3949_v15 = vsel %vm2017_vm14, 1.0, %v7443_v54 }
  0x3c   :  { %v320_v31 = vsel %vm7435_vm0, %v113_v23, -inf  ;;  %v317_v32 = vsel %vm7435_vm0, %v112_v24, -inf  ;;  %v335_v23 = vsel %vm7435_vm0, %v118_v63, -inf  ;;  %v121_v24 = vld [vmem:[%s7418_s0 + $0x178] sm:$0xff]  ;;  %v120_v27 = vld [vmem:[%s7418_s0 + $0x170] sm:$0xff] }
  0x3d   :  { %v3608_v49 = vadd.f32 %v3607_v46, %v3606_v44  ;;  %v344_v43 = vsel %vm7435_vm0, %v121_v24, -inf  ;;  %v341_v44 = vsel %vm7435_vm0, %v120_v27, -inf  ;;  %v123_v46 = vld [vmem:[%s7418_s0 + $0x188] sm:$0xff]  ;;  %v5206_v63 = vld [vmem:[%s7419_s1 + $0x78] sm:$0xff] }
  0x3f   :  { %297 = vmax.xlane.f32.xlu1 %v296_v39  ;;  %294 = vmax.xlane.f32.xlu0 %v293_v40  ;;  %v114_v39 = vld [vmem:[%s7418_s0 + $0x140] sm:$0xff]  ;;  %v5112_v40 = vld [vmem:[%s7419_s1 + $0x48] sm:$0xff] }
  0x40   :  { %vm2015_vm12 = vcmp.ne.s32.totalorder %v5112_v40, 4294967295 }
  0x41   :  { %v3947_v47 = vsel %vm2015_vm12, 1.0, %v7443_v54 }
  0x42   :  { %v3609_v57 = vsel %vm3591_vm2, %v3947_v47, 0.0  ;;  %v122_v47 = vld [vmem:[%s7418_s0 + $0x180] sm:$0xff] }
  0x43   :  { %303 = vmax.xlane.f32.xlu1 %v302_v52  ;;  %300 = vmax.xlane.f32.xlu0 %v299_v53  ;;  %v323_v52 = vsel %vm7435_vm0, %v114_v39, -inf  ;;  %v117_v53 = vld [vmem:[%s7418_s0 + $0x158] sm:$0xff]  ;;  %v3610_v11 = vadd.f32 %v3609_v57, %v3608_v49  ;;  %v5179_v39 = vld [vmem:[%s7419_s1 + $0x60] sm:$0xff]  ;;  %v350_v57 = vsel %vm7435_vm0, %v123_v46, -inf }
  0x44   :  { %vm7425_vm1 = vcmp.ne.s32.totalorder %v5179_v39, 4294967295  ;;  %v129_v46 = vld [vmem:[%s7418_s0 + $0x1b8] sm:$0xff] }
  0x45   :  { %v3950_v49 = vsel %vm7425_vm1, 1.0, %v7443_v54  ;;  %vm7428_vm1 = vcmp.ne.s32.totalorder %v5206_v63, 4294967295 }
  0x47   :  { %309 = vmax.xlane.f32.xlu1 %v308_v60  ;;  %306 = vmax.xlane.f32.xlu0 %v305_v61  ;;  %v332_v60 = vsel %vm7435_vm0, %v117_v53, -inf  ;;  %v329_v61 = vsel %vm7435_vm0, %v116_v55, -inf  ;;  %v3615_v53 = vsel %vm3591_vm2, %v3950_v49, 0.0  ;;  %v5242_v49 = vld [vmem:[%s7419_s1 + $0x88] sm:$0xff] }
  0x4b   :  { %315 = vmax.xlane.f32.xlu1 %v314_v16  ;;  %312 = vmax.xlane.f32.xlu0 %v311_v20  ;;  %v3612_v16 = vadd.f32 %v3611_v12, %v3610_v11  ;;  %v338_v20 = vsel %vm7435_vm0, %v119_v62, -inf  ;;  %v124_v62 = vld [vmem:[%s7418_s0 + $0x190] sm:$0xff]  ;;  %v3953_v11 = vsel %vm7428_vm1, 1.0, %v7443_v54 }
  0x4c   :  { %v5215_v12 = vld [vmem:[%s7419_s1 + $0x70] sm:$0xff]  ;;  %v3621_v27 = vsel %vm3591_vm2, %v3953_v11, 0.0 }
  0x4d   :  { %vm7427_vm13 = vcmp.ne.s32.totalorder %v5215_v12, 4294967295 }
  0x4e   :  { %v3952_v24 = vsel %vm7427_vm13, 1.0, %v7443_v54  ;;  %vm7430_vm13 = vcmp.ne.s32.totalorder %v5242_v49, 4294967295 }
  0x4f   :  { %321 = vmax.xlane.f32.xlu1 %v320_v31  ;;  %318 = vmax.xlane.f32.xlu0 %v317_v32  ;;  %v5169_v31 = vld [vmem:[%s7419_s1 + $0x68] sm:$0xff]  ;;  %v3613_v32 = vsel %vm3591_vm2, %v3949_v15, 0.0 }
  0x50   :  { %vm2019_vm15 = vcmp.ne.s32.totalorder %v5169_v31, 4294967295 }
  0x51   :  { %v3951_v36 = vsel %vm2019_vm15, 1.0, %v7443_v54 }
  0x53   :  { %327 = vmax.xlane.f32.xlu1 %v326_v50  ;;  %324 = vmax.xlane.f32.xlu0 %v323_v52  ;;  %v3614_v50 = vadd.f32 %v3613_v32, %v3612_v16  ;;  %v3617_v52 = vsel %vm3591_vm2, %v3951_v36, 0.0  ;;  %v353_v16 = vsel %vm7435_vm0, %v124_v62, -inf  ;;  %v3619_v32 = vsel %vm3591_vm2, %v3952_v24, 0.0  ;;  %v132_v24 = vld [vmem:[%s7418_s0 + $0x1d0] sm:$0xff] }
  0x55   :  { %v3616_v55 = vadd.f32 %v3615_v53, %v3614_v50  ;;  %v5251_v53 = vld [vmem:[%s7419_s1 + $0x80] sm:$0xff] }
  0x56   :  { %vm7429_vm1 = vcmp.ne.s32.totalorder %v5251_v53, 4294967295 }
  0x57   :  { %333 = vmax.xlane.f32.xlu1 %v332_v60  ;;  %330 = vmax.xlane.f32.xlu0 %v329_v61  ;;  %v347_v60 = vsel %vm7435_vm0, %v122_v47, -inf  ;;  %v125_v61 = vld [vmem:[%s7418_s0 + $0x198] sm:$0xff]  ;;  %v3618_v8 = vadd.f32 %v3617_v52, %v3616_v55  ;;  %v128_v47 = vld [vmem:[%s7418_s0 + $0x1b0] sm:$0xff]  ;;  %v3955_v52 = vsel %vm7430_vm13, 1.0, %v7443_v54  ;;  %v368_v55 = vsel %vm7435_vm0, %v129_v46, -inf }
  0x58   :  { %v356_v15 = vsel %vm7435_vm0, %v125_v61, -inf  ;;  %v130_v61 = vld [vmem:[%s7418_s0 + $0x1c0] sm:$0xff]  ;;  %v3954_v62 = vsel %vm7429_vm1, 1.0, %v7443_v54  ;;  %v377_v46 = vsel %vm7435_vm0, %v132_v24, -inf  ;;  %v5322_v24 = vld [vmem:[%s7419_s1 + $0xa8] sm:$0xff] }
  0x59   :  { %v3620_v36 = vadd.f32 %v3619_v32, %v3618_v8  ;;  %v3625_v8 = vsel %vm3591_vm2, %v3955_v52, 0.0  ;;  %v3623_v11 = vsel %vm3591_vm2, %v3954_v62, 0.0 }
  0x5b   :  { %339 = vmax.xlane.f32.xlu1 %v338_v20  ;;  %336 = vmax.xlane.f32.xlu0 %v335_v23  ;;  %v127_v20 = vld [vmem:[%s7418_s0 + $0x1a8] sm:$0xff]  ;;  %v126_v23 = vld [vmem:[%s7418_s0 + $0x1a0] sm:$0xff]  ;;  %v3622_v50 = vadd.f32 %v3621_v27, %v3620_v36  ;;  %v5278_v27 = vld [vmem:[%s7419_s1 + $0x98] sm:$0xff] }
  0x5c   :  { %vm7432_vm1 = vcmp.ne.s32.totalorder %v5278_v27, 4294967295 }
  0x5d   :  { %v3957_v36 = vsel %vm7432_vm1, 1.0, %v7443_v54  ;;  %vm7434_vm1 = vcmp.ne.s32.totalorder %v5322_v24, 4294967295 }
  0x5f   :  { %345 = vmax.xlane.f32.xlu1 %v344_v43  ;;  %342 = vmax.xlane.f32.xlu0 %v341_v44  ;;  %v362_v43 = vsel %vm7435_vm0, %v127_v20, -inf  ;;  %v359_v44 = vsel %vm7435_vm0, %v126_v23, -inf  ;;  %v371_v20 = vsel %vm7435_vm0, %v130_v61, -inf  ;;  %v133_v23 = vld [vmem:[%s7418_s0 + $0x1d8] sm:$0xff] }
  0x63   :  { %351 = vmax.xlane.f32.xlu1 %v350_v57  ;;  %348 = vmax.xlane.f32.xlu0 %v347_v60  ;;  %v365_v57 = vsel %vm7435_vm0, %v128_v47, -inf  ;;  %v131_v60 = vld [vmem:[%s7418_s0 + $0x1c8] sm:$0xff] }
  0x64   :  { %v135_v47 = vld [vmem:[%s7418_s0 + $0x1e8] sm:$0xff] }
  0x65   :  { %v386_v61 = vsel %vm7435_vm0, %v135_v47, -inf }
  0x67   :  { %357 = vmax.xlane.f32.xlu1 %v356_v15  ;;  %354 = vmax.xlane.f32.xlu0 %v353_v16  ;;  %v3624_v15 = vadd.f32 %v3623_v11, %v3622_v50  ;;  %v374_v16 = vsel %vm7435_vm0, %v131_v60, -inf  ;;  %v134_v50 = vld [vmem:[%s7418_s0 + $0x1e0] sm:$0xff]  ;;  %v136_v11 = vld [vmem:[%s7418_s0 + $0x1f0] sm:$0xff] }
  0x68   :  { %v383_v62 = vsel %vm7435_vm0, %v134_v50, -inf  ;;  %v5336_v50 = vld [vmem:[%s7419_s1 + $0xb0] sm:$0xff] }
  0x69   :  { %v3626_v32 = vadd.f32 %v3625_v8, %v3624_v15  ;;  %v137_v8 = vld [vmem:[%s7418_s0 + $0x1f8] sm:$0xff]  ;;  %7553 = vst [vmem:[#allocation10_spill] sm:$0xff] %v5336_v50 }
  0x6b   :  { %363 = vmax.xlane.f32.xlu1 %v362_v43  ;;  %360 = vmax.xlane.f32.xlu0 %v359_v44  ;;  %v5287_v43 = vld [vmem:[%s7419_s1 + $0x90] sm:$0xff]  ;;  %v380_v44 = vsel %vm7435_vm0, %v133_v23, -inf  ;;  %v389_v23 = vsel %vm7435_vm0, %v136_v11, -inf  ;;  %v5356_v11 = vld [vmem:[%s7419_s1 + $0xc0] sm:$0xff] }
  0x6c   :  { %vm7431_vm13 = vcmp.ne.s32.totalorder %v5287_v43, 4294967295  ;;  %7554 = vst [vmem:[#allocation11_spill] sm:$0xff] %v5356_v11 }
  0x6d   :  { %v3956_v52 = vsel %vm7431_vm13, 1.0, %v7443_v54 }
  0x6f   :  { %369 = vmax.xlane.f32.xlu1 %v368_v55  ;;  %366 = vmax.xlane.f32.xlu0 %v365_v57  ;;  %v3629_v55 = vsel %vm3591_vm2, %v3957_v36, 0.0  ;;  %v3627_v57 = vsel %vm3591_vm2, %v3956_v52, 0.0  ;;  %v5342_v52 = vld [vmem:[%s7419_s1 + $0xb8] sm:$0xff] }
  0x70   :  { %v3628_v60 = vadd.f32 %v3627_v57, %v3626_v32 }
  0x72   :  { %v3630_v15 = vadd.f32 %v3629_v55, %v3628_v60 }
  0x73   :  { %375 = vmax.xlane.f32.xlu1 %v374_v16  ;;  %372 = vmax.xlane.f32.xlu0 %v371_v20  ;;  %v5314_v16 = vld [vmem:[%s7419_s1 + $0xa0] sm:$0xff]  ;;  %v392_v20 = vsel %vm7435_vm0, %v137_v8, -inf  ;;  %vm7437_vm0 = vcmp.ne.s32.totalorder %v5356_v11, 4294967295 }
  0x74   :  { %vm7433_vm13 = vcmp.ne.s32.totalorder %v5314_v16, 4294967295 }
  0x75   :  { %v3958_v32 = vsel %vm7433_vm13, 1.0, %v7443_v54  ;;  %vm7436_vm13 = vcmp.ne.s32.totalorder %v5336_v50, 4294967295 }
  0x76   :  { %v3631_v36 = vsel %vm3591_vm2, %v3958_v32, 0.0  ;;  %v3960_v55 = vsel %vm7436_vm13, 1.0, %v7443_v54 }
  0x77   :  { %381 = vmax.xlane.f32.xlu1 %v380_v44  ;;  %378 = vmax.xlane.f32.xlu0 %v377_v46  ;;  %v3959_v44 = vsel %vm7434_vm1, 1.0, %v7443_v54  ;;  %v3632_v46 = vadd.f32 %v3631_v36, %v3630_v15  ;;  %vm2029_vm1 = vcmp.ne.s32.totalorder %v5342_v52, 4294967295  ;;  %v3635_v60 = vsel %vm3591_vm2, %v3960_v55, 0.0 }
  0x78   :  { %v3633_v47 = vsel %vm3591_vm2, %v3959_v44, 0.0  ;;  %v3962_v15 = vsel %vm7437_vm0, 1.0, %v7443_v54 }
  0x79   :  { %v3634_v57 = vadd.f32 %v3633_v47, %v3632_v46  ;;  %v3639_v32 = vsel %vm3591_vm2, %v3962_v15, 0.0 }
  0x7b   :  { %387 = vmax.xlane.f32.xlu1 %v386_v61  ;;  %384 = vmax.xlane.f32.xlu0 %v383_v62  ;;  %v3961_v61 = vsel %vm2029_vm1, 1.0, %v7443_v54  ;;  %v3636_v62 = vadd.f32 %v3635_v60, %v3634_v57 }
  0x7c   :  { %v3637_v8 = vsel %vm3591_vm2, %v3961_v61, 0.0 }
  0x7f   :  { %393 = vmax.xlane.f32.xlu1 %v392_v20  ;;  %390 = vmax.xlane.f32.xlu0 %v389_v23  ;;  %v3638_v20 = vadd.f32 %v3637_v8, %v3636_v62  ;;  %v5365_v23 = vld [vmem:[%s7419_s1 + $0xc8] sm:$0xff] }
  0x80   :  { %vm2031_vm13 = vcmp.ne.s32.totalorder %v5365_v23, 4294967295  ;;  %v4644_v23 = vld [vmem:[%s7418_s0 + $0x110] sm:$0xff] }
  0x81   :  { %v3640_v36 = vadd.f32 %v3639_v32, %v3638_v20  ;;  %v3963_v47 = vsel %vm2031_vm13, 1.0, %v7443_v54  ;;  %v2397_v20 = vsel %vm2011_vm8, 1, %v7438_v6 }
  0x82   :  { %v3641_v61 = vsel %vm3591_vm2, %v3963_v47, 0.0 }
  0x90   :  { %2140 = vperm.xlu1 %4374, %v4971_v56   ;;  %v211_v44 = vpop.xlane.xlu1 %210  ;;  %v205_v46 = vpop.xlane.xlu0 %204 }
  0x91   :  { %v5374_v55 = vsub.f32 %v4781_v0, %v211_v44  ;;  %v5377_v57 = vsub.f32 %v4786_v1, %v205_v46  ;;  %v5389_v0 = vld [vmem:[%s7419_s1 + $0xd0] sm:$0xff]  ;;  %v2392_v44 = vsel %vm2006_vm3, 1, %v7438_v6  ;;  %v5404_v46 = vld [vmem:[%s7419_s1 + $0xd8] sm:$0xff] }
  0x92   :  { %7557 = vst [vmem:[#allocation14_spill] sm:$0xff] %v5389_v0  ;;  %7560 = vst [vmem:[#allocation17_spill] sm:$0xff] %v5404_v46  ;;  %vm2032_vm8 = vcmp.ne.s32.totalorder %v5389_v0, 4294967295  ;;  %vm2033_vm0 = vcmp.ne.s32.totalorder %v5404_v46, 4294967295 }
  0x93   :  { %7555 = vst [vmem:[#allocation12_spill] sm:$0xff] %v5374_v55  ;;  %7556 = vst [vmem:[#allocation13_spill] sm:$0xff] %v5377_v57  ;;  %v463_v60 = vmul.f32 1.442695, %v5374_v55  ;;  %v459_v62 = vmul.f32 1.442695, %v5377_v57 }
  0x94   :  { %2143 = vperm.xlu1 %4374, %v4990_v3   ;;  %v214_v8 = vpop.xlane.xlu1 %213  ;;  %v208_v15 = vpop.xlane.xlu0 %207  ;;  %v7561_v57 = vmov 0  }
  0x95   :  { %v5392_v1 = vsub.f32 %v4791_v2, %v214_v8  ;;  %v5395_v32 = vsub.f32 %v4800_v5, %v208_v15  ;;  %2137 = vperm.xlu0 %4373, %v4953_v51   ;;  %v5410_v2 = vsel %vm2007_vm4, 1, %v7438_v6  ;;  %v3964_v5 = vsel %vm2032_vm8, 1.0, %v7443_v54 }
  0x96   :  { %v3642_v51 = vadd.f32 %v3641_v61, %v3640_v36  ;;  %4375 = vpow2.f32 %v463_v60  ;;  %v3643_v15 = vsel %vm3591_vm2, %v3964_v5, 0.0  ;;  %v5423_v55 = vsel %vm2013_vm10, 1, %v7561_v57 }
  0x97   :  { %7558 = vst [vmem:[#allocation15_spill] sm:$0xff] %v5392_v1  ;;  %7559 = vst [vmem:[#allocation16_spill] sm:$0xff] %v5395_v32  ;;  %v465_v47 = vmul.f32 1.442695, %v5392_v1  ;;  %v461_v8 = vmul.f32 1.442695, %v5395_v32  ;;  %4377 = vpow2.f32 %v459_v62 }
  0x98   :  { %2146 = vperm.xlu1 %4374, %v5008_v19   ;;  %v220_v56 = vpop.xlane.xlu1 %219  ;;  %v217_v6 = vpop.xlane.xlu0 %216  ;;  %v3965_v36 = vsel %vm2033_vm0, 1.0, %v7443_v54  ;;  %v3644_v60 = vadd.f32 %v3643_v15, %v3642_v51  ;;  %v5438_v5 = vsel %vm2008_vm5, 1, %v7561_v57  ;;  %v5443_v32 = vld [vmem:[%s7419_s1 + $0xe8] sm:$0xff]  ;;  %v5471_v15 = vsel %vm2010_vm7, 1, %v7561_v57 }
  0x99   :  { %4379 = vpow2.f32 %v465_v47  ;;  %v5429_v61 = vsub.f32 %v4811_v9, %v220_v56  ;;  %v5432_v62 = vsub.f32 %v4816_v10, %v217_v6  ;;  %2152 = vperm.xlu0 %4373, %v5040_v45   ;;  %7564 = vst [vmem:[#allocation20_spill] sm:$0xff] %v5443_v32  ;;  %v5448_v9 = vsel %vm2009_vm6, 1, %v7561_v57  ;;  %v5459_v10 = vld [vmem:[%s7419_s1 + $0xf8] sm:$0xff] }
  0x9a   :  { %4381 = vpow2.f32 %v461_v8  ;;  %v5453_v6 = vsel %vm2015_vm12, 1, %v7561_v57  ;;  %vm2035_vm3 = vcmp.ne.s32.totalorder %v5443_v32, 4294967295  ;;  %7565 = vst [vmem:[#allocation21_spill] sm:$0xff] %v5459_v10  ;;  %v3645_v19 = vsel %vm3591_vm2, %v3965_v36, 0.0 }
  0x9b   :  { %7562 = vst [vmem:[#allocation18_spill] sm:$0xff] %v5429_v61  ;;  %7563 = vst [vmem:[#allocation19_spill] sm:$0xff] %v5432_v62  ;;  %v469_v3 = vmul.f32 1.442695, %v5429_v61  ;;  %v467_v45 = vmul.f32 1.442695, %v5432_v62  ;;  %v3646_v11 = vadd.f32 %v3645_v19, %v3644_v60 }
  0x9c   :  { %v3967_v51 = vsel %vm2035_vm3, 1.0, %v7443_v54  ;;  %2149 = vperm.xlu1 %4374, %v5026_v35   ;;  %v226_v47 = vpop.xlane.xlu1 %225  ;;  %v223_v8 = vpop.xlane.xlu0 %222  ;;  %v5476_v56 = vsel %vm2017_vm14, 1, %v7561_v57  ;;  %v5481_v36 = vsel %vm2012_vm9, 1, %v7561_v57  ;;  %vm2037_vm4 = vcmp.ne.s32.totalorder %v5459_v10, 4294967295  ;;  %v5487_v54 = vld [vmem:[%s7419_s1 + $0xe0] sm:$0xff] }
  0x9d   :  { %7566 = vst [vmem:[#allocation22_spill] sm:$0xff] %v5487_v54  ;;  %4383 = vpow2.f32 %v469_v3  ;;  %v5490_v35 = vsub.f32 %v4825_v13, %v226_v47  ;;  %v5493_v61 = vsub.f32 %v4830_v14, %v223_v8  ;;  %2472 = vperm.xlu0 %4373, %v2397_v20   ;;  %vm2034_vm5 = vcmp.ne.s32.totalorder %v5487_v54, 4294967295  ;;  %v5503_v3 = vld [vmem:[%s7419_s1 + $0xf0] sm:$0xff] }
  0x9e   :  { %4385 = vpow2.f32 %v467_v45  ;;  %v3649_v62 = vsel %vm3591_vm2, %v3967_v51, 0.0  ;;  %v7569_v1 = vmov 0.0   ;;  %7570 = vst [vmem:[#allocation25_spill] sm:$0xff] %v5503_v3  ;;  %vm2036_vm6 = vcmp.ne.s32.totalorder %v5503_v3, 4294967295 }
  0x9f   :  { %7567 = vst [vmem:[#allocation23_spill] sm:$0xff] %v5490_v35  ;;  %7568 = vst [vmem:[#allocation24_spill] sm:$0xff] %v5493_v61  ;;  %v3966_v0 = vsel %vm2034_vm5, 1.0, %v7569_v1  ;;  %v473_v13 = vmul.f32 1.442695, %v5490_v35  ;;  %v5512_v60 = vsel %vm2019_vm15, 1, %v7561_v57 }
  0xa0   :  { %v471_v14 = vmul.f32 1.442695, %v5493_v61  ;;  %v3647_v20 = vsel %vm3591_vm2, %v3966_v0, 0.0  ;;  %2457 = vperm.xlu1 %4374, %v2392_v44   ;;  %v232_v45 = vpop.xlane.xlu1 %231  ;;  %v229_v51 = vpop.xlane.xlu0 %228  ;;  %v3969_v19 = vsel %vm2037_vm4, 1.0, %v7569_v1  ;;  %v3968_v8 = vsel %vm2036_vm6, 1.0, %v7569_v1 }
  0xa1   :  { %v3648_v47 = vadd.f32 %v3647_v20, %v3646_v11  ;;  %v4376_v0 = vpop.eup %4375  ;;  %4387 = vpow2.f32 %v473_v13  ;;  %v5521_v44 = vsub.f32 %v4839_v17, %v232_v45  ;;  %v5524_v35 = vsub.f32 %v4844_v18, %v229_v51  ;;  %2158 = vperm.xlu0 %4373, %v5076_v4   ;;  %v5541_v17 = vld [vmem:[%s7419_s1 + $0x108] sm:$0xff]  ;;  %v5546_v4 = vld [vmem:[%s7419_s1 + $0x100] sm:$0xff] }
  0xa2   :  { %v3651_v61 = vsel %vm3591_vm2, %v3968_v8, 0.0  ;;  %v4378_v54 = vpop.eup %4377  ;;  %4389 = vpow2.f32 %v471_v14  ;;  %v5531_v11 = vsel %vm2014_vm11, 1, %v7561_v57  ;;  %vm7573_vm7 = vcmp.ne.s32.totalorder %v5206_v63, 4294967295  ;;  %7574 = vst [vmem:[#allocation28_spill] sm:$0xff] %v5541_v17  ;;  %7575 = vst [vmem:[#allocation29_spill] sm:$0xff] %v5546_v4 }
  0xa3   :  { %7571 = vst [vmem:[#allocation26_spill] sm:$0xff] %v5521_v44  ;;  %7572 = vst [vmem:[#allocation27_spill] sm:$0xff] %v5524_v35  ;;  %v5536_v13 = vsel %vm7573_vm7, 1, %v7561_v57  ;;  %v3650_v18 = vadd.f32 %v3649_v62, %v3648_v47  ;;  %v4380_v14 = vpop.eup %4379  ;;  %v477_v20 = vmul.f32 1.442695, %v5521_v44  ;;  %v3653_v51 = vsel %vm3591_vm2, %v3969_v19, 0.0 }
  0xa4   :  { %v475_v45 = vmul.f32 1.442695, %v5524_v35  ;;  %vm2038_vm9 = vcmp.ne.s32.totalorder %v5546_v4, 4294967295  ;;  %v4382_v8 = vpop.eup %4381  ;;  %v5552_v3 = vpack.c.bf16 %v4380_v14, %v4376_v0  ;;  %2460 = vperm.xlu1 %4374, %v5410_v2   ;;  %v238_v62 = vpop.xlane.xlu1 %237  ;;  %vm2039_vm10 = vcmp.ne.s32.totalorder %v5541_v17, 4294967295 }
  0xa5   :  { %v235_v47 = vpop.xlane.xlu0 %234  ;;  %v3652_v10 = vadd.f32 %v3651_v61, %v3650_v18  ;;  %v3970_v44 = vsel %vm2038_vm9, 1.0, %v7569_v1  ;;  %4391 = vpow2.f32 %v477_v20  ;;  %v5560_v35 = vsub.f32 %v4853_v21, %v238_v62  ;;  %2478 = vperm.xlu0 %4373, %v5423_v55  }
  0xa6   :  { %7576 = vst [vmem:[#allocation30_spill] sm:$0xff] %v5552_v3  ;;  %v5563_v19 = vsub.f32 %v4858_v22, %v235_v47  ;;  %v5566_v32 = vpack.c.bf16 %v4382_v8, %v4378_v54  ;;  %4393 = vpow2.f32 %v475_v45  ;;  %v622_v2 = vunpack.c.l.bf16 %v5552_v3 }
  0xa7   :  { %7577 = vst [vmem:[#allocation31_spill] sm:$0xff] %v5560_v35  ;;  %v623_v61 = vunpack.c.h.bf16 %v5552_v3  ;;  %v3654_v18 = vadd.f32 %v3653_v51, %v3652_v10  ;;  %v4384_v50 = vpop.eup %4383  ;;  %v481_v4 = vmul.f32 1.442695, %v5560_v35  ;;  %v3971_v10 = vsel %vm2039_vm10, 1.0, %v7569_v1 }
  0xa8   :  { %7578 = vst [vmem:[#allocation32_spill] sm:$0xff] %v5563_v19  ;;  %v479_v20 = vmul.f32 1.442695, %v5563_v19  ;;  %v620_v21 = vunpack.c.l.bf16 %v5566_v32  ;;  %v621_v22 = vunpack.c.h.bf16 %v5566_v32  ;;  %v4386_v62 = vpop.eup %4385  ;;  %2463 = vperm.xlu1 %4374, %v5438_v5   ;;  %v244_v55 = vpop.xlane.xlu1 %243  ;;  %v686_v45 = vsub.f32 %v4376_v0, %v622_v2 }
  0xa9   :  { %v241_v47 = vpop.xlane.xlu0 %240  ;;  %v687_v46 = vsub.f32 %v4380_v14, %v623_v61  ;;  %v3655_v51 = vsel %vm3591_vm2, %v3970_v44, 0.0  ;;  %v5579_v35 = vpack.c.bf16 %v4384_v50, %v4386_v62  ;;  %4395 = vpow2.f32 %v481_v4  ;;  %2164 = vperm.xlu0 %4373, %v5112_v40  }
  0xaa   :  { %v5582_v19 = vsub.f32 %v4867_v25, %v244_v55  ;;  %v5585_v3 = vsub.f32 %v4872_v26, %v241_v47  ;;  %4397 = vpow2.f32 %v479_v20  ;;  %v684_v5 = vsub.f32 %v4378_v54, %v620_v21 }
  0xab   :  { %v685_v0 = vsub.f32 %v4382_v8, %v621_v22  ;;  %v749_v14 = vpack.c.bf16 %v687_v46, %v686_v45  ;;  %v4388_v2 = vpop.eup %4387  ;;  %v624_v17 = vunpack.c.l.bf16 %v5579_v35  ;;  %v625_v4 = vunpack.c.h.bf16 %v5579_v35 }
  0xac   :  { %7579 = vst [vmem:[#allocation33_spill] sm:$0xff] %v5582_v19  ;;  %7580 = vst [vmem:[#allocation34_spill] sm:$0xff] %v5585_v3  ;;  %v485_v61 = vmul.f32 1.442695, %v5582_v19  ;;  %v483_v44 = vmul.f32 1.442695, %v5585_v3  ;;  %v4390_v25 = vpop.eup %4389  ;;  %2466 = vperm.xlu1 %4374, %v5448_v9   ;;  %v250_v26 = vpop.xlane.xlu1 %249  ;;  %v3656_v46 = vadd.f32 %v3655_v51, %v3654_v18 }
  0xad   :  { %v748_v55 = vpack.c.bf16 %v685_v0, %v684_v5  ;;  %v247_v47 = vpop.xlane.xlu0 %246  ;;  %vm7581_vm11 = vcmp.ne.s32.totalorder %v5134_v58, 4294967295  ;;  %v3657_v40 = vsel %vm3591_vm2, %v3971_v10, 0.0  ;;  %v5599_v8 = vpack.c.bf16 %v4388_v2, %v4390_v25  ;;  %2484 = vperm.xlu0 %4373, %v5453_v6   ;;  %v4676_v3 = vld [vmem:[%s7418_s0 + $0x1d8] sm:$0xff] }
  0xae   :  { %v5596_v54 = vsel %vm7581_vm11, 1, %v7561_v57  ;;  %4399 = vpow2.f32 %v485_v61  ;;  %v5602_v20 = vsub.f32 %v4881_v29, %v250_v26  ;;  %v5605_v21 = vsub.f32 %v4886_v30, %v247_v47  ;;  %v5617_v29 = vld [vmem:[%s7419_s1 + $0x118] sm:$0xff]  ;;  %v5649_v26 = vld [vmem:[%s7419_s1 + $0x110] sm:$0xff] }
  0xaf   :  { %4401 = vpow2.f32 %v483_v44  ;;  %vm7584_vm12 = vcmask 64512   ;;  %v688_v9 = vsub.f32 %v4386_v62, %v624_v17  ;;  %v689_v22 = vsub.f32 %v4384_v50, %v625_v4  ;;  %v4392_v45 = vpop.eup %4391  ;;  %v5627_v62 = vld [vmem:[%s7421_s3] sm:$0xf] }
  0xb0   :  { %7582 = vst [vmem:[#allocation35_spill] sm:$0xff] %v5602_v20  ;;  %7583 = vst [vmem:[#allocation36_spill] sm:$0xff] %v5605_v21  ;;  %4103 = vmatprep.mubr.msk.bf16.mxu0 %vm7584_vm12, %v748_v55  ;;  %vm7585_vm14 = vcmp.ne.s32.totalorder %v5242_v49, 4294967295  ;;  %v489_v30 = vmul.f32 1.442695, %v5602_v20  ;;  %v626_v17 = vunpack.c.l.bf16 %v5599_v8  ;;  %v627_v50 = vunpack.c.h.bf16 %v5599_v8  ;;  %v4394_v10 = vpop.eup %4393  ;;  %2469 = vperm.xlu1 %4374, %v5471_v15   ;;  %v256_v51 = vpop.xlane.xlu1 %255 }
  0xb1   :  { %v5612_v18 = vsel %vm7585_vm14, 1, %v7561_v57  ;;  %v487_v6 = vmul.f32 1.442695, %v5605_v21  ;;  %vm7586_vm15 = vmmov %vm7584_vm12  ;;  %v750_v5 = vpack.c.bf16 %v689_v22, %v688_v9  ;;  %v253_v0 = vpop.xlane.xlu0 %252  ;;  %vm7587_vm7 = vcmp.ne.s32.totalorder %v5179_v39, 4294967295  ;;  %2170 = vperm.xlu0 %4373, %v5148_v7  }
  0xb2   :  { %4104 = vmatmul.mubr.msk.bf16.vlgmr.msra.gmra.mrb[0].mxu0 %vm7586_vm15, %v749_v14  ;;  %v5633_v61 = vsel %vm7587_vm7, 1, %v7561_v57  ;;  %vm2041_vm11 = vcmp.ne.s32.totalorder %v5617_v29, 4294967295  ;;  %v3658_v14 = vadd.f32 %v3657_v40, %v3656_v46  ;;  %v5637_v44 = vpack.c.bf16 %v4392_v45, %v4394_v10  ;;  %vm7591_vm14 = vmmov %vm7586_vm15 }
  0xb3   :  { %4168 = vmatpush3.bf16.msra.mxu0 %v4945_v48  ;;  %4403 = vpow2.f32 %v489_v30  ;;  %v5640_v4 = vsub.f32 %v4895_v33, %v256_v51  ;;  %v5643_v15 = vsub.f32 %v4900_v34, %v253_v0  ;;  %vm7590_vm12 = vcmask 1043456   ;;  %4107 = vmatprep.mubr.msk.bf16.mxu0 %vm7591_vm14, %v750_v5  ;;  %v4396_v33 = vpop.eup %4395 }
  0xb4   :  { %4368 = vmatprep.subr.msk.bf16.mxu1 %vm7590_vm12, %v5627_v62  ;;  %4405 = vpow2.f32 %v487_v6  ;;  %v690_v48 = vsub.f32 %v4390_v25, %v626_v17  ;;  %v691_v55 = vsub.f32 %v4388_v2, %v627_v50  ;;  %vm7478_vm15 = vcmp.ne.s32.totalorder %v5649_v26, 4294967295  ;;  %v4398_v46 = vpop.eup %4397  ;;  %2155 = vperm.xlu1 %4374, %v5062_v59   ;;  %v262_v9 = vpop.xlane.xlu1 %261  ;;  %vm7595_vm12 = vmmov %vm7591_vm14 }
  0xb5   :  { %7588 = vst [vmem:[#allocation37_spill] sm:$0xff] %v5640_v4  ;;  %7589 = vst [vmem:[#allocation38_spill] sm:$0xff] %v5643_v15  ;;  %v493_v34 = vmul.f32 1.442695, %v5640_v4  ;;  %v491_v7 = vmul.f32 1.442695, %v5643_v15  ;;  %v628_v47 = vunpack.c.l.bf16 %v5637_v44  ;;  %v629_v40 = vunpack.c.h.bf16 %v5637_v44  ;;  %v259_v22 = vpop.xlane.xlu0 %258  ;;  %2490 = vperm.xlu0 %4373, %v5476_v56  }
  0xb6   :  { %v751_v30 = vpack.c.bf16 %v691_v55, %v690_v48  ;;  %vm7592_vm7 = vcmp.ne.s32.totalorder %v5278_v27, 4294967295  ;;  %v3973_v25 = vsel %vm2041_vm11, 1.0, %v7569_v1  ;;  %v3972_v6 = vsel %vm7478_vm15, 1.0, %v7569_v1 }
  0xb7   :  { %v5663_v2 = vsel %vm7592_vm7, 1, %v7561_v57  ;;  %v5671_v17 = vpack.c.bf16 %v4396_v33, %v4398_v46  ;;  %4407 = vpow2.f32 %v493_v34  ;;  %v5674_v59 = vsub.f32 %v4909_v37, %v262_v9  ;;  %vm7599_vm7 = vmmov %vm7595_vm12 }
  0xb8   :  { %v5677_v50 = vsub.f32 %v4914_v38, %v259_v22  ;;  %4409 = vpow2.f32 %v491_v7  ;;  %v692_v51 = vsub.f32 %v4394_v10, %v628_v47  ;;  %v693_v5 = vsub.f32 %v4392_v45, %v629_v40  ;;  %v4400_v48 = vpop.eup %4399  ;;  %2475 = vperm.xlu1 %4374, %v5481_v36   ;;  %v268_v56 = vpop.xlane.xlu1 %267  ;;  %v5705_v36 = vld [vmem:[%s7419_s1 + $0x120] sm:$0xff] }
  0xb9   :  { %7593 = vst [vmem:[#allocation39_spill] sm:$0xff] %v5674_v59  ;;  %v3659_v0 = vsel %vm3591_vm2, %v3972_v6, 0.0  ;;  %v497_v55 = vmul.f32 1.442695, %v5674_v59  ;;  %v630_v37 = vunpack.c.l.bf16 %v5671_v17  ;;  %v631_v34 = vunpack.c.h.bf16 %v5671_v17  ;;  %v4402_v38 = vpop.eup %4401  ;;  %v265_v10 = vpop.xlane.xlu0 %264  ;;  %2176 = vperm.xlu0 %4373, %v5169_v31  }
  0xba   :  { %7594 = vst [vmem:[#allocation40_spill] sm:$0xff] %v5677_v50  ;;  %v495_v4 = vmul.f32 1.442695, %v5677_v50  ;;  %4108 = vmatmul.mubr.msk.bf16.gmra.mrb[4].mxu0 %vm7595_vm12, %v751_v30  ;;  %v752_v7 = vpack.c.bf16 %v693_v5, %v692_v51  ;;  %vm7596_vm14 = vcmp.ne.s32.totalorder %v5215_v12, 4294967295  ;;  %v3661_v47 = vsel %vm3591_vm2, %v3973_v25, 0.0  ;;  %v5716_v5 = vld [vmem:[%s7419_s1 + $0x128] sm:$0xff] }
  0xbb   :  { %v5690_v45 = vsel %vm7596_vm14, 1, %v7561_v57  ;;  %v3660_v40 = vadd.f32 %v3659_v0, %v3658_v14  ;;  %v5693_v9 = vpack.c.bf16 %v4400_v48, %v4402_v38  ;;  %4411 = vpow2.f32 %v497_v55 }
  0xbc   :  { %v5696_v22 = vsub.f32 %v4923_v41, %v268_v56  ;;  %v5699_v30 = vsub.f32 %v4928_v42, %v265_v10  ;;  %4413 = vpow2.f32 %v495_v4  ;;  %4111 = vmatprep.mubr.msk.bf16.mxu0 %vm7599_vm7, %v752_v7  ;;  %v694_v14 = vsub.f32 %v4398_v46, %v630_v37  ;;  %2161 = vperm.xlu1 %4374, %v5098_v28   ;;  %v4631_v56 = vld [vmem:[%s7418_s0 + $0xb8] sm:$0xff]  ;;  %v4632_v28 = vld [vmem:[%s7418_s0 + $0xb0] sm:$0xff] }
  0xbd   :  { %v695_v25 = vsub.f32 %v4396_v33, %v631_v34  ;;  %vm7467_vm12 = vcmp.ne.s32.totalorder %v5705_v36, 4294967295  ;;  %v4404_v6 = vpop.eup %4403  ;;  %v632_v51 = vunpack.c.l.bf16 %v5693_v9  ;;  %v633_v31 = vunpack.c.h.bf16 %v5693_v9  ;;  %v274_v33 = vpop.xlane.xlu1 %273  ;;  %2496 = vperm.xlu0 %4373, %v5512_v60  }
  0xbe   :  { %7597 = vst [vmem:[#allocation41_spill] sm:$0xff] %v5696_v22  ;;  %7598 = vst [vmem:[#allocation42_spill] sm:$0xff] %v5699_v30  ;;  %v501_v41 = vmul.f32 1.442695, %v5696_v22  ;;  %v499_v42 = vmul.f32 1.442695, %v5699_v30  ;;  %v4406_v4 = vpop.eup %4405  ;;  %v271_v46 = vpop.xlane.xlu0 %270  ;;  %v3662_v37 = vadd.f32 %v3661_v47, %v3660_v40  ;;  %v5728_v7 = vsub.f32 %v4631_v56, %v274_v33 }
  0xbf   :  { %v753_v0 = vpack.c.bf16 %v695_v25, %v694_v14  ;;  %vm2043_vm14 = vcmp.ne.s32.totalorder %v5716_v5, 4294967295  ;;  %v3974_v55 = vsel %vm7467_vm12, 1.0, %v7569_v1  ;;  %v5723_v34 = vpack.c.bf16 %v4404_v6, %v4406_v4  ;;  %v4686_v5 = vld [vmem:[%s7419_s1 + $0x128] sm:$0xff] }
  0xc0   :  { %4415 = vpow2.f32 %v501_v41  ;;  %7600 = vst [vmem:[#allocation43_spill] sm:$0xff] %v5728_v7  ;;  %v5733_v10 = vsub.f32 %v4632_v28, %v271_v46  ;;  %v696_v14 = vsub.f32 %v4402_v38, %v632_v51  ;;  %v697_v47 = vsub.f32 %v4400_v48, %v633_v31  ;;  %2481 = vperm.xlu1 %4374, %v5531_v11   ;;  %v4633_v11 = vld [vmem:[%s7418_s0 + $0xc8] sm:$0xff]  ;;  %v4634_v28 = vld [vmem:[%s7418_s0 + $0xc0] sm:$0xff] }
  0xc1   :  { %4417 = vpow2.f32 %v499_v42  ;;  %v3663_v40 = vsel %vm3591_vm2, %v3974_v55, 0.0  ;;  %v4408_v25 = vpop.eup %4407  ;;  %v505_v41 = vmul.f32 1.442695, %v5728_v7  ;;  %v634_v33 = vunpack.c.l.bf16 %v5723_v34  ;;  %v280_v60 = vpop.xlane.xlu1 %279  ;;  %2182 = vperm.xlu0 %4373, %v5206_v63  }
  0xc2   :  { %7601 = vst [vmem:[#allocation44_spill] sm:$0xff] %v5733_v10  ;;  %v503_v22 = vmul.f32 1.442695, %v5733_v10  ;;  %4112 = vmatmul.mubr.msk.bf16.gmra.mrb[8].mxu0 %vm7599_vm7, %v753_v0  ;;  %v635_v56 = vunpack.c.h.bf16 %v5723_v34  ;;  %v4410_v46 = vpop.eup %4409  ;;  %v754_v42 = vpack.c.bf16 %v697_v47, %v696_v14  ;;  %v277_v38 = vpop.xlane.xlu0 %276  ;;  %vm7602_vm12 = vcmp.ne.s32.totalorder %v5322_v24, 4294967295 }
  0xc3   :  { %v5746_v48 = vsel %vm7602_vm12, 1, %v7561_v57  ;;  %v3975_v51 = vsel %vm2043_vm14, 1.0, %v7569_v1  ;;  %v3664_v31 = vadd.f32 %v3663_v40, %v3662_v37  ;;  %v5751_v0 = vpack.c.bf16 %v4408_v25, %v4410_v46  ;;  %v5767_v37 = vld [vmem:[%s7419_s1 + $0x130] sm:$0xff]  ;;  %vm7605_vm12 = vmmov %vm7599_vm7 }
  0xc4   :  { %4419 = vpow2.f32 %v505_v41  ;;  %v5756_v55 = vsub.f32 %v4633_v11, %v280_v60  ;;  %v5761_v14 = vsub.f32 %v4634_v28, %v277_v38  ;;  %4115 = vmatprep.mubr.msk.bf16.mxu0 %vm7605_vm12, %v754_v42  ;;  %v698_v47 = vsub.f32 %v4406_v4, %v634_v33  ;;  %2167 = vperm.xlu1 %4374, %v5134_v58   ;;  %v4635_v58 = vld [vmem:[%s7418_s0 + $0xd8] sm:$0xff] }
  0xc5   :  { %4421 = vpow2.f32 %v503_v22  ;;  %v699_v40 = vsub.f32 %v4404_v6, %v635_v56  ;;  %vm7472_vm7 = vcmp.ne.s32.totalorder %v5767_v37, 4294967295  ;;  %v4412_v41 = vpop.eup %4411  ;;  %v636_v11 = vunpack.c.l.bf16 %v5751_v0  ;;  %v286_v7 = vpop.xlane.xlu1 %285  ;;  %2502 = vperm.xlu0 %4373, %v5536_v13  }
  0xc6   :  { %7603 = vst [vmem:[#allocation45_spill] sm:$0xff] %v5756_v55  ;;  %7604 = vst [vmem:[#allocation46_spill] sm:$0xff] %v5761_v14  ;;  %v509_v60 = vmul.f32 1.442695, %v5756_v55  ;;  %v507_v38 = vmul.f32 1.442695, %v5761_v14  ;;  %v637_v63 = vunpack.c.h.bf16 %v5751_v0  ;;  %v4414_v28 = vpop.eup %4413  ;;  %v283_v22 = vpop.xlane.xlu0 %282  ;;  %v5790_v42 = vsub.f32 %v4635_v58, %v286_v7 }
  0xc7   :  { %v755_v30 = vpack.c.bf16 %v699_v40, %v698_v47  ;;  %vm7606_vm12 = vcmp.ne.s32.totalorder %v5251_v53, 4294967295  ;;  %v3665_v4 = vsel %vm3591_vm2, %v3975_v51, 0.0  ;;  %v3976_v33 = vsel %vm7472_vm7, 1.0, %v7569_v1  ;;  %v4636_v47 = vld [vmem:[%s7418_s0 + $0xd0] sm:$0xff]  ;;  %v5801_v51 = vld [vmem:[%s7419_s1 + $0x138] sm:$0xff] }
  0xc8   :  { %v5779_v6 = vsel %vm7606_vm12, 1, %v7561_v57  ;;  %v5785_v56 = vpack.c.bf16 %v4412_v41, %v4414_v28  ;;  %4423 = vpow2.f32 %v509_v60  ;;  %7607 = vst [vmem:[#allocation47_spill] sm:$0xff] %v5790_v42  ;;  %v5795_v40 = vsub.f32 %v4636_v47, %v283_v22  ;;  %2487 = vperm.xlu1 %4374, %v5596_v54   ;;  %v4638_v54 = vld [vmem:[%s7418_s0 + $0xe0] sm:$0xff] }
  0xc9   :  { %4425 = vpow2.f32 %v507_v38  ;;  %v700_v60 = vsub.f32 %v4410_v46, %v636_v11  ;;  %v701_v55 = vsub.f32 %v4408_v25, %v637_v63  ;;  %vm2045_vm12 = vcmp.ne.s32.totalorder %v5801_v51, 4294967295  ;;  %v292_v10 = vpop.xlane.xlu1 %291  ;;  %2188 = vperm.xlu0 %4373, %v5242_v49   ;;  %v6556_v51 = vld [vmem:[%s7419_s1 + $0x1f0] sm:$0xff] }
  0xca   :  { %7608 = vst [vmem:[#allocation48_spill] sm:$0xff] %v5795_v40  ;;  %v4416_v7 = vpop.eup %4415  ;;  %v513_v58 = vmul.f32 1.442695, %v5790_v42  ;;  %v511_v14 = vmul.f32 1.442695, %v5795_v40  ;;  %vm7609_vm7 = vcmask 64512   ;;  %v638_v22 = vunpack.c.l.bf16 %v5785_v56  ;;  %v289_v46 = vpop.xlane.xlu0 %288 }
  0xcb   :  { %4116 = vmatmul.mubr.msk.bf16.gmra.mrb[12].mxu0 %vm7609_vm7, %v755_v30  ;;  %v639_v13 = vunpack.c.h.bf16 %v5785_v56  ;;  %v4418_v47 = vpop.eup %4417  ;;  %v756_v38 = vpack.c.bf16 %v701_v55, %v700_v60  ;;  %v3977_v25 = vsel %vm2045_vm12, 1.0, %v7569_v1  ;;  %v3666_v11 = vadd.f32 %v3665_v4, %v3664_v31  ;;  %v4637_v30 = vld [vmem:[%s7418_s0 + $0xe8] sm:$0xff] }
  0xcc   :  { %v3667_v63 = vsel %vm3591_vm2, %v3976_v33, 0.0  ;;  %v5814_v42 = vpack.c.bf16 %v4416_v7, %v4418_v47  ;;  %4427 = vpow2.f32 %v513_v58  ;;  %v5819_v40 = vsub.f32 %v4637_v30, %v292_v10  ;;  %2173 = vperm.xlu1 %4374, %v5179_v39   ;;  %v4639_v39 = vld [vmem:[%s7418_s0 + $0xf8] sm:$0xff] }
  0xcd   :  { %v5824_v55 = vsub.f32 %v4638_v54, %v289_v46  ;;  %4429 = vpow2.f32 %v511_v14  ;;  %4119 = vmatprep.mubr.msk.bf16.mxu0 %vm7609_vm7, %v756_v38  ;;  %v702_v31 = vsub.f32 %v4414_v28, %v638_v22  ;;  %v703_v4 = vsub.f32 %v4412_v41, %v639_v13  ;;  %v298_v46 = vpop.xlane.xlu1 %297  ;;  %2508 = vperm.xlu0 %4373, %v5612_v18  }
  0xce   :  { %7610 = vst [vmem:[#allocation49_spill] sm:$0xff] %v5819_v40  ;;  %v3668_v33 = vadd.f32 %v3667_v63, %v3666_v11  ;;  %v4420_v60 = vpop.eup %4419  ;;  %v517_v58 = vmul.f32 1.442695, %v5819_v40  ;;  %v640_v30 = vunpack.c.l.bf16 %v5814_v42  ;;  %v641_v59 = vunpack.c.h.bf16 %v5814_v42  ;;  %v295_v49 = vpop.xlane.xlu0 %294  ;;  %v4640_v11 = vld [vmem:[%s7418_s0 + $0xf0] sm:$0xff] }
  0xcf   :  { %7611 = vst [vmem:[#allocation50_spill] sm:$0xff] %v5824_v55  ;;  %v515_v10 = vmul.f32 1.442695, %v5824_v55  ;;  %v4422_v15 = vpop.eup %4421  ;;  %v757_v14 = vpack.c.bf16 %v703_v4, %v702_v31  ;;  %v5836_v41 = vsel %vm2029_vm1, 1, %v7561_v57  ;;  %vm7612_vm7 = vcmp.ne.s32.totalorder %v5287_v43, 4294967295  ;;  %v5860_v43 = vld [vmem:[%s7419_s1 + $0x140] sm:$0xff] }
  0xd0   :  { %v5841_v28 = vsel %vm7612_vm7, 1, %v7561_v57  ;;  %v3669_v22 = vsel %vm3591_vm2, %v3977_v25, 0.0  ;;  %v5844_v13 = vpack.c.bf16 %v4420_v60, %v4422_v15  ;;  %4431 = vpow2.f32 %v517_v58  ;;  %2493 = vperm.xlu1 %4374, %v5633_v61   ;;  %v4642_v61 = vld [vmem:[%s7418_s0 + $0x100] sm:$0xff] }
  0xd1   :  { %v5849_v38 = vsub.f32 %v4639_v39, %v298_v46  ;;  %v5854_v63 = vsub.f32 %v4640_v11, %v295_v49  ;;  %4433 = vpow2.f32 %v515_v10  ;;  %v704_v25 = vsub.f32 %v4418_v47, %v640_v30  ;;  %v5871_v49 = vld [vmem:[%s7419_s1 + $0x148] sm:$0xff]  ;;  %2194 = vperm.xlu0 %4373, %v5278_v27  }
  0xd2   :  { %v705_v54 = vsub.f32 %v4416_v7, %v641_v59  ;;  %vm7482_vm1 = vcmp.ne.s32.totalorder %v5860_v43, 4294967295  ;;  %v4424_v31 = vpop.eup %4423  ;;  %vm7615_vm7 = vcmask 64512   ;;  %v642_v46 = vunpack.c.l.bf16 %v5844_v13  ;;  %v304_v59 = vpop.xlane.xlu1 %303  ;;  %v4641_v11 = vld [vmem:[%s7418_s0 + $0x108] sm:$0xff] }
  0xd3   :  { %7613 = vst [vmem:[#allocation51_spill] sm:$0xff] %v5849_v38  ;;  %7614 = vst [vmem:[#allocation52_spill] sm:$0xff] %v5854_v63  ;;  %v521_v4 = vmul.f32 1.442695, %v5849_v38  ;;  %v519_v58 = vmul.f32 1.442695, %v5854_v63  ;;  %4120 = vmatmul.mubr.msk.bf16.gmra.mrb[16].mxu0 %vm7615_vm7, %v757_v14  ;;  %v643_v18 = vunpack.c.h.bf16 %v5844_v13  ;;  %v4426_v47 = vpop.eup %4425  ;;  %v301_v10 = vpop.xlane.xlu0 %300  ;;  %v3670_v14 = vadd.f32 %v3669_v22, %v3668_v33 }
  0xd4   :  { %v758_v7 = vpack.c.bf16 %v705_v54, %v704_v25  ;;  %vm2047_vm15 = vcmp.ne.s32.totalorder %v5871_v49, 4294967295  ;;  %v3978_v30 = vsel %vm7482_vm1, 1.0, %v7569_v1  ;;  %v5878_v39 = vpack.c.bf16 %v4424_v31, %v4426_v47  ;;  %2179 = vperm.xlu1 %4374, %v5215_v12   ;;  %v4643_v12 = vld [vmem:[%s7418_s0 + $0x118] sm:$0xff] }
  0xd5   :  { %4435 = vpow2.f32 %v521_v4  ;;  %v5883_v40 = vsub.f32 %v4641_v11, %v304_v59  ;;  %v5888_v25 = vsub.f32 %v4642_v61, %v301_v10  ;;  %v706_v33 = vsub.f32 %v4422_v15, %v642_v46  ;;  %2514 = vperm.xlu0 %4373, %v5663_v2  }
  0xd6   :  { %4437 = vpow2.f32 %v519_v58  ;;  %4123 = vmatprep.mubr.msk.bf16.mxu0 %vm7615_vm7, %v758_v7  ;;  %v707_v22 = vsub.f32 %v4420_v60, %v643_v18  ;;  %v3671_v54 = vsel %vm3591_vm2, %v3978_v30, 0.0  ;;  %v4428_v4 = vpop.eup %4427  ;;  %v644_v11 = vunpack.c.l.bf16 %v5878_v39  ;;  %v310_v27 = vpop.xlane.xlu1 %309 }
  0xd7   :  { %7616 = vst [vmem:[#allocation53_spill] sm:$0xff] %v5883_v40  ;;  %7617 = vst [vmem:[#allocation54_spill] sm:$0xff] %v5888_v25  ;;  %v525_v38 = vmul.f32 1.442695, %v5883_v40  ;;  %v523_v59 = vmul.f32 1.442695, %v5888_v25  ;;  %v645_v55 = vunpack.c.h.bf16 %v5878_v39  ;;  %v4430_v10 = vpop.eup %4429  ;;  %v307_v58 = vpop.xlane.xlu0 %306  ;;  %v3672_v46 = vadd.f32 %v3671_v54, %v3670_v14 }
  0xd8   :  { %v759_v61 = vpack.c.bf16 %v707_v22, %v706_v33  ;;  %v5901_v15 = vsel %vm2031_vm13, 1, %v7561_v57  ;;  %v3979_v60 = vsel %vm2047_vm15, 1.0, %v7569_v1  ;;  %v5906_v18 = vpack.c.bf16 %v4428_v4, %v4430_v10  ;;  %v5922_v14 = vld [vmem:[%s7419_s1 + $0x150] sm:$0xff]  ;;  %2499 = vperm.xlu1 %4374, %v5690_v45   ;;  %v4645_v45 = vld [vmem:[%s7418_s0 + $0x128] sm:$0xff] }
  0xd9   :  { %4439 = vpow2.f32 %v525_v38  ;;  %v5911_v7 = vsub.f32 %v4643_v12, %v310_v27  ;;  %v5916_v30 = vsub.f32 %v4644_v23, %v307_v58  ;;  %v708_v38 = vsub.f32 %v4426_v47, %v644_v11  ;;  %2200 = vperm.xlu0 %4373, %v5322_v24  }
  0xda   :  { %4441 = vpow2.f32 %v523_v59  ;;  %v709_v33 = vsub.f32 %v4424_v31, %v645_v55  ;;  %vm7490_vm13 = vcmp.ne.s32.totalorder %v5922_v14, 4294967295  ;;  %v4432_v22 = vpop.eup %4431  ;;  %v646_v58 = vunpack.c.l.bf16 %v5906_v18  ;;  %v316_v23 = vpop.xlane.xlu1 %315 }
  0xdb   :  { %7618 = vst [vmem:[#allocation55_spill] sm:$0xff] %v5911_v7  ;;  %7619 = vst [vmem:[#allocation56_spill] sm:$0xff] %v5916_v30  ;;  %v529_v54 = vmul.f32 1.442695, %v5911_v7  ;;  %v527_v27 = vmul.f32 1.442695, %v5916_v30  ;;  %4124 = vmatmul.mubr.msk.bf16.gmra.mrb[20].mxu0 %vm7615_vm7, %v759_v61  ;;  %v647_v2 = vunpack.c.h.bf16 %v5906_v18  ;;  %v4434_v12 = vpop.eup %4433  ;;  %v313_v47 = vpop.xlane.xlu0 %312 }
  0xdc   :  { %v760_v59 = vpack.c.bf16 %v709_v33, %v708_v38  ;;  %vm7620_vm1 = vcmp.ne.s32.totalorder %v5314_v16, 4294967295  ;;  %v3673_v31 = vsel %vm3591_vm2, %v3979_v60, 0.0  ;;  %v3980_v11 = vsel %vm7490_vm13, 1.0, %v7569_v1  ;;  %v4646_v16 = vld [vmem:[%s7418_s0 + $0x120] sm:$0xff]  ;;  %v5956_v60 = vld [vmem:[%s7419_s1 + $0x158] sm:$0xff]  ;;  %2185 = vperm.xlu1 %4374, %v5251_v53   ;;  %v4648_v53 = vld [vmem:[%s7418_s0 + $0x130] sm:$0xff] }
  0xdd   :  { %v5934_v55 = vsel %vm7620_vm1, 1, %v7561_v57  ;;  %v5940_v61 = vpack.c.bf16 %v4432_v22, %v4434_v12  ;;  %4443 = vpow2.f32 %v529_v54  ;;  %v5945_v38 = vsub.f32 %v4645_v45, %v316_v23  ;;  %vm7623_vm1 = vmmov %vm7615_vm7  ;;  %2520 = vperm.xlu0 %4373, %v5746_v48  }
  0xde   :  { %v5950_v33 = vsub.f32 %v4646_v16, %v313_v47  ;;  %4445 = vpow2.f32 %v527_v27  ;;  %4127 = vmatprep.mubr.msk.bf16.mxu0 %vm7623_vm1, %v760_v59  ;;  %v710_v54 = vsub.f32 %v4430_v10, %v646_v58  ;;  %v711_v40 = vsub.f32 %v4428_v4, %v647_v2  ;;  %v322_v25 = vpop.xlane.xlu1 %321  ;;  %v4647_v59 = vld [vmem:[%s7418_s0 + $0x138] sm:$0xff] }
  0xdf   :  { %7621 = vst [vmem:[#allocation57_spill] sm:$0xff] %v5945_v38  ;;  %vm2049_vm7 = vcmp.ne.s32.totalorder %v5956_v60, 4294967295  ;;  %v4436_v23 = vpop.eup %4435  ;;  %v533_v45 = vmul.f32 1.442695, %v5945_v38  ;;  %v648_v16 = vunpack.c.l.bf16 %v5940_v61  ;;  %v649_v24 = vunpack.c.h.bf16 %v5940_v61  ;;  %v319_v27 = vpop.xlane.xlu0 %318 }
  0xe0   :  { %7622 = vst [vmem:[#allocation58_spill] sm:$0xff] %v5950_v33  ;;  %v531_v47 = vmul.f32 1.442695, %v5950_v33  ;;  %v4438_v7 = vpop.eup %4437  ;;  %v761_v30 = vpack.c.bf16 %v711_v40, %v710_v54  ;;  %v3981_v4 = vsel %vm2049_vm7, 1.0, %v7569_v1  ;;  %v3674_v10 = vadd.f32 %v3673_v31, %v3672_v46  ;;  %2505 = vperm.xlu1 %4374, %v5779_v6   ;;  %v4649_v6 = vld [vmem:[%s7418_s0 + $0x148] sm:$0xff] }
  0xe1   :  { %v3675_v58 = vsel %vm3591_vm2, %v3980_v11, 0.0  ;;  %v5969_v2 = vpack.c.bf16 %v4436_v23, %v4438_v7  ;;  %4447 = vpow2.f32 %v533_v45  ;;  %v5974_v38 = vsub.f32 %v4647_v59, %v322_v25  ;;  %2206 = vperm.xlu0 %4373, %v5342_v52  }
  0xe2   :  { %v5979_v40 = vsub.f32 %v4648_v53, %v319_v27  ;;  %4449 = vpow2.f32 %v531_v47  ;;  %v712_v46 = vsub.f32 %v4434_v12, %v648_v16  ;;  %v713_v31 = vsub.f32 %v4432_v22, %v649_v24  ;;  %v328_v27 = vpop.xlane.xlu1 %327  ;;  %v7627_v16 = vld [vmem:[#allocation10_spill] sm:$0xff] }
  0xe3   :  { %7624 = vst [vmem:[#allocation59_spill] sm:$0xff] %v5974_v38  ;;  %v3676_v11 = vadd.f32 %v3675_v58, %v3674_v10  ;;  %v4440_v54 = vpop.eup %4439  ;;  %v537_v45 = vmul.f32 1.442695, %v5974_v38  ;;  %4128 = vmatmul.mubr.msk.bf16.gmra.mrb[24].mxu0 %vm7623_vm1, %v761_v30  ;;  %v650_v25 = vunpack.c.l.bf16 %v5969_v2  ;;  %v651_v59 = vunpack.c.h.bf16 %v5969_v2  ;;  %v325_v47 = vpop.xlane.xlu0 %324  ;;  %v4650_v58 = vld [vmem:[%s7418_s0 + $0x140] sm:$0xff] }
  0xe4   :  { %7625 = vst [vmem:[#allocation60_spill] sm:$0xff] %v5979_v40  ;;  %v535_v33 = vmul.f32 1.442695, %v5979_v40  ;;  %v4442_v63 = vpop.eup %4441  ;;  %v762_v48 = vpack.c.bf16 %v713_v31, %v712_v46  ;;  %v5991_v12 = vsel %vm2033_vm0, 1, %v7561_v57  ;;  %vm7628_vm13 = vcmp.ne.s32.totalorder %v7627_v16, 4294967295  ;;  %vm7631_vm0 = vmmov %vm7623_vm1 }
  0xe5   :  { %v5996_v24 = vsel %vm7628_vm13, 1, %v7561_v57  ;;  %v3677_v30 = vsel %vm3591_vm2, %v3981_v4, 0.0  ;;  %4451 = vpow2.f32 %v537_v45  ;;  %v6002_v10 = vsub.f32 %v4649_v6, %v328_v27  ;;  %v6013_v4 = vld [vmem:[%s7419_s1 + $0x160] sm:$0xff]  ;;  %v6021_v27 = vld [vmem:[%s7419_s1 + $0x168] sm:$0xff]  ;;  %2526 = vperm.xlu0 %4373, %v5836_v41  }
  0xe6   :  { %v6007_v53 = vsub.f32 %v4650_v58, %v325_v47  ;;  %v714_v46 = vsub.f32 %v4438_v7, %v650_v25  ;;  %4453 = vpow2.f32 %v535_v33  ;;  %4131 = vmatprep.mubr.msk.bf16.mxu0 %vm7631_vm0, %v762_v48  ;;  %v715_v31 = vsub.f32 %v4436_v23, %v651_v59  ;;  %v4651_v59 = vld [vmem:[%s7419_s1 + $0x90] sm:$0xff]  ;;  %v334_v48 = vpop.xlane.xlu1 %333 }
  0xe7   :  { %7629 = vst [vmem:[#allocation17_spill] sm:$0xff] %v6002_v10  ;;  %v6016_v45 = vpack.c.bf16 %v4440_v54, %v4442_v63  ;;  %vm7496_vm13 = vcmp.ne.s32.totalorder %v6013_v4, 4294967295  ;;  %v4444_v52 = vpop.eup %4443  ;;  %v541_v7 = vmul.f32 1.442695, %v6002_v10  ;;  %vm2051_vm1 = vcmp.ne.s32.totalorder %v6021_v27, 4294967295  ;;  %2191 = vperm.xlu1 %4374, %v4651_v59   ;;  %v331_v47 = vpop.xlane.xlu0 %330  ;;  %v4653_v59 = vld [vmem:[%s7418_s0 + $0x150] sm:$0xff] }
  0xe8   :  { %7630 = vst [vmem:[#allocation10_spill] sm:$0xff] %v6007_v53  ;;  %v539_v25 = vmul.f32 1.442695, %v6007_v53  ;;  %v3982_v33 = vsel %vm7496_vm13, 1.0, %v7569_v1  ;;  %v4446_v23 = vpop.eup %4445  ;;  %v763_v22 = vpack.c.bf16 %v715_v31, %v714_v46  ;;  %v3678_v58 = vadd.f32 %v3677_v30, %v3676_v11  ;;  %v4652_v53 = vld [vmem:[%s7418_s0 + $0x158] sm:$0xff]  ;;  %vm7634_vm13 = vmmov %vm7631_vm0 }
  0xe9   :  { %v652_v16 = vunpack.c.l.bf16 %v6016_v45  ;;  %v653_v6 = vunpack.c.h.bf16 %v6016_v45  ;;  %v6035_v10 = vpack.c.bf16 %v4444_v52, %v4446_v23  ;;  %4455 = vpow2.f32 %v541_v7 }
  0xea   :  { %v6040_v38 = vsub.f32 %v4652_v53, %v334_v48  ;;  %v6045_v40 = vsub.f32 %v4653_v59, %v331_v47  ;;  %4457 = vpow2.f32 %v539_v25  ;;  %v3679_v30 = vsel %vm3591_vm2, %v3982_v33, 0.0  ;;  %v340_v41 = vpop.xlane.xlu1 %339  ;;  %v4655_v59 = vld [vmem:[%s7418_s0 + $0x160] sm:$0xff] }
  0xeb   :  { %v716_v46 = vsub.f32 %v4442_v63, %v652_v16  ;;  %v717_v11 = vsub.f32 %v4440_v54, %v653_v6  ;;  %v4448_v31 = vpop.eup %4447  ;;  %4132 = vmatmul.mubr.msk.bf16.gmra.mrb[28].mxu0 %vm7631_vm0, %v763_v22  ;;  %v654_v53 = vunpack.c.l.bf16 %v6035_v10  ;;  %v655_v48 = vunpack.c.h.bf16 %v6035_v10  ;;  %2511 = vperm.xlu1 %4374, %v5841_v28   ;;  %v337_v54 = vpop.xlane.xlu0 %336 }
  0xec   :  { %7632 = vst [vmem:[#allocation61_spill] sm:$0xff] %v6040_v38  ;;  %7633 = vst [vmem:[#allocation62_spill] sm:$0xff] %v6045_v40  ;;  %v545_v7 = vmul.f32 1.442695, %v6040_v38  ;;  %v543_v50 = vmul.f32 1.442695, %v6045_v40  ;;  %v4450_v47 = vpop.eup %4449  ;;  %4169 = vmatprep.mubr.msk.bf16.mxu0 %vm7634_vm13, %v5566_v32  ;;  %v3680_v16 = vadd.f32 %v3679_v30, %v3678_v58 }
  0xed   :  { %v764_v63 = vpack.c.bf16 %v717_v11, %v716_v46  ;;  %v6060_v33 = vsel %vm2035_vm3, 1, %v7561_v57  ;;  %v3983_v22 = vsel %vm2051_vm1, 1.0, %v7569_v1  ;;  %v6065_v6 = vpack.c.bf16 %v4448_v31, %v4450_v47  ;;  %v4654_v32 = vld [vmem:[%s7418_s0 + $0x168] sm:$0xff]  ;;  %v6083_v58 = vld [vmem:[%s7419_s1 + $0x170] sm:$0xff]  ;;  %vm7638_vm3 = vmmov %vm7631_vm0 }
  0xee   :  { %4459 = vpow2.f32 %v545_v7  ;;  %v6070_v28 = vsub.f32 %v4654_v32, %v340_v41  ;;  %v6075_v46 = vsub.f32 %v4655_v59, %v337_v54  ;;  %v4656_v11 = vld [vmem:[%s7419_s1 + $0xc8] sm:$0xff]  ;;  %v718_v30 = vsub.f32 %v4446_v23, %v654_v53  ;;  %v4658_v38 = vld [vmem:[%s7418_s0 + $0x178] sm:$0xff] }
  0xef   :  { %2212 = vperm.xlu0 %4373, %v4656_v11   ;;  %4461 = vpow2.f32 %v543_v50  ;;  %4135 = vmatprep.mubr.msk.bf16.mxu1 %vm7638_vm3, %v764_v63  ;;  %v719_v7 = vsub.f32 %v4444_v52, %v655_v48  ;;  %vm7500_vm13 = vcmp.ne.s32.totalorder %v6083_v58, 4294967295  ;;  %v4452_v41 = vpop.eup %4451  ;;  %v656_v32 = vunpack.c.l.bf16 %v6065_v6  ;;  %v4657_v50 = vld [vmem:[%s7419_s1 + $0xa0] sm:$0xff]  ;;  %v346_v63 = vpop.xlane.xlu1 %345 }
  0xf0   :  { %7636 = vst [vmem:[#allocation20_spill] sm:$0xff] %v6070_v28  ;;  %7637 = vst [vmem:[#allocation63_spill] sm:$0xff] %v6075_v46  ;;  %v549_v54 = vmul.f32 1.442695, %v6070_v28  ;;  %v547_v25 = vmul.f32 1.442695, %v6075_v46  ;;  %v657_v59 = vunpack.c.h.bf16 %v6065_v6  ;;  %v4454_v11 = vpop.eup %4453  ;;  %2197 = vperm.xlu1 %4374, %v4657_v50   ;;  %v343_v52 = vpop.xlane.xlu0 %342  ;;  %v6105_v50 = vsub.f32 %v4658_v38, %v346_v63 }
  0xf1   :  { %v765_v23 = vpack.c.bf16 %v719_v7, %v718_v30  ;;  %vm7639_vm0 = vcmask 1043456   ;;  %v3681_v48 = vsel %vm3591_vm2, %v3983_v22, 0.0  ;;  %v3984_v28 = vsel %vm7500_vm13, 1.0, %v7569_v1  ;;  %v4659_v30 = vld [vmem:[%s7418_s0 + $0x170] sm:$0xff]  ;;  %v6116_v22 = vld [vmem:[%s7419_s1 + $0x178] sm:$0xff]  ;;  %vm7643_vm13 = vmmov %vm7638_vm3 }
  0xf2   :  { %v3034_v53 = vsel %vm7639_vm0, %v5627_v62, 0  ;;  %v6100_v46 = vpack.c.bf16 %v4452_v41, %v4454_v11  ;;  %4463 = vpow2.f32 %v549_v54  ;;  %7640 = vst [vmem:[#allocation64_spill] sm:$0xff] %v6105_v50  ;;  %v6110_v62 = vsub.f32 %v4659_v30, %v343_v52  ;;  %v7642_v30 = vld [vmem:[#allocation30_spill] sm:$0xff] }
  0xf3   :  { %2532 = vperm.xlu0 %4373, %v5901_v15   ;;  %4465 = vpow2.f32 %v547_v25  ;;  %4136 = vmatmul.mubr.msk.bf16.vlgmr.msra.gmra.mrb[0].mxu1 %vm7638_vm3, %v765_v23  ;;  %v720_v7 = vsub.f32 %v4450_v47, %v656_v32  ;;  %v721_v54 = vsub.f32 %v4448_v31, %v657_v59  ;;  %vm2053_vm0 = vcmp.ne.s32.totalorder %v6116_v22, 4294967295  ;;  %v4456_v38 = vpop.eup %4455  ;;  %v352_v31 = vpop.xlane.xlu1 %351 }
  0xf4   :  { %7641 = vst [vmem:[#allocation65_spill] sm:$0xff] %v6110_v62  ;;  %v553_v63 = vmul.f32 1.442695, %v6105_v50  ;;  %v551_v52 = vmul.f32 1.442695, %v6110_v62  ;;  %4170 = vmatmul.mubr.msk.bf16.vlgmr.msra.gmra.mrb[0].mxu0 %vm7643_vm13, %v7642_v30  ;;  %v658_v15 = vunpack.c.l.bf16 %v6100_v46  ;;  %v659_v40 = vunpack.c.h.bf16 %v6100_v46  ;;  %4234 = vmatpush3.bf16.msra.mxu1 %v3034_v53  ;;  %v4458_v25 = vpop.eup %4457  ;;  %v349_v32 = vpop.xlane.xlu0 %348  ;;  %v4660_v53 = vld [vmem:[%s7418_s0 + $0x188] sm:$0xff]  ;;  %vm7646_vm13 = vmmov %vm7638_vm3 }
  0xf5   :  { %4173 = vmatprep.mubr.msk.bf16.mxu0 %vm7638_vm3, %v5579_v35  ;;  %2517 = vperm.xlu1 %4374, %v5934_v55   ;;  %v766_v47 = vpack.c.bf16 %v721_v54, %v720_v7  ;;  %v3985_v59 = vsel %vm2053_vm0, 1.0, %v7569_v1  ;;  %v3682_v23 = vadd.f32 %v3681_v48, %v3680_v16  ;;  %v3683_v30 = vsel %vm3591_vm2, %v3984_v28, 0.0  ;;  %v4661_v55 = vld [vmem:[%s7418_s0 + $0x180] sm:$0xff]  ;;  %v4662_v16 = vld [vmem:[%s7419_s1 + $0xd8] sm:$0xff] }
  0xf6   :  { %v6133_v50 = vpack.c.bf16 %v4456_v38, %v4458_v25  ;;  %4467 = vpow2.f32 %v553_v63  ;;  %v6138_v35 = vsub.f32 %v4660_v53, %v352_v31  ;;  %v6143_v7 = vsub.f32 %v4661_v55, %v349_v32 }
  0xf7   :  { %2218 = vperm.xlu0 %4373, %v4662_v16   ;;  %4469 = vpow2.f32 %v551_v52  ;;  %4139 = vmatprep.mubr.msk.bf16.mxu1 %vm7646_vm13, %v766_v47  ;;  %v722_v28 = vsub.f32 %v4454_v11, %v658_v15  ;;  %v723_v48 = vsub.f32 %v4452_v41, %v659_v40  ;;  %v3684_v54 = vadd.f32 %v3683_v30, %v3682_v23  ;;  %v4663_v16 = vld [vmem:[%s7419_s1 + $0xb0] sm:$0xff]  ;;  %v358_v52 = vpop.xlane.xlu1 %357 }
  0xf8   :  { %7644 = vst [vmem:[#allocation30_spill] sm:$0xff] %v6138_v35  ;;  %7645 = vst [vmem:[#allocation66_spill] sm:$0xff] %v6143_v7  ;;  %v4460_v63 = vpop.eup %4459  ;;  %v557_v31 = vmul.f32 1.442695, %v6138_v35  ;;  %v555_v53 = vmul.f32 1.442695, %v6143_v7  ;;  %v660_v62 = vunpack.c.l.bf16 %v6133_v50  ;;  %v661_v32 = vunpack.c.h.bf16 %v6133_v50  ;;  %v355_v11 = vpop.xlane.xlu0 %354 }
  0xf9   :  { %v4462_v55 = vpop.eup %4461  ;;  %2203 = vperm.xlu1 %4374, %v4663_v16   ;;  %v767_v47 = vpack.c.bf16 %v723_v48, %v722_v28  ;;  %v7647_v40 = vld [vmem:[#allocation11_spill] sm:$0xff]  ;;  %v6164_v23 = vsel %vm2037_vm4, 1, %v7561_v57  ;;  %v3685_v30 = vsel %vm3591_vm2, %v3985_v59, 0.0  ;;  %v4664_v28 = vld [vmem:[%s7418_s0 + $0x198] sm:$0xff]  ;;  %v6183_v59 = vld [vmem:[%s7419_s1 + $0x180] sm:$0xff] }
  0xfa   :  { %vm7648_vm3 = vcmp.ne.s32.totalorder %v7647_v40, 4294967295  ;;  %v6167_v35 = vpack.c.bf16 %v4460_v63, %v4462_v55  ;;  %4471 = vpow2.f32 %v557_v31  ;;  %v6172_v48 = vsub.f32 %v4664_v28, %v358_v52  ;;  %v4665_v16 = vld [vmem:[%s7418_s0 + $0x190] sm:$0xff]  ;;  %vm7652_vm4 = vmmov %vm7646_vm13  ;;  %v4666_v7 = vld [vmem:[%s7418_s0 + $0x1a8] sm:$0xff] }
  0xfb   :  { %v6159_v41 = vsel %vm7648_vm3, 1, %v7561_v57  ;;  %v6177_v40 = vsub.f32 %v4665_v16, %v355_v11  ;;  %2538 = vperm.xlu0 %4373, %v5991_v12   ;;  %4473 = vpow2.f32 %v555_v53  ;;  %4140 = vmatmul.mubr.msk.bf16.gmra.mrb[4].mxu1 %vm7652_vm4, %v767_v47  ;;  %v724_v31 = vsub.f32 %v4458_v25, %v660_v62  ;;  %vm7653_vm3 = vmmov %vm7652_vm4  ;;  %v6196_v53 = vld [vmem:[%s7419_s1 + $0x188] sm:$0xff] }
  0xfc   :  { %7650 = vst [vmem:[#allocation11_spill] sm:$0xff] %v6172_v48  ;;  %v725_v15 = vsub.f32 %v4456_v38, %v661_v32  ;;  %vm7511_vm13 = vcmp.ne.s32.totalorder %v6183_v59, 4294967295  ;;  %v4464_v52 = vpop.eup %4463  ;;  %v561_v28 = vmul.f32 1.442695, %v6172_v48  ;;  %4174 = vmatmul.mubr.msk.bf16.gmra.mrb[4].mxu0 %vm7653_vm3, %v5599_v8  ;;  %v662_v12 = vunpack.c.l.bf16 %v6167_v35  ;;  %vm7654_vm4 = vmmov %vm7653_vm3  ;;  %v364_v38 = vpop.xlane.xlu1 %363 }
  0xfd   :  { %7651 = vst [vmem:[#allocation21_spill] sm:$0xff] %v6177_v40  ;;  %v559_v11 = vmul.f32 1.442695, %v6177_v40  ;;  %v663_v16 = vunpack.c.h.bf16 %v6167_v35  ;;  %v4466_v62 = vpop.eup %4465  ;;  %4177 = vmatprep.mubr.msk.bf16.mxu0 %vm7654_vm4, %v5637_v44  ;;  %2523 = vperm.xlu1 %4374, %v5996_v24   ;;  %v361_v32 = vpop.xlane.xlu0 %360  ;;  %vm7512_vm3 = vcmp.ne.s32.totalorder %v6196_v53, 4294967295  ;;  %v3986_v8 = vsel %vm7511_vm13, 1.0, %v7569_v1  ;;  %v4667_v24 = vld [vmem:[%s7418_s0 + $0x1a0] sm:$0xff] }
  0xfe   :  { %v768_v25 = vpack.c.bf16 %v725_v15, %v724_v31  ;;  %v3686_v47 = vadd.f32 %v3685_v30, %v3684_v54  ;;  %v6205_v48 = vpack.c.bf16 %v4464_v52, %v4466_v62  ;;  %4475 = vpow2.f32 %v561_v28  ;;  %v4668_v15 = vld [vmem:[%s7419_s1 + $0xe8] sm:$0xff] }
  0xff   :  { %v6210_v44 = vsub.f32 %v4666_v7, %v364_v38  ;;  %v6215_v31 = vsub.f32 %v4667_v24, %v361_v32  ;;  %2224 = vperm.xlu0 %4373, %v4668_v15   ;;  %4477 = vpow2.f32 %v559_v11  ;;  %v726_v54 = vsub.f32 %v4462_v55, %v662_v12  ;;  %v4669_v11 = vld [vmem:[%s7419_s1 + $0xc0] sm:$0xff] }
 0x100   :  { %4143 = vmatprep.mubr.msk.bf16.mxu1 %vm7654_vm4, %v768_v25  ;;  %v727_v30 = vsub.f32 %v4460_v63, %v663_v16  ;;  %v3687_v28 = vsel %vm3591_vm2, %v3986_v8, 0.0  ;;  %v4468_v7 = vpop.eup %4467  ;;  %v664_v32 = vunpack.c.l.bf16 %v6205_v48  ;;  %v665_v24 = vunpack.c.h.bf16 %v6205_v48  ;;  %v370_v25 = vpop.xlane.xlu1 %369 }
 0x101   :  { %7655 = vst [vmem:[#allocation67_spill] sm:$0xff] %v6210_v44  ;;  %7656 = vst [vmem:[#allocation68_spill] sm:$0xff] %v6215_v31  ;;  %v565_v38 = vmul.f32 1.442695, %v6210_v44  ;;  %v563_v40 = vmul.f32 1.442695, %v6215_v31  ;;  %v4470_v19 = vpop.eup %4469  ;;  %2209 = vperm.xlu1 %4374, %v4669_v11   ;;  %v367_v63 = vpop.xlane.xlu0 %366  ;;  %v3688_v15 = vadd.f32 %v3687_v28, %v3686_v47 }
 0x102   :  { %v769_v55 = vpack.c.bf16 %v727_v30, %v726_v54  ;;  %v6232_v16 = vsel %vm2032_vm8, 1, %v7561_v57  ;;  %v3987_v8 = vsel %vm7512_vm3, 1.0, %v7569_v1  ;;  %v6237_v44 = vpack.c.bf16 %v4468_v7, %v4470_v19  ;;  %v4670_v11 = vld [vmem:[%s7418_s0 + $0x1b8] sm:$0xff]  ;;  %v4671_v54 = vld [vmem:[%s7418_s0 + $0x1b0] sm:$0xff]  ;;  %vm7661_vm8 = vmmov %vm7654_vm4 }
 0x103   :  { %4479 = vpow2.f32 %v565_v38  ;;  %v6242_v31 = vsub.f32 %v4670_v11, %v370_v25  ;;  %v6247_v30 = vsub.f32 %v4671_v54, %v367_v63  ;;  %2544 = vperm.xlu0 %4373, %v6060_v33   ;;  %v6253_v47 = vld [vmem:[%s7419_s1 + $0x190] sm:$0xff]  ;;  %v728_v28 = vsub.f32 %v4466_v62, %v664_v32  ;;  %vm7662_vm13 = vmmov %vm7661_vm8 }
 0x104   :  { %7660 = vst [vmem:[#allocation70_spill] sm:$0xff] %v6253_v47  ;;  %4481 = vpow2.f32 %v563_v40  ;;  %4144 = vmatmul.mubr.msk.bf16.gmra.mrb[8].mxu1 %vm7661_vm8, %v769_v55  ;;  %v729_v38 = vsub.f32 %v4464_v52, %v665_v24  ;;  %vm7551_vm4 = vcmp.ne.s32.totalorder %v6253_v47, 4294967295  ;;  %v4472_v25 = vpop.eup %4471  ;;  %4178 = vmatmul.mubr.msk.bf16.gmra.mrb[8].mxu0 %vm7662_vm13, %v5671_v17  ;;  %v666_v33 = vunpack.c.l.bf16 %v6237_v44  ;;  %vm7663_vm3 = vmmov %vm7661_vm8  ;;  %v376_v40 = vpop.xlane.xlu1 %375 }
 0x105   :  { %7658 = vst [vmem:[#allocation14_spill] sm:$0xff] %v6242_v31  ;;  %7659 = vst [vmem:[#allocation69_spill] sm:$0xff] %v6247_v30  ;;  %v569_v12 = vmul.f32 1.442695, %v6242_v31  ;;  %v567_v63 = vmul.f32 1.442695, %v6247_v30  ;;  %v667_v11 = vunpack.c.h.bf16 %v6237_v44  ;;  %v4474_v54 = vpop.eup %4473  ;;  %4181 = vmatprep.mubr.msk.bf16.mxu0 %vm7663_vm3, %v5693_v9  ;;  %2529 = vperm.xlu1 %4374, %v6159_v41   ;;  %v373_v62 = vpop.xlane.xlu0 %372 }
 0x106   :  { %v770_v52 = vpack.c.bf16 %v729_v38, %v728_v28  ;;  %v6269_v24 = vsel %vm2039_vm10, 1, %v7561_v57  ;;  %v3689_v17 = vsel %vm3591_vm2, %v3987_v8, 0.0  ;;  %v3988_v55 = vsel %vm7551_vm4, 1.0, %v7569_v1  ;;  %v4672_v9 = vld [vmem:[%s7418_s0 + $0x1c8] sm:$0xff]  ;;  %v4673_v28 = vld [vmem:[%s7418_s0 + $0x1c0] sm:$0xff]  ;;  %v4674_v8 = vld [vmem:[%s7419_s1 + $0xf8] sm:$0xff] }
 0x107   :  { %v6275_v31 = vpack.c.bf16 %v4472_v25, %v4474_v54  ;;  %4483 = vpow2.f32 %v569_v12  ;;  %v6280_v41 = vsub.f32 %v4672_v9, %v376_v40  ;;  %v6285_v38 = vsub.f32 %v4673_v28, %v373_v62  ;;  %2230 = vperm.xlu0 %4373, %v4674_v8   ;;  %v6293_v12 = vld [vmem:[%s7419_s1 + $0x198] sm:$0xff]  ;;  %vm7667_vm10 = vmmov %vm7663_vm3 }
 0x108   :  { %4485 = vpow2.f32 %v567_v63  ;;  %4147 = vmatprep.mubr.msk.bf16.mxu1 %vm7667_vm10, %v770_v52  ;;  %v730_v40 = vsub.f32 %v4470_v19, %v666_v33  ;;  %v731_v32 = vsub.f32 %v4468_v7, %v667_v11  ;;  %vm2057_vm13 = vcmp.ne.s32.totalorder %v6293_v12, 4294967295  ;;  %v4476_v9 = vpop.eup %4475  ;;  %v4675_v63 = vld [vmem:[%s7419_s1 + $0xd0] sm:$0xff]  ;;  %v382_v52 = vpop.xlane.xlu1 %381  ;;  %vm7670_vm8 = vmmov %vm7663_vm3 }
 0x109   :  { %7665 = vst [vmem:[#allocation28_spill] sm:$0xff] %v6280_v41  ;;  %7666 = vst [vmem:[#allocation71_spill] sm:$0xff] %v6285_v38  ;;  %v573_v62 = vmul.f32 1.442695, %v6280_v41  ;;  %v571_v28 = vmul.f32 1.442695, %v6285_v38  ;;  %v668_v30 = vunpack.c.l.bf16 %v6275_v31  ;;  %v669_v8 = vunpack.c.h.bf16 %v6275_v31  ;;  %v4478_v20 = vpop.eup %4477  ;;  %2215 = vperm.xlu1 %4374, %v4675_v63   ;;  %v379_v7 = vpop.xlane.xlu0 %378 }
 0x10a   :  { %v771_v19 = vpack.c.bf16 %v731_v32, %v730_v40  ;;  %v3989_v33 = vsel %vm2057_vm13, 1.0, %v7569_v1  ;;  %v3690_v11 = vadd.f32 %v3689_v17, %v3688_v15  ;;  %v3691_v41 = vsel %vm3591_vm2, %v3988_v55, 0.0  ;;  %v4677_v40 = vld [vmem:[%s7418_s0 + $0x1d0] sm:$0xff]  ;;  %vm7671_vm10 = vmmov %vm7663_vm3 }
 0x10b   :  { %v6308_v38 = vpack.c.bf16 %v4476_v9, %v4478_v20  ;;  %4487 = vpow2.f32 %v573_v62  ;;  %v6313_v21 = vsub.f32 %v4676_v3, %v382_v52  ;;  %v6318_v32 = vsub.f32 %v4677_v40, %v379_v7  ;;  %2550 = vperm.xlu0 %4373, %v6164_v23   ;;  %v6331_v23 = vld [vmem:[%s7419_s1 + $0x1a8] sm:$0xff] }
 0x10c   :  { %4489 = vpow2.f32 %v571_v28  ;;  %4148 = vmatmul.mubr.msk.bf16.gmra.mrb[12].mxu1 %vm7663_vm3, %v771_v19  ;;  %v732_v15 = vsub.f32 %v4474_v54, %v668_v30  ;;  %v733_v17 = vsub.f32 %v4472_v25, %v669_v8  ;;  %v3692_v55 = vadd.f32 %v3691_v41, %v3690_v11  ;;  %4182 = vmatmul.mubr.msk.bf16.gmra.mrb[12].mxu0 %vm7670_vm8, %v5723_v34  ;;  %v388_v25 = vpop.xlane.xlu1 %387 }
 0x10d   :  { %7668 = vst [vmem:[#allocation72_spill] sm:$0xff] %v6313_v21  ;;  %7669 = vst [vmem:[#allocation73_spill] sm:$0xff] %v6318_v32  ;;  %v4480_v62 = vpop.eup %4479  ;;  %v577_v63 = vmul.f32 1.442695, %v6313_v21  ;;  %v575_v3 = vmul.f32 1.442695, %v6318_v32  ;;  %v670_v52 = vunpack.c.l.bf16 %v6308_v38  ;;  %v671_v7 = vunpack.c.h.bf16 %v6308_v38  ;;  %4185 = vmatprep.mubr.msk.bf16.mxu0 %vm7671_vm10, %v5751_v0  ;;  %2535 = vperm.xlu1 %4374, %v6232_v16   ;;  %v385_v41 = vpop.xlane.xlu0 %384 }
 0x10e   :  { %v4482_v30 = vpop.eup %4481  ;;  %v772_v54 = vpack.c.bf16 %v733_v17, %v732_v15  ;;  %v2420_v28 = vsel %vm2034_vm5, 1, %v7561_v57  ;;  %v3693_v8 = vsel %vm3591_vm2, %v3989_v33, 0.0  ;;  %vm2059_vm3 = vcmp.ne.s32.totalorder %v6331_v23, 4294967295  ;;  %v4678_v0 = vld [vmem:[%s7418_s0 + $0x1e8] sm:$0xff]  ;;  %v4679_v16 = vld [vmem:[%s7418_s0 + $0x1e0] sm:$0xff]  ;;  %vm7676_vm5 = vmmov %vm7670_vm8 }
 0x10f   :  { %v6341_v19 = vpack.c.bf16 %v4480_v62, %v4482_v30  ;;  %4491 = vpow2.f32 %v577_v63  ;;  %v6346_v11 = vsub.f32 %v4678_v0, %v388_v25  ;;  %v6351_v40 = vsub.f32 %v4679_v16, %v385_v41  ;;  %v4680_v33 = vld [vmem:[%s7419_s1 + $0x108] sm:$0xff]  ;;  %v6359_v15 = vld [vmem:[%s7419_s1 + $0x1a0] sm:$0xff]  ;;  %v4682_v21 = vld [vmem:[%s7418_s0 + $0x1f8] sm:$0xff] }
 0x110   :  { %2236 = vperm.xlu0 %4373, %v4680_v33   ;;  %7675 = vst [vmem:[#allocation75_spill] sm:$0xff] %v6359_v15  ;;  %4493 = vpow2.f32 %v575_v3  ;;  %4151 = vmatprep.mubr.msk.bf16.mxu1 %vm7676_vm5, %v772_v54  ;;  %v734_v17 = vsub.f32 %v4478_v20, %v670_v52  ;;  %v735_v63 = vsub.f32 %v4476_v9, %v671_v7  ;;  %vm7526_vm8 = vcmp.ne.s32.totalorder %v6359_v15, 4294967295  ;;  %v4681_v3 = vld [vmem:[%s7419_s1 + $0xe0] sm:$0xff]  ;;  %v394_v54 = vpop.xlane.xlu1 %393  ;;  %vm7679_vm10 = vmmov %vm7676_vm5 }
 0x111   :  { %7673 = vst [vmem:[#allocation22_spill] sm:$0xff] %v6346_v11  ;;  %7674 = vst [vmem:[#allocation74_spill] sm:$0xff] %v6351_v40  ;;  %v4484_v25 = vpop.eup %4483  ;;  %v581_v41 = vmul.f32 1.442695, %v6346_v11  ;;  %v579_v34 = vmul.f32 1.442695, %v6351_v40  ;;  %v672_v0 = vunpack.c.l.bf16 %v6341_v19  ;;  %v673_v16 = vunpack.c.h.bf16 %v6341_v19  ;;  %2221 = vperm.xlu1 %4374, %v4681_v3   ;;  %v391_v9 = vpop.xlane.xlu0 %390 }
 0x112   :  { %v4486_v33 = vpop.eup %4485  ;;  %v773_v20 = vpack.c.bf16 %v735_v63, %v734_v17  ;;  %v3991_v52 = vsel %vm2059_vm3, 1.0, %v7569_v1  ;;  %v3990_v7 = vsel %vm7526_vm8, 1.0, %v7569_v1  ;;  %v3694_v11 = vadd.f32 %v3693_v8, %v3692_v55  ;;  %v4683_v17 = vld [vmem:[%s7418_s0 + $0x1f0] sm:$0xff]  ;;  %vm7680_vm8 = vmmov %vm7676_vm5 }
 0x113   :  { %v6376_v40 = vpack.c.bf16 %v4484_v25, %v4486_v33  ;;  %4495 = vpow2.f32 %v581_v41  ;;  %v6381_v3 = vsub.f32 %v4682_v21, %v394_v54  ;;  %v6386_v63 = vsub.f32 %v4683_v17, %v391_v9  ;;  %v4685_v17 = vld [vmem:[%s7419_s1 + $0xf0] sm:$0xff] }
 0x114   :  { %2556 = vperm.xlu0 %4373, %v6269_v24   ;;  %4497 = vpow2.f32 %v579_v34  ;;  %4152 = vmatmul.mubr.msk.bf16.gmra.mrb[16].mxu1 %vm7679_vm10, %v773_v20  ;;  %v736_v55 = vsub.f32 %v4482_v30, %v672_v0  ;;  %v737_v8 = vsub.f32 %v4480_v62, %v673_v16  ;;  %v3695_v41 = vsel %vm3591_vm2, %v3990_v7, 0.0  ;;  %v6399_v62 = vpop.permute.xlu1 %2140 }
 0x115   :  { %7677 = vst [vmem:[#allocation76_spill] sm:$0xff] %v6381_v3  ;;  %7678 = vst [vmem:[#allocation77_spill] sm:$0xff] %v6386_v63  ;;  %v4488_v32 = vpop.eup %4487  ;;  %v585_v15 = vmul.f32 1.442695, %v6381_v3  ;;  %v583_v21 = vmul.f32 1.442695, %v6386_v63  ;;  %4186 = vmatmul.mubr.msk.bf16.gmra.mrb[16].mxu0 %vm7676_vm5, %v5785_v56  ;;  %v674_v54 = vunpack.c.l.bf16 %v6376_v40  ;;  %v675_v9 = vunpack.c.h.bf16 %v6376_v40  ;;  %2541 = vperm.xlu1 %4374, %v2420_v28  }
 0x116   :  { %v4490_v24 = vpop.eup %4489  ;;  %4189 = vmatprep.mubr.msk.bf16.mxu0 %vm7680_vm8, %v5814_v42  ;;  %v774_v30 = vpack.c.bf16 %v737_v8, %v736_v55  ;;  %v3696_v34 = vadd.f32 %v3695_v41, %v3694_v11  ;;  %v4684_v56 = vld [vmem:[%s7419_s1 + $0x118] sm:$0xff]  ;;  %v3697_v20 = vsel %vm3591_vm2, %v3991_v52, 0.0  ;;  %vm7682_vm8 = vmmov %vm7676_vm5  ;;  %v2427_v11 = vsel %vm2041_vm11, 1, %v7561_v57  ;;  %v6433_v41 = vpop.permute.xlu0 %2137 }
 0x117   :  { %v6401_v0 = vpack.c.bf16 %v4488_v32, %v4490_v24  ;;  %4499 = vpow2.f32 %v585_v15  ;;  %v738_v16 = vsub.f32 %v4486_v33, %v674_v54  ;;  %v6410_v42 = vld [vmem:[%s7419_s1 + $0x1b8] sm:$0xff]  ;;  %v739_v28 = vsub.f32 %v4484_v25, %v675_v9  ;;  %v6420_v15 = vld [vmem:[%s7419_s1 + $0x1b0] sm:$0xff]  ;;  %vm7685_vm11 = vmmov %vm7682_vm8 }
 0x118   :  { %2242 = vperm.xlu0 %4373, %v4684_v56   ;;  %7681 = vst [vmem:[#allocation78_spill] sm:$0xff] %v6410_v42  ;;  %4501 = vpow2.f32 %v583_v21  ;;  %4155 = vmatprep.mubr.msk.bf16.mxu1 %vm7682_vm8, %v774_v30  ;;  %vm2061_vm10 = vcmp.ne.s32.totalorder %v6410_v42, 4294967295  ;;  %7683 = vst [vmem:[#allocation79_spill] sm:$0xff] %v6420_v15  ;;  %vm7543_vm5 = vcmp.ne.s32.totalorder %v6420_v15, 4294967295  ;;  %v6431_v55 = vpop.permute.xlu1 %2143  ;;  %v3698_v54 = vadd.f32 %v3697_v20, %v3696_v34 }
 0x119   :  { %v4492_v33 = vpop.eup %4491  ;;  %v676_v52 = vunpack.c.l.bf16 %v6401_v0  ;;  %v677_v7 = vunpack.c.h.bf16 %v6401_v0  ;;  %v3993_v25 = vsel %vm2061_vm10, 1.0, %v7569_v1  ;;  %2227 = vperm.xlu1 %4374, %v4685_v17   ;;  %v775_v8 = vpack.c.bf16 %v739_v28, %v738_v16  ;;  %v6448_v28 = vld [vmem:[%s7419_s1 + $0x1c8] sm:$0xff] }
 0x11a   :  { %v4494_v29 = vpop.eup %4493  ;;  %v3992_v21 = vsel %vm7543_vm5, 1.0, %v7569_v1  ;;  %v2422_v56 = vsel %vm2036_vm6, 1, %v7561_v57  ;;  %v3701_v16 = vsel %vm3591_vm2, %v3993_v25, 0.0  ;;  %7686 = vst [vmem:[#allocation25_spill] sm:$0xff] %v6448_v28  ;;  %vm7549_vm6 = vcmp.ne.s32.totalorder %v6448_v28, 4294967295 }
 0x11b   :  { %v6438_v9 = vpack.c.bf16 %v4492_v33, %v4494_v29  ;;  %v740_v3 = vsub.f32 %v4490_v24, %v676_v52  ;;  %v741_v17 = vsub.f32 %v4488_v32, %v677_v7  ;;  %v3699_v34 = vsel %vm3591_vm2, %v3992_v21, 0.0  ;;  %v6460_v21 = vpop.permute.xlu0 %2152 }
 0x11c   :  { %2562 = vperm.xlu0 %4373, %v2427_v11   ;;  %4156 = vmatmul.mubr.msk.bf16.gmra.mrb[20].mxu1 %vm7685_vm11, %v775_v8  ;;  %v3700_v32 = vadd.f32 %v3699_v34, %v3698_v54  ;;  %v2134_v7 = vlaneseq  ;;  %vm7687_vm11 = vmmov %vm7682_vm8  ;;  %v6458_v25 = vpop.permute.xlu1 %2146  ;;  %v3995_v30 = vsel %vm7549_vm6, 1.0, %v7569_v1  ;;  %v6471_v54 = vld [vmem:[%s7419_s1 + $0x1d8] sm:$0xff]  ;;  %v2424_v42 = vsel %vm2038_vm9, 1, %v7561_v57 }
 0x11d   :  { %v4496_v20 = vpop.eup %4495  ;;  %4190 = vmatmul.mubr.msk.bf16.gmra.mrb[20].mxu0 %vm7682_vm8, %v5844_v13  ;;  %v678_v11 = vunpack.c.l.bf16 %v6438_v9  ;;  %v679_v24 = vunpack.c.h.bf16 %v6438_v9  ;;  %2547 = vperm.xlu1 %4374, %v2422_v56   ;;  %v776_v8 = vpack.c.bf16 %v741_v17, %v740_v3  ;;  %v2429_v13 = vsel %vm2043_vm14, 1, %v7561_v57  ;;  %7688 = vst [vmem:[#allocation80_spill] sm:$0xff] %v6471_v54 }
 0x11e   :  { %v4498_v52 = vpop.eup %4497  ;;  %4193 = vmatprep.mubr.msk.bf16.mxu0 %vm7687_vm11, %v5878_v39  ;;  %v6476_v39 = vld [vmem:[%s7419_s1 + $0x1c0] sm:$0xff]  ;;  %vm7544_vm14 = vcmp.ne.s32.totalorder %v6471_v54, 4294967295  ;;  %v3702_v15 = vadd.f32 %v3701_v16, %v3700_v32  ;;  %vm7692_vm9 = vcmask 64512   ;;  %vm7697_vm6 = vcmask 64512  }
 0x11f   :  { %7689 = vst [vmem:[#allocation81_spill] sm:$0xff] %v6476_v39  ;;  %v6478_v3 = vpack.c.bf16 %v4496_v20, %v4498_v52  ;;  %v742_v56 = vsub.f32 %v4494_v29, %v678_v11  ;;  %vm7542_vm8 = vcmp.ne.s32.totalorder %v6476_v39, 4294967295  ;;  %4159 = vmatprep.mubr.msk.bf16.mxu1 %vm7687_vm11, %v776_v8  ;;  %v743_v17 = vsub.f32 %v4492_v33, %v679_v24  ;;  %v4687_v24 = vld [vmem:[%s7419_s1 + $0x100] sm:$0xff]  ;;  %v6503_v32 = vpop.permute.xlu0 %2472  ;;  %vm7693_vm5 = vmmov %vm7692_vm9 }
 0x120   :  { %2248 = vperm.xlu0 %4373, %v4686_v5   ;;  %v3997_v34 = vsel %vm7544_vm14, 1.0, %v7569_v1  ;;  %v3994_v63 = vsel %vm7542_vm8, 1.0, %v7569_v1  ;;  %v3705_v11 = vsel %vm3591_vm2, %v3995_v30, 0.0  ;;  %v6496_v33 = vand.u32 127, %v2134_v7  ;;  %v6501_v39 = vpop.permute.xlu1 %2149  ;;  %vm7694_vm14 = vmmov %vm7693_vm5 }
 0x121   :  { %7690 = vst [vmem:[#allocation82_spill] sm:$0xff] %v6478_v3  ;;  %v4500_v28 = vpop.eup %4499  ;;  %v680_v5 = vunpack.c.l.bf16 %v6478_v3  ;;  %v681_v29 = vunpack.c.h.bf16 %v6478_v3  ;;  %v3703_v47 = vsel %vm3591_vm2, %v3994_v63, 0.0  ;;  %2233 = vperm.xlu1 %4374, %v4687_v24   ;;  %v777_v16 = vpack.c.bf16 %v743_v17, %v742_v56  ;;  %v6511_v63 = vld [vmem:[%s7419_s1 + $0x1d0] sm:$0xff]  ;;  %v6519_v56 = vld [vmem:[%s7419_s1 + $0x1e8] sm:$0xff]  ;;  %vm7699_vm4 = vmmov %vm7697_vm6 }
 0x122   :  { %v4502_v8 = vpop.eup %4501  ;;  %v3704_v30 = vadd.f32 %v3703_v47, %v3702_v15  ;;  %v3709_v24 = vsel %vm3591_vm2, %v3997_v34, 0.0  ;;  %vm7545_vm11 = vcmp.ne.s32.totalorder %v6511_v63, 4294967295  ;;  %vm7546_vm8 = vcmp.ne.s32.totalorder %v6519_v56, 4294967295 }
 0x123   :  { %v6513_v7 = vpack.c.bf16 %v4500_v28, %v4502_v8  ;;  %v744_v3 = vsub.f32 %v4498_v52, %v680_v5  ;;  %v745_v47 = vsub.f32 %v4496_v20, %v681_v29  ;;  %v3996_v15 = vsel %vm7545_vm11, 1.0, %v7569_v1 }
 0x124   :  { %2568 = vperm.xlu0 %4373, %v2429_v13   ;;  %4160 = vmatmul.mubr.msk.bf16.gmra.mrb[24].mxu1 %vm7692_vm9, %v777_v16  ;;  %v3706_v13 = vadd.f32 %v3705_v11, %v3704_v30  ;;  %v3999_v17 = vsel %vm7546_vm8, 1.0, %v7569_v1  ;;  %v3707_v20 = vsel %vm3591_vm2, %v3996_v15, 0.0  ;;  %vm2328_vm9 = vcmp.eq.s32.totalorder %v6433_v41, %v6496_v33  ;;  %v2458_v34 = vpop.permute.xlu1 %2457  ;;  %v6547_v16 = vld [vmem:[%s7419_s1 + $0x1e0] sm:$0xff] }
 0x125   :  { %4194 = vmatmul.mubr.msk.bf16.gmra.mrb[24].mxu0 %vm7693_vm5, %v5906_v18  ;;  %v682_v52 = vunpack.c.l.bf16 %v6513_v7  ;;  %v683_v54 = vunpack.c.h.bf16 %v6513_v7  ;;  %2553 = vperm.xlu1 %4374, %v2424_v42   ;;  %v778_v5 = vpack.c.bf16 %v745_v47, %v744_v3  ;;  %v6539_v18 = vpop.permute.xlu0 %2158  ;;  %v2431_v29 = vsel %vm2045_vm12, 1, %v7561_v57  ;;  %v6563_v47 = vld [vmem:[%s7419_s1 + $0x1f8] sm:$0xff] }
 0x126   :  { %4197 = vmatprep.mubr.msk.bf16.mxu0 %vm7694_vm14, %v5940_v61  ;;  %v3708_v11 = vadd.f32 %v3707_v20, %v3706_v13  ;;  %vm2648_vm5 = vcmp.eq.s32.totalorder %v2458_v34, 1  ;;  %v4688_v61 = vld [vmem:[%s7419_s1 + $0x138] sm:$0xff]  ;;  %vm7548_vm14 = vcmp.ne.s32.totalorder %v6547_v16, 4294967295  ;;  %vm7695_vm12 = vcmask 64512  }
 0x127   :  { %v746_v42 = vsub.f32 %v4502_v8, %v682_v52  ;;  %v747_v3 = vsub.f32 %v4500_v28, %v683_v54  ;;  %4163 = vmatprep.mubr.msk.bf16.mxu1 %vm7695_vm12, %v778_v5  ;;  %v3713_v30 = vsel %vm3591_vm2, %v3999_v17, 0.0  ;;  %v3998_v28 = vsel %vm7548_vm14, 1.0, %v7569_v1  ;;  %vm2712_vm12 = vmand %vm2328_vm9, %vm2648_vm5 }
 0x128   :  { %2254 = vperm.xlu0 %4373, %v4688_v61   ;;  %v3710_v8 = vadd.f32 %v3709_v24, %v3708_v11  ;;  %vm7547_vm11 = vcmp.ne.s32.totalorder %v6556_v51, 4294967295  ;;  %vm7550_vm8 = vcmp.ne.s32.totalorder %v6563_v47, 4294967295  ;;  %v3711_v13 = vsel %vm3591_vm2, %v3998_v28, 0.0  ;;  %v4689_v24 = vld [vmem:[%s7419_s1 + $0x110] sm:$0xff]  ;;  %v2461_v54 = vpop.permute.xlu1 %2460 }
 0x129   :  { %v779_v15 = vpack.c.bf16 %v747_v3, %v746_v42  ;;  %v4000_v52 = vsel %vm7547_vm11, 1.0, %v7569_v1  ;;  %2239 = vperm.xlu1 %4374, %v4689_v24   ;;  %v6581_v17 = vpop.permute.xlu0 %2478  ;;  %v4001_v20 = vsel %vm7550_vm8, 1.0, %v7569_v1  ;;  %vm2329_vm11 = vcmp.eq.s32.totalorder %v6399_v62, %v6496_v33  ;;  %vm7698_vm8 = vmmov %vm7697_vm6 }
 0x12a   :  { %v3712_v5 = vadd.f32 %v3711_v13, %v3710_v8  ;;  %vm2649_vm14 = vcmp.eq.s32.totalorder %v2461_v54, 1  ;;  %vm7696_vm9 = vcmp.ne.s32.totalorder %v5649_v26, 4294967295  ;;  %v3715_v34 = vsel %vm3591_vm2, %v4000_v52, 0.0  ;;  %v4692_v54 = vld [vmem:[%s7419_s1 + $0x130] sm:$0xff] }
 0x12b   :  { %v2426_v41 = vsel %vm7696_vm9, 1, %v7561_v57  ;;  %vm2713_vm5 = vmand %vm2329_vm11, %vm2649_vm14  ;;  %v3842_v61 = vsel %vm2712_vm12, 1.0, %v7569_v1  ;;  %v3717_v62 = vsel %vm3591_vm2, %v4001_v20, 0.0  ;;  %vm2330_vm2 = vcmp.eq.s32.totalorder %v6431_v55, %v6496_v33 }
 0x12c   :  { %2574 = vperm.xlu0 %4373, %v2431_v29   ;;  %4164 = vmatmul.mubr.msk.bf16.gmra.mrb[28].mxu1 %vm7697_vm6, %v779_v15  ;;  %v3714_v11 = vadd.f32 %v3713_v30, %v3712_v5  ;;  %v3843_v42 = vsel %vm2713_vm5, 1.0, %v7569_v1  ;;  %v2464_v26 = vpop.permute.xlu1 %2463  ;;  %v4690_v30 = vld [vmem:[%s7419_s1 + $0x148] sm:$0xff]  ;;  %vm7700_vm11 = vmmov %vm7699_vm4  ;;  %vm2333_vm14 = vcmp.eq.s32.totalorder %v6460_v21, %v6496_v33  ;;  %vm2653_vm12 = vcmp.eq.s32.totalorder %v6503_v32, 1 }
 0x12d   :  { %4198 = vmatmul.mubr.msk.bf16.gmra.mrb[28].mxu0 %vm7698_vm8, %v5969_v2  ;;  %v2904_v29 = vpack.c.bf16 %v3843_v42, %v3842_v61  ;;  %2559 = vperm.xlu1 %4374, %v2426_v41   ;;  %v6600_v3 = vpop.permute.xlu0 %2164  ;;  %vm2650_vm6 = vcmp.eq.s32.totalorder %v2464_v26, 1  ;;  %v2433_v2 = vsel %vm2047_vm15, 1, %v7561_v57  ;;  %vm7702_vm8 = vcmp.ne.s32.totalorder %v5705_v36, 4294967295 }
 0x12e   :  { %4201 = vmatprep.mubr.msk.bf16.mxu0 %vm7699_vm4, %v6016_v45  ;;  %v3716_v28 = vadd.f32 %v3715_v34, %v3714_v11  ;;  %vm2714_vm4 = vmand %vm2330_vm2, %vm2650_vm6  ;;  %v4691_v45 = vld [vmem:[%s7419_s1 + $0x120] sm:$0xff]  ;;  %v2428_v52 = vsel %vm7702_vm8, 1, %v7561_v57  ;;  %vm2331_vm15 = vcmp.eq.s32.totalorder %v6458_v25, %v6496_v33  ;;  %vm2332_vm8 = vcmp.eq.s32.totalorder %v6501_v39, %v6496_v33 }
 0x12f   :  { %4235 = vmatprep.mubr.msk.bf16.mxu1 %vm7700_vm11, %v2904_v29  ;;  %v3844_v49 = vsel %vm2714_vm4, 1.0, %v7569_v1  ;;  %vm7703_vm6 = vmmov %vm7700_vm11 }
 0x130   :  { %2260 = vperm.xlu0 %4373, %v4690_v30   ;;  %v6609_v8 = vadd.f32 %v3717_v62, %v3716_v28  ;;  %v2467_v15 = vpop.permute.xlu1 %2466  ;;  %vm2717_vm11 = vmand %vm2333_vm14, %vm2653_vm12  ;;  %vm2335_vm14 = vcmp.eq.s32.totalorder %v6539_v18, %v6496_v33  ;;  %vm2655_vm12 = vcmp.eq.s32.totalorder %v6581_v17, 1 }
 0x131   :  { %2245 = vperm.xlu1 %4374, %v4691_v45   ;;  %v2485_v13 = vpop.permute.xlu0 %2484  ;;  %vm2651_vm9 = vcmp.eq.s32.totalorder %v2467_v15, 1  ;;  %vm7704_vm2 = vmmov %vm7703_vm6  ;;  %v3847_v32 = vsel %vm2717_vm11, 1.0, %v7569_v1 }
 0x132   :  { %7701 = vst [vmem:[#allocation29_spill] sm:$0xff] %v6609_v8  ;;  %vm2715_vm5 = vmand %vm2331_vm15, %vm2651_vm9 }
 0x133   :  { %v3845_v55 = vsel %vm2715_vm5, 1.0, %v7569_v1  ;;  %vm7705_vm9 = vmmov %vm7704_vm2 }
 0x134   :  { %2580 = vperm.xlu0 %4373, %v2433_v2   ;;  %v2905_v36 = vpack.c.bf16 %v3845_v55, %v3844_v49  ;;  %v2470_v25 = vpop.permute.xlu1 %2469  ;;  %vm7707_vm5 = vmmov %vm7704_vm2 }
 0x135   :  { %4202 = vmatmul.mubr.msk.bf16.gmra.mrb[32].mxu0 %vm7703_vm6, %v6035_v10  ;;  %2565 = vperm.xlu1 %4374, %v2428_v52   ;;  %v6630_v21 = vpop.permute.xlu0 %2170  ;;  %vm2652_vm15 = vcmp.eq.s32.totalorder %v2470_v25, 1  ;;  %v2435_v10 = vsel %vm2049_vm7, 1, %v7561_v57  ;;  %vm7706_vm7 = vcmp.ne.s32.totalorder %v5767_v37, 4294967295  ;;  %vm7708_vm6 = vmmov %vm7704_vm2  ;;  %v2437_v37 = vsel %vm2051_vm1, 1, %v7561_v57 }
 0x136   :  { %4205 = vmatprep.mubr.msk.bf16.mxu0 %vm7704_vm2, %v6065_v6  ;;  %vm2716_vm4 = vmand %vm2332_vm8, %vm2652_vm15  ;;  %4236 = vmatmul.mubr.msk.bf16.vlgmr.msra.gmra.mrb[32].mxu1 %vm7705_vm9, %v2905_v36  ;;  %vm2657_vm9 = vcmp.eq.s32.totalorder %v2485_v13, 1  ;;  %vm2337_vm1 = vcmp.eq.s32.totalorder %v6600_v3, %v6496_v33 }
 0x137   :  { %v3846_v6 = vsel %vm2716_vm4, 1.0, %v7569_v1  ;;  %vm2719_vm11 = vmand %vm2335_vm14, %vm2655_vm12  ;;  %vm7709_vm14 = vcmp.ne.s32.totalorder %v5860_v43, 4294967295  ;;  %v2439_v43 = vsel %vm2053_vm0, 1, %v7561_v57  ;;  %vm2339_vm0 = vcmp.eq.s32.totalorder %v6630_v21, %v6496_v33 }
 0x138   :  { %2266 = vperm.xlu0 %4373, %v5956_v60   ;;  %v2906_v24 = vpack.c.bf16 %v3847_v32, %v3846_v6  ;;  %v2156_v39 = vpop.permute.xlu1 %2155  ;;  %v2430_v60 = vsel %vm7706_vm7, 1, %v7561_v57  ;;  %v2432_v61 = vsel %vm7709_vm14, 1, %v7561_v57  ;;  %vm7710_vm12 = vmmov %vm7704_vm2 }
 0x139   :  { %2251 = vperm.xlu1 %4374, %v4692_v54   ;;  %v2491_v20 = vpop.permute.xlu0 %2490  ;;  %vm2334_vm8 = vcmp.eq.s32.totalorder %v2156_v39, %v6496_v33  ;;  %vm7711_vm7 = vmmov %vm7704_vm2 }
 0x13a   :  { %4239 = vmatprep.mubr.msk.bf16.mxu1 %vm7707_vm5, %v2906_v24  ;;  %vm2721_vm5 = vmand %vm2337_vm1, %vm2657_vm9 }
 0x13c   :  { %2586 = vperm.xlu0 %4373, %v2435_v10   ;;  %v2476_v5 = vpop.permute.xlu1 %2475 }
 0x13d   :  { %4206 = vmatmul.mubr.msk.bf16.gmra.mrb[36].mxu0 %vm7708_vm6, %v6100_v46  ;;  %2571 = vperm.xlu1 %4374, %v2430_v60   ;;  %v6655_v41 = vpop.permute.xlu0 %2176  ;;  %vm2654_vm15 = vcmp.eq.s32.totalorder %v2476_v5, 1  ;;  %v3849_v46 = vsel %vm2719_vm11, 1.0, %v7569_v1  ;;  %vm7712_vm6 = vmmov %vm7704_vm2  ;;  %v2447_v60 = vsel %vm2061_vm10, 1, %v7561_v57 }
 0x13e   :  { %4209 = vmatprep.mubr.msk.bf16.mxu0 %vm7704_vm2, %v6133_v50  ;;  %vm2718_vm4 = vmand %vm2334_vm8, %vm2654_vm15  ;;  %v4693_v50 = vld [vmem:[%s7419_s1 + $0x140] sm:$0xff]  ;;  %vm2659_vm15 = vcmp.eq.s32.totalorder %v2491_v20, 1 }
 0x13f   :  { %v3848_v18 = vsel %vm2718_vm4, 1.0, %v7569_v1  ;;  %vm7713_vm4 = vcmp.ne.s32.totalorder %v5922_v14, 4294967295  ;;  %vm7714_vm9 = vmmov %vm7712_vm6 }
 0x140   :  { %2272 = vperm.xlu0 %4373, %v6021_v27   ;;  %v2907_v17 = vpack.c.bf16 %v3849_v46, %v3848_v18  ;;  %v2162_v34 = vpop.permute.xlu1 %2161  ;;  %v2434_v28 = vsel %vm7713_vm4, 1, %v7561_v57  ;;  %vm7715_vm14 = vmmov %vm7712_vm6  ;;  %vm2341_vm4 = vcmp.eq.s32.totalorder %v6655_v41, %v6496_v33 }
 0x141   :  { %2257 = vperm.xlu1 %4374, %v4693_v50   ;;  %v2497_v11 = vpop.permute.xlu0 %2496  ;;  %vm2336_vm11 = vcmp.eq.s32.totalorder %v2162_v34, %v6496_v33  ;;  %vm7716_vm1 = vmmov %vm7712_vm6 }
 0x142   :  { %4240 = vmatmul.mubr.msk.bf16.gmra.mrb[36].mxu1 %vm7710_vm12, %v2907_v17  ;;  %vm2723_vm12 = vmand %vm2339_vm0, %vm2659_vm15 }
 0x143   :  { %vm7719_vm15 = vmmov %vm7716_vm1 }
 0x144   :  { %2592 = vperm.xlu0 %4373, %v2437_v37   ;;  %v2482_v27 = vpop.permute.xlu1 %2481  ;;  %v7732_v37 = vld [vmem:[#allocation70_spill] sm:$0xff] }
 0x145   :  { %4210 = vmatmul.mubr.msk.bf16.gmra.mrb[40].mxu0 %vm7711_vm7, %v6167_v35  ;;  %2577 = vperm.xlu1 %4374, %v2432_v61   ;;  %v6677_v42 = vpop.permute.xlu0 %2182  ;;  %vm2656_vm2 = vcmp.eq.s32.totalorder %v2482_v27, 1  ;;  %v3851_v35 = vsel %vm2721_vm5, 1.0, %v7569_v1 }
 0x146   :  { %4213 = vmatprep.mubr.msk.bf16.mxu0 %vm7712_vm6, %v6205_v48  ;;  %vm2720_vm8 = vmand %vm2336_vm11, %vm2656_vm2  ;;  %v4694_v48 = vld [vmem:[%s7419_s1 + $0x150] sm:$0xff]  ;;  %vm7717_vm11 = vcmp.ne.s32.totalorder %v6196_v53, 4294967295  ;;  %vm2661_vm2 = vcmp.eq.s32.totalorder %v2497_v11, 1  ;;  %v7736_v11 = vld [vmem:[#allocation25_spill] sm:$0xff] }
 0x147   :  { %v3850_v62 = vsel %vm2720_vm8, 1.0, %v7569_v1  ;;  %v2441_v14 = vsel %vm7717_vm11, 1, %v7561_v57  ;;  %vm7718_vm8 = vcmp.ne.s32.totalorder %v6013_v4, 4294967295  ;;  %vm2725_vm0 = vmand %vm2341_vm4, %vm2661_vm2  ;;  %v2443_v4 = vsel %vm2057_vm13, 1, %v7561_v57 }
 0x148   :  { %2278 = vperm.xlu0 %4373, %v6116_v22   ;;  %v2908_v29 = vpack.c.bf16 %v3851_v35, %v3850_v62  ;;  %v2168_v26 = vpop.permute.xlu1 %2167  ;;  %v2436_v52 = vsel %vm7718_vm8, 1, %v7561_v57  ;;  %v3855_v55 = vsel %vm2725_vm0, 1.0, %v7569_v1  ;;  %vm2343_vm13 = vcmp.eq.s32.totalorder %v6677_v42, %v6496_v33 }
 0x149   :  { %2263 = vperm.xlu1 %4374, %v4694_v48   ;;  %v2503_v3 = vpop.permute.xlu0 %2502  ;;  %vm2338_vm7 = vcmp.eq.s32.totalorder %v2168_v26, %v6496_v33 }
 0x14a   :  { %4243 = vmatprep.mubr.msk.bf16.mxu1 %vm7714_vm9, %v2908_v29  ;;  %vm7720_vm9 = vmmov %vm7716_vm1 }
 0x14b   :  { %vm7723_vm11 = vmmov %vm7720_vm9 }
 0x14c   :  { %2598 = vperm.xlu0 %4373, %v2439_v43   ;;  %v2488_v22 = vpop.permute.xlu1 %2487  ;;  %vm7724_vm2 = vmmov %vm7720_vm9 }
 0x14d   :  { %4214 = vmatmul.mubr.msk.bf16.gmra.mrb[44].mxu0 %vm7715_vm14, %v6237_v44  ;;  %2583 = vperm.xlu1 %4374, %v2434_v28   ;;  %v6699_v30 = vpop.permute.xlu0 %2188  ;;  %vm2658_vm5 = vcmp.eq.s32.totalorder %v2488_v22, 1  ;;  %v3853_v44 = vsel %vm2723_vm12, 1.0, %v7569_v1  ;;  %vm7721_vm14 = vmmov %vm7716_vm1 }
 0x14e   :  { %4217 = vmatprep.mubr.msk.bf16.mxu0 %vm7716_vm1, %v6275_v31  ;;  %vm2722_vm6 = vmand %vm2338_vm7, %vm2658_vm5  ;;  %v4695_v31 = vld [vmem:[%s7419_s1 + $0x160] sm:$0xff]  ;;  %vm2663_vm5 = vcmp.eq.s32.totalorder %v2503_v3, 1  ;;  %v7741_v3 = vld [vmem:[#allocation80_spill] sm:$0xff]  ;;  %s4746_s1 = smov [#allocation6]  }
 0x14f   :  { %v3852_v2 = vsel %vm2722_vm6, 1.0, %v7569_v1  ;;  %vm7722_vm6 = vcmp.ne.s32.totalorder %v6083_v58, 4294967295  ;;  %vm2727_vm8 = vmand %vm2343_vm13, %vm2663_vm5  ;;  %s3754_s11 = sshll.u32 %s4746_s1, 4  ;;  %s3755_s11 = int_to_ptr.vmem [resolvable:$true] %s3754_s11 }
 0x150   :  { %2284 = vperm.xlu0 %4373, %v6196_v53   ;;  %v2909_v45 = vpack.c.bf16 %v3853_v44, %v3852_v2  ;;  %v2174_v15 = vpop.permute.xlu1 %2173  ;;  %v2438_v21 = vsel %vm7722_vm6, 1, %v7561_v57  ;;  %v3857_v32 = vsel %vm2727_vm8, 1.0, %v7569_v1  ;;  %v7743_v44 = vld [vmem:[#allocation79_spill] sm:$0xff]  ;;  %s4696_s12 = scalar_lea.vmem %s3755_s11, 16  ;;  %s4700_s13 = scalar_lea.vmem %s3755_s11, 32 }
 0x151   :  { %2269 = vperm.xlu1 %4374, %v4695_v31   ;;  %v2509_v13 = vpop.permute.xlu0 %2508  ;;  %vm2340_vm12 = vcmp.eq.s32.totalorder %v2174_v15, %v6496_v33  ;;  %p4697_p0 = scmp.ne.s32.totalorder %s3755_s11, %s4696_s12  ;;  %p4701_p1 = scmp.lt.s32.totalorder %s3755_s11, %s3755_s11 }
 0x152   :  { %4244 = vmatmul.mubr.msk.bf16.gmra.mrb[40].mxu1 %vm7719_vm15, %v2909_v45  ;;  %vm7725_vm15 = vmmov %vm7724_vm2  ;;  %p4702_p2 = scmp.lt.s32.totalorder %s4700_s13, %s4696_s12 }
 0x154   :  { %2604 = vperm.xlu0 %4373, %v2441_v14   ;;  %v2494_v53 = vpop.permute.xlu1 %2493  ;;  %p4703_p3 = por %p4702_p2, %p4701_p1 }
 0x155   :  { %4218 = vmatmul.mubr.msk.bf16.gmra.mrb[48].mxu0 %vm7720_vm9, %v6308_v38  ;;  %2589 = vperm.xlu1 %4374, %v2436_v52   ;;  %v2195_v49 = vpop.permute.xlu0 %2194  ;;  %vm2660_vm1 = vcmp.eq.s32.totalorder %v2494_v53, 1 }
 0x156   :  { %4221 = vmatprep.mubr.msk.bf16.mxu0 %vm7721_vm14, %v6341_v19  ;;  %vm2724_vm7 = vmand %vm2340_vm12, %vm2660_vm1  ;;  %vm2665_vm14 = vcmp.eq.s32.totalorder %v2509_v13, 1  ;;  %vm7726_vm12 = vcmp.ne.s32.totalorder %v6183_v59, 4294967295  ;;  %p4704_p4 = pnand %p4703_p3, %p4697_p0 }
 0x157   :  { %v3854_v38 = vsel %vm2724_vm7, 1.0, %v7569_v1  ;;  %v2440_v54 = vsel %vm7726_vm12, 1, %v7561_v57  ;;  %vm7727_vm1 = vmmov %vm7724_vm2 }
 0x158   :  { %2290 = vperm.xlu0 %4373, %v6293_v12   ;;  %v2910_v36 = vpack.c.bf16 %v3855_v55, %v3854_v38  ;;  %v2180_v19 = vpop.permute.xlu1 %2179  ;;  %vm7728_vm7 = vmmov %vm7727_vm1  ;;  %v7747_v55 = vld [vmem:[#allocation81_spill] sm:$0xff] }
 0x159   :  { %2275 = vperm.xlu1 %4374, %v6083_v58   ;;  %v2515_v25 = vpop.permute.xlu0 %2514  ;;  %vm2342_vm4 = vcmp.eq.s32.totalorder %v2180_v19, %v6496_v33  ;;  %v2445_v58 = vsel %vm2059_vm3, 1, %v7561_v57  ;;  %vm2345_vm3 = vcmp.eq.s32.totalorder %v6699_v30, %v6496_v33  ;;  %vm7730_vm6 = vmmov %vm7727_vm1 }
 0x15a   :  { %4247 = vmatprep.mubr.msk.bf16.mxu1 %vm7723_vm11, %v2910_v36  ;;  %vm2729_vm5 = vmand %vm2345_vm3, %vm2665_vm14  ;;  %vm2667_vm8 = vcmp.eq.s32.totalorder %v2515_v25, 1  ;;  %vm7737_vm3 = vcmp.ne.s32.totalorder %v7736_v11, 4294967295 }
 0x15b   :  { %v3859_v5 = vsel %vm2729_vm5, 1.0, %v7569_v1  ;;  %vm7735_vm10 = vmmov %vm7727_vm1  ;;  %v2449_v61 = vsel %vm7737_vm3, 1, %v7561_v57 }
 0x15c   :  { %2610 = vperm.xlu0 %4373, %v2443_v4   ;;  %v2500_v12 = vpop.permute.xlu1 %2499 }
 0x15d   :  { %4222 = vmatmul.mubr.msk.bf16.gmra.mrb[52].mxu0 %vm7724_vm2, %v6376_v40  ;;  %2595 = vperm.xlu1 %4374, %v2438_v21   ;;  %v2201_v10 = vpop.permute.xlu0 %2200  ;;  %vm2662_vm9 = vcmp.eq.s32.totalorder %v2500_v12, 1 }
 0x15e   :  { %4225 = vmatprep.mubr.msk.bf16.mxu0 %vm7725_vm15, %v6401_v0  ;;  %vm2726_vm0 = vmand %vm2342_vm4, %vm2662_vm9  ;;  %vm7733_vm15 = vcmp.ne.s32.totalorder %v7732_v37, 4294967295  ;;  %vm2347_vm9 = vcmp.eq.s32.totalorder %v2195_v49, %v6496_v33 }
 0x15f   :  { %v3856_v40 = vsel %vm2726_vm0, 1.0, %v7569_v1  ;;  %v2442_v17 = vsel %vm7733_vm15, 1, %v7561_v57  ;;  %vm7734_vm4 = vmmov %vm7727_vm1 }
 0x160   :  { %2296 = vperm.xlu0 %4373, %v6331_v23   ;;  %v2911_v6 = vpack.c.bf16 %v3857_v32, %v3856_v40  ;;  %v2186_v0 = vpop.permute.xlu1 %2185  ;;  %v7729_v23 = vld [vmem:[#allocation82_spill] sm:$0xff]  ;;  %vm2731_vm0 = vmand %vm2347_vm9, %vm2667_vm8 }
 0x161   :  { %2281 = vperm.xlu1 %4374, %v6183_v59   ;;  %v2521_v24 = vpop.permute.xlu0 %2520  ;;  %vm2344_vm11 = vcmp.eq.s32.totalorder %v2186_v0, %v6496_v33  ;;  %v7731_v59 = vld [vmem:[#allocation78_spill] sm:$0xff]  ;;  %v3861_v27 = vsel %vm2731_vm0, 1.0, %v7569_v1 }
 0x162   :  { %4248 = vmatmul.mubr.msk.bf16.gmra.mrb[44].mxu1 %vm7727_vm1, %v2911_v6 }
 0x164   :  { %2616 = vperm.xlu0 %4373, %v2445_v58   ;;  %v2506_v39 = vpop.permute.xlu1 %2505 }
 0x165   :  { %4226 = vmatmul.mubr.msk.bf16.gmra.mrb[56].mxu0 %vm7728_vm7, %v6438_v9  ;;  %2601 = vperm.xlu1 %4374, %v2440_v54   ;;  %v2207_v20 = vpop.permute.xlu0 %2206  ;;  %vm2664_vm13 = vcmp.eq.s32.totalorder %v2506_v39, 1  ;;  %vm2669_vm7 = vcmp.eq.s32.totalorder %v2521_v24, 1 }
 0x166   :  { %4229 = vmatprep.mubr.msk.bf16.mxu0 %vm7730_vm6, %v7729_v23  ;;  %vm2728_vm2 = vmand %vm2344_vm11, %vm2664_vm13  ;;  %vm2349_vm11 = vcmp.eq.s32.totalorder %v2201_v10, %v6496_v33 }
 0x167   :  { %v3858_v9 = vsel %vm2728_vm2, 1.0, %v7569_v1  ;;  %vm7740_vm6 = vmmov %vm7734_vm4 }
 0x168   :  { %2302 = vperm.xlu0 %4373, %v7731_v59   ;;  %v2912_v41 = vpack.c.bf16 %v3859_v5, %v3858_v9  ;;  %v2192_v46 = vpop.permute.xlu1 %2191  ;;  %vm2733_vm13 = vmand %vm2349_vm11, %vm2669_vm7  ;;  %vm7748_vm11 = vcmp.ne.s32.totalorder %v7747_v55, 4294967295 }
 0x169   :  { %2287 = vperm.xlu1 %4374, %v7732_v37   ;;  %v2527_v18 = vpop.permute.xlu0 %2526  ;;  %vm2346_vm14 = vcmp.eq.s32.totalorder %v2192_v46, %v6496_v33  ;;  %v3863_v22 = vsel %vm2733_vm13, 1.0, %v7569_v1  ;;  %vm7745_vm0 = vmmov %vm7740_vm6  ;;  %v2448_v19 = vsel %vm7748_vm11, 1, %v7561_v57 }
 0x16a   :  { %4251 = vmatprep.mubr.msk.bf16.mxu1 %vm7734_vm4, %v2912_v41  ;;  %vm7742_vm4 = vcmp.ne.s32.totalorder %v7741_v3, 4294967295  ;;  %vm2671_vm9 = vcmp.eq.s32.totalorder %v2527_v18, 1  ;;  %vm7749_vm13 = vmmov %vm7745_vm0 }
 0x16b   :  { %v2451_v28 = vsel %vm7742_vm4, 1, %v7561_v57 }
 0x16c   :  { %2622 = vperm.xlu0 %4373, %v2447_v60   ;;  %v2512_v50 = vpop.permute.xlu1 %2511 }
 0x16d   :  { %4230 = vmatmul.mubr.msk.bf16.gmra.mrb[60].mxu0 %vm7735_vm10, %v6513_v7  ;;  %2607 = vperm.xlu1 %4374, %v2442_v17   ;;  %vm2666_vm12 = vcmp.eq.s32.totalorder %v2512_v50, 1  ;;  %v7738_v7 = vld [vmem:[#allocation75_spill] sm:$0xff]  ;;  %vm7744_vm10 = vcmp.ne.s32.totalorder %v7743_v44, 4294967295 }
 0x16e   :  { %v2213_v34 = vpop.permute.xlu0 %2212  ;;  %vm2730_vm1 = vmand %vm2346_vm14, %vm2666_vm12  ;;  %vm7739_vm5 = vcmp.ne.s32.totalorder %v7738_v7, 4294967295  ;;  %v2446_v31 = vsel %vm7744_vm10, 1, %v7561_v57  ;;  %vm2351_vm14 = vcmp.eq.s32.totalorder %v2207_v20, %v6496_v33  ;;  %vm7750_vm10 = vcmp.ne.s32.totalorder %v6563_v47, 4294967295 }
 0x16f   :  { %v3860_v42 = vsel %vm2730_vm1, 1.0, %v7569_v1  ;;  %v2444_v29 = vsel %vm7739_vm5, 1, %v7561_v57  ;;  %vm2735_vm12 = vmand %vm2351_vm14, %vm2671_vm9  ;;  %vm7746_vm5 = vcmp.ne.s32.totalorder %v6519_v56, 4294967295  ;;  %v2455_v21 = vsel %vm7750_vm10, 1, %v7561_v57 }
 0x170   :  { %2308 = vperm.xlu0 %4373, %v7736_v11   ;;  %v2913_v43 = vpack.c.bf16 %v3861_v27, %v3860_v42  ;;  %v2198_v35 = vpop.permute.xlu1 %2197  ;;  %v2453_v52 = vsel %vm7746_vm5, 1, %v7561_v57  ;;  %v3865_v53 = vsel %vm2735_vm12, 1.0, %v7569_v1  ;;  %vm7751_vm14 = vcmp.ne.s32.totalorder %v6511_v63, 4294967295  ;;  %vm7752_vm12 = vmmov %vm7749_vm13 }
 0x171   :  { %2293 = vperm.xlu1 %4374, %v7738_v7   ;;  %vm2348_vm2 = vcmp.eq.s32.totalorder %v2198_v35, %v6496_v33  ;;  %v2450_v6 = vsel %vm7751_vm14, 1, %v7561_v57  ;;  %vm7755_vm14 = vcmp.ne.s32.totalorder %v6556_v51, 4294967295 }
 0x172   :  { %v2533_v62 = vpop.permute.xlu0 %2532  ;;  %4252 = vmatmul.mubr.msk.bf16.gmra.mrb[48].mxu1 %vm7740_vm6, %v2913_v43  ;;  %v2454_v46 = vsel %vm7755_vm14, 1, %v7561_v57 }
 0x173   :  { %vm2673_vm6 = vcmp.eq.s32.totalorder %v2533_v62, 1 }
 0x174   :  { %2628 = vperm.xlu0 %4373, %v2449_v61   ;;  %v2518_v48 = vpop.permute.xlu1 %2517 }
 0x175   :  { %2613 = vperm.xlu1 %4374, %v2444_v29   ;;  %vm2668_vm8 = vcmp.eq.s32.totalorder %v2518_v48, 1 }
 0x176   :  { %v2219_v26 = vpop.permute.xlu0 %2218  ;;  %vm2732_vm15 = vmand %vm2348_vm2, %vm2668_vm8  ;;  %vm2353_vm2 = vcmp.eq.s32.totalorder %v2213_v34, %v6496_v33 }
 0x177   :  { %v3862_v30 = vsel %vm2732_vm15, 1.0, %v7569_v1  ;;  %vm2737_vm8 = vmand %vm2353_vm2, %vm2673_vm6 }
 0x178   :  { %2314 = vperm.xlu0 %4373, %v7741_v3   ;;  %v2914_v14 = vpack.c.bf16 %v3863_v22, %v3862_v30  ;;  %v2204_v2 = vpop.permute.xlu1 %2203  ;;  %v3867_v12 = vsel %vm2737_vm8, 1.0, %v7569_v1  ;;  %vm7754_vm2 = vmmov %vm7752_vm12 }
 0x179   :  { %2299 = vperm.xlu1 %4374, %v7743_v44   ;;  %vm2350_vm1 = vcmp.eq.s32.totalorder %v2204_v2, %v6496_v33 }
 0x17a   :  { %v2539_v45 = vpop.permute.xlu0 %2538  ;;  %4255 = vmatprep.mubr.msk.bf16.mxu1 %vm7745_vm0, %v2914_v14 }
 0x17b   :  { %vm2675_vm0 = vcmp.eq.s32.totalorder %v2539_v45, 1 }
 0x17c   :  { %2634 = vperm.xlu0 %4373, %v2451_v28   ;;  %v2524_v15 = vpop.permute.xlu1 %2523 }
 0x17d   :  { %2619 = vperm.xlu1 %4374, %v2446_v31   ;;  %vm2670_vm3 = vcmp.eq.s32.totalorder %v2524_v15, 1 }
 0x17e   :  { %v2225_v13 = vpop.permute.xlu0 %2224  ;;  %vm2734_vm7 = vmand %vm2350_vm1, %vm2670_vm3  ;;  %vm2355_vm1 = vcmp.eq.s32.totalorder %v2219_v26, %v6496_v33 }
 0x17f   :  { %v3864_v49 = vsel %vm2734_vm7, 1.0, %v7569_v1  ;;  %vm2739_vm3 = vmand %vm2355_vm1, %vm2675_vm0  ;;  %vm2357_vm8 = vcmp.eq.s32.totalorder %v2225_v13, %v6496_v33 }
 0x180   :  { %2320 = vperm.xlu0 %4373, %v6519_v56   ;;  %v2915_v4 = vpack.c.bf16 %v3865_v53, %v3864_v49  ;;  %v2210_v38 = vpop.permute.xlu1 %2209  ;;  %v3869_v24 = vsel %vm2739_vm3, 1.0, %v7569_v1 }
 0x181   :  { %2305 = vperm.xlu1 %4374, %v7747_v55   ;;  %vm2352_vm15 = vcmp.eq.s32.totalorder %v2210_v38, %v6496_v33 }
 0x182   :  { %v2545_v36 = vpop.permute.xlu0 %2544  ;;  %4256 = vmatmul.mubr.msk.bf16.gmra.mrb[52].mxu1 %vm7749_vm13, %v2915_v4  ;;  %vm7753_vm13 = vcmp.ne.s32.totalorder %v6547_v16, 4294967295 }
 0x183   :  { %vm2677_vm11 = vcmp.eq.s32.totalorder %v2545_v36, 1  ;;  %v2452_v20 = vsel %vm7753_vm13, 1, %v7561_v57  ;;  %vm7757_vm13 = vmmov %vm7754_vm2 }
 0x184   :  { %2640 = vperm.xlu0 %4373, %v2453_v52   ;;  %v2530_v56 = vpop.permute.xlu1 %2529 }
 0x185   :  { %2625 = vperm.xlu1 %4374, %v2448_v19   ;;  %vm2672_vm4 = vcmp.eq.s32.totalorder %v2530_v56, 1 }
 0x186   :  { %v2231_v25 = vpop.permute.xlu0 %2230  ;;  %vm2736_vm9 = vmand %vm2352_vm15, %vm2672_vm4 }
 0x187   :  { %v3866_v10 = vsel %vm2736_vm9, 1.0, %v7569_v1  ;;  %vm2741_vm15 = vmand %vm2357_vm8, %vm2677_vm11  ;;  %vm2359_vm1 = vcmp.eq.s32.totalorder %v2231_v25, %v6496_v33 }
 0x188   :  { %2326 = vperm.xlu0 %4373, %v6563_v47   ;;  %v2916_v58 = vpack.c.bf16 %v3867_v12, %v3866_v10  ;;  %v2216_v32 = vpop.permute.xlu1 %2215  ;;  %v3871_v5 = vsel %vm2741_vm15, 1.0, %v7569_v1 }
 0x189   :  { %2311 = vperm.xlu1 %4374, %v6511_v63   ;;  %vm2354_vm7 = vcmp.eq.s32.totalorder %v2216_v32, %v6496_v33 }
 0x18a   :  { %v2551_v40 = vpop.permute.xlu0 %2550  ;;  %4259 = vmatprep.mubr.msk.bf16.mxu1 %vm7752_vm12, %v2916_v58  ;;  %vm7756_vm12 = vmmov %vm7754_vm2 }
 0x18b   :  { %vm2679_vm0 = vcmp.eq.s32.totalorder %v2551_v40, 1 }
 0x18c   :  { %2646 = vperm.xlu0 %4373, %v2455_v21   ;;  %v2536_v47 = vpop.permute.xlu1 %2535  ;;  %vm2743_vm3 = vmand %vm2359_vm1, %vm2679_vm0 }
 0x18d   :  { %2631 = vperm.xlu1 %4374, %v2450_v6   ;;  %vm2674_vm5 = vcmp.eq.s32.totalorder %v2536_v47, 1  ;;  %v3873_v50 = vsel %vm2743_vm3, 1.0, %v7569_v1  ;;  %vm7758_vm0 = vmmov %vm7756_vm12 }
 0x18e   :  { %vm2738_vm6 = vmand %vm2354_vm7, %vm2674_vm5 }
 0x18f   :  { %v2237_v0 = vpop.permute.xlu0 %2236  ;;  %v3868_v54 = vsel %vm2738_vm6, 1.0, %v7569_v1 }
 0x190   :  { %v2917_v23 = vpack.c.bf16 %v3869_v24, %v3868_v54  ;;  %v2222_v63 = vpop.permute.xlu1 %2221 }
 0x191   :  { %2317 = vperm.xlu1 %4374, %v6547_v16   ;;  %vm2356_vm4 = vcmp.eq.s32.totalorder %v2222_v63, %v6496_v33 }
 0x192   :  { %4260 = vmatmul.mubr.msk.bf16.gmra.mrb[56].mxu1 %vm7754_vm2, %v2917_v23  ;;  %vm2361_vm2 = vcmp.eq.s32.totalorder %v2237_v0, %v6496_v33 }
 0x193   :  { %v2557_v39 = vpop.permute.xlu0 %2556 }
 0x194   :  { %v2542_v59 = vpop.permute.xlu1 %2541  ;;  %vm2681_vm11 = vcmp.eq.s32.totalorder %v2557_v39, 1 }
 0x195   :  { %2637 = vperm.xlu1 %4374, %v2452_v20   ;;  %vm2676_vm9 = vcmp.eq.s32.totalorder %v2542_v59, 1  ;;  %vm2745_vm8 = vmand %vm2361_vm2, %vm2681_vm11 }
 0x196   :  { %vm2740_vm10 = vmand %vm2356_vm4, %vm2676_vm9  ;;  %v3875_v42 = vsel %vm2745_vm8, 1.0, %v7569_v1 }
 0x197   :  { %v2243_v60 = vpop.permute.xlu0 %2242  ;;  %v3870_v9 = vsel %vm2740_vm10, 1.0, %v7569_v1 }
 0x198   :  { %v2918_v41 = vpack.c.bf16 %v3871_v5, %v3870_v9  ;;  %v2228_v16 = vpop.permute.xlu1 %2227  ;;  %vm2363_vm14 = vcmp.eq.s32.totalorder %v2243_v60, %v6496_v33 }
 0x199   :  { %2323 = vperm.xlu1 %4374, %v6556_v51   ;;  %vm2358_vm7 = vcmp.eq.s32.totalorder %v2228_v16, %v6496_v33 }
 0x19a   :  { %4263 = vmatprep.mubr.msk.bf16.mxu1 %vm7756_vm12, %v2918_v41 }
 0x19b   :  { %v2563_v37 = vpop.permute.xlu0 %2562 }
 0x19c   :  { %v2548_v18 = vpop.permute.xlu1 %2547  ;;  %vm2683_vm10 = vcmp.eq.s32.totalorder %v2563_v37, 1 }
 0x19d   :  { %2643 = vperm.xlu1 %4374, %v2454_v46   ;;  %vm2678_vm5 = vcmp.eq.s32.totalorder %v2548_v18, 1  ;;  %vm2747_vm12 = vmand %vm2363_vm14, %vm2683_vm10 }
 0x19e   :  { %vm2742_vm6 = vmand %vm2358_vm7, %vm2678_vm5  ;;  %v3877_v26 = vsel %vm2747_vm12, 1.0, %v7569_v1 }
 0x19f   :  { %v2249_v17 = vpop.permute.xlu0 %2248  ;;  %v3872_v34 = vsel %vm2742_vm6, 1.0, %v7569_v1  ;;  %vm7759_vm6 = vmmov %vm7758_vm0 }
 0x1a0   :  { %v2919_v11 = vpack.c.bf16 %v3873_v50, %v3872_v34  ;;  %v2234_v61 = vpop.permute.xlu1 %2233  ;;  %vm2365_vm11 = vcmp.eq.s32.totalorder %v2249_v17, %v6496_v33 }
 0x1a1   :  { %vm2360_vm15 = vcmp.eq.s32.totalorder %v2234_v61, %v6496_v33 }
 0x1a2   :  { %4264 = vmatmul.mubr.msk.bf16.gmra.mrb[60].mxu1 %vm7757_vm13, %v2919_v11 }
 0x1a3   :  { %v2569_v51 = vpop.permute.xlu0 %2568 }
 0x1a4   :  { %v2554_v57 = vpop.permute.xlu1 %2553  ;;  %vm2685_vm5 = vcmp.eq.s32.totalorder %v2569_v51, 1 }
 0x1a5   :  { %vm2680_vm4 = vcmp.eq.s32.totalorder %v2554_v57, 1  ;;  %vm2749_vm13 = vmand %vm2365_vm11, %vm2685_vm5 }
 0x1a6   :  { %vm2744_vm9 = vmand %vm2360_vm15, %vm2680_vm4  ;;  %v3879_v2 = vsel %vm2749_vm13, 1.0, %v7569_v1 }
 0x1a7   :  { %v2255_v27 = vpop.permute.xlu0 %2254  ;;  %v3874_v43 = vsel %vm2744_vm9, 1.0, %v7569_v1  ;;  %vm7760_vm9 = vmmov %vm7758_vm0 }
 0x1a8   :  { %v2920_v7 = vpack.c.bf16 %v3875_v42, %v3874_v43  ;;  %v2240_v35 = vpop.permute.xlu1 %2239  ;;  %vm2367_vm10 = vcmp.eq.s32.totalorder %v2255_v27, %v6496_v33 }
 0x1a9   :  { %vm2362_vm1 = vcmp.eq.s32.totalorder %v2240_v35, %v6496_v33 }
 0x1aa   :  { %4267 = vmatprep.mubr.msk.bf16.mxu1 %vm7758_vm0, %v2920_v7 }
 0x1ab   :  { %v2575_v62 = vpop.permute.xlu0 %2574 }
 0x1ac   :  { %v2560_v29 = vpop.permute.xlu1 %2559  ;;  %vm2687_vm4 = vcmp.eq.s32.totalorder %v2575_v62, 1 }
 0x1ad   :  { %vm2682_vm3 = vcmp.eq.s32.totalorder %v2560_v29, 1  ;;  %vm2751_vm0 = vmand %vm2367_vm10, %vm2687_vm4 }
 0x1ae   :  { %vm2746_vm7 = vmand %vm2362_vm1, %vm2682_vm3  ;;  %v3881_v49 = vsel %vm2751_vm0, 1.0, %v7569_v1 }
 0x1af   :  { %v2261_v48 = vpop.permute.xlu0 %2260  ;;  %v3876_v3 = vsel %vm2746_vm7, 1.0, %v7569_v1  ;;  %vm7761_vm7 = vmmov %vm7759_vm6 }
 0x1b0   :  { %v2921_v28 = vpack.c.bf16 %v3877_v26, %v3876_v3  ;;  %v2246_v22 = vpop.permute.xlu1 %2245  ;;  %vm2369_vm5 = vcmp.eq.s32.totalorder %v2261_v48, %v6496_v33 }
 0x1b1   :  { %vm2364_vm2 = vcmp.eq.s32.totalorder %v2246_v22, %v6496_v33 }
 0x1b2   :  { %4268 = vmatmul.mubr.msk.bf16.gmra.mrb[64].mxu1 %vm7759_vm6, %v2921_v28 }
 0x1b3   :  { %v2581_v30 = vpop.permute.xlu0 %2580 }
 0x1b4   :  { %v2566_v14 = vpop.permute.xlu1 %2565  ;;  %vm2689_vm3 = vcmp.eq.s32.totalorder %v2581_v30, 1 }
 0x1b5   :  { %vm2684_vm8 = vcmp.eq.s32.totalorder %v2566_v14, 1  ;;  %vm2753_vm6 = vmand %vm2369_vm5, %vm2689_vm3 }
 0x1b6   :  { %vm2748_vm15 = vmand %vm2364_vm2, %vm2684_vm8  ;;  %v3883_v10 = vsel %vm2753_vm6, 1.0, %v7569_v1 }
 0x1b7   :  { %v2267_v44 = vpop.permute.xlu0 %2266  ;;  %v3878_v45 = vsel %vm2748_vm15, 1.0, %v7569_v1  ;;  %vm7762_vm15 = vmmov %vm7761_vm7 }
 0x1b8   :  { %v2922_v31 = vpack.c.bf16 %v3879_v2, %v3878_v45  ;;  %v2252_v15 = vpop.permute.xlu1 %2251  ;;  %vm2371_vm4 = vcmp.eq.s32.totalorder %v2267_v44, %v6496_v33 }
 0x1b9   :  { %vm2366_vm14 = vcmp.eq.s32.totalorder %v2252_v15, %v6496_v33 }
 0x1ba   :  { %4271 = vmatprep.mubr.msk.bf16.mxu1 %vm7760_vm9, %v2922_v31 }
 0x1bb   :  { %v2587_v13 = vpop.permute.xlu0 %2586 }
 0x1bc   :  { %v2572_v52 = vpop.permute.xlu1 %2571  ;;  %vm2691_vm8 = vcmp.eq.s32.totalorder %v2587_v13, 1 }
 0x1bd   :  { %vm2686_vm12 = vcmp.eq.s32.totalorder %v2572_v52, 1  ;;  %vm2755_vm9 = vmand %vm2371_vm4, %vm2691_vm8 }
 0x1be   :  { %vm2750_vm1 = vmand %vm2366_vm14, %vm2686_vm12  ;;  %v3885_v9 = vsel %vm2755_vm9, 1.0, %v7569_v1 }
 0x1bf   :  { %v2273_v53 = vpop.permute.xlu0 %2272  ;;  %v3880_v4 = vsel %vm2750_vm1, 1.0, %v7569_v1  ;;  %vm7763_vm1 = vmmov %vm7761_vm7 }
 0x1c0   :  { %v2923_v55 = vpack.c.bf16 %v3881_v49, %v3880_v4  ;;  %v2258_v38 = vpop.permute.xlu1 %2257  ;;  %vm2373_vm3 = vcmp.eq.s32.totalorder %v2273_v53, %v6496_v33 }
 0x1c1   :  { %vm2368_vm11 = vcmp.eq.s32.totalorder %v2258_v38, %v6496_v33 }
 0x1c2   :  { %4272 = vmatmul.mubr.msk.bf16.gmra.mrb[68].mxu1 %vm7761_vm7, %v2923_v55 }
 0x1c3   :  { %v2593_v36 = vpop.permute.xlu0 %2592 }
 0x1c4   :  { %v2578_v19 = vpop.permute.xlu1 %2577  ;;  %vm2693_vm12 = vcmp.eq.s32.totalorder %v2593_v36, 1 }
 0x1c5   :  { %vm2688_vm13 = vcmp.eq.s32.totalorder %v2578_v19, 1  ;;  %vm2757_vm7 = vmand %vm2373_vm3, %vm2693_vm12 }
 0x1c6   :  { %v6870_v25 = vpop.f32.mrb[0].mxu1  ;;  %vm2752_vm2 = vmand %vm2368_vm11, %vm2688_vm13  ;;  %v3887_v43 = vsel %vm2757_vm7, 1.0, %v7569_v1 }
 0x1c7   :  { %v6867_v56 = vpop.permute.xlu0 %2278  ;;  %v6872_v21 = vpop.f32.mrb[1].mxu1  ;;  %v3882_v58 = vsel %vm2752_vm2, 1.0, %v7569_v1  ;;  %vm7764_vm2 = vmmov %vm7763_vm1 }
 0x1c8   :  { %v6874_v12 = vpop.f32.mrb[0].mxu0  ;;  %v6878_v32 = vpop.f32.mrb[2].mxu1  ;;  %v2924_v6 = vpack.c.bf16 %v3883_v10, %v3882_v58  ;;  %vm2375_vm8 = vcmp.eq.s32.totalorder %v6867_v56, %v6496_v33 }
 0x1c9   :  { %v6880_v40 = vpop.f32.mrb[1].mxu0  ;;  %v6882_v47 = vpop.f32.mrb[3].mxu1 }
 0x1ca   :  { %v6884_v0 = vpop.f32.mrb[2].mxu0  ;;  %v2264_v54 = vpop.permute.xlu1 %2263  ;;  %4275 = vmatprep.mubr.msk.bf16.mxu1 %vm7762_vm15, %v2924_v6 }
 0x1cb   :  { %v6886_v24 = vpop.f32.mrb[3].mxu0  ;;  %v2599_v23 = vpop.permute.xlu0 %2598  ;;  %vm2370_vm10 = vcmp.eq.s32.totalorder %v2264_v54, %v6496_v33 }
 0x1cc   :  { %vm2695_vm13 = vcmp.eq.s32.totalorder %v2599_v23, 1 }
 0x1cd   :  { %vm2759_vm15 = vmand %vm2375_vm8, %vm2695_vm13 }
 0x1ce   :  { %v6890_v63 = vpop.f32.mrb[4].mxu1  ;;  %v2584_v39 = vpop.permute.xlu1 %2583  ;;  %v3889_v31 = vsel %vm2759_vm15, 1.0, %v7569_v1 }
 0x1cf   :  { %vm2690_vm0 = vcmp.eq.s32.totalorder %v2584_v39, 1  ;;  %v6893_v20 = vpop.f32.mrb[5].mxu1  ;;  %v6895_v59 = vpop.f32.mrb[4].mxu0 }
 0x1d0   :  { %vm2754_vm14 = vmand %vm2370_vm10, %vm2690_vm0  ;;  %v2285_v60 = vpop.permute.xlu0 %2284  ;;  %v6897_v5 = vpop.f32.mrb[6].mxu1 }
 0x1d1   :  { %v3884_v41 = vsel %vm2754_vm14, 1.0, %v7569_v1  ;;  %v6901_v16 = vpop.f32.mrb[5].mxu0  ;;  %v6903_v37 = vpop.f32.mrb[7].mxu1  ;;  %vm7765_vm14 = vmmov %vm7763_vm1  ;;  %vm2377_vm12 = vcmp.eq.s32.totalorder %v2285_v60, %v6496_v33 }
 0x1d2   :  { %v2925_v46 = vpack.c.bf16 %v3885_v9, %v3884_v41  ;;  %v6905_v18 = vpop.f32.mrb[6].mxu0  ;;  %v2270_v17 = vpop.permute.xlu1 %2269 }
 0x1d3   :  { %v6907_v50 = vpop.f32.mrb[7].mxu0  ;;  %vm2372_vm5 = vcmp.eq.s32.totalorder %v2270_v17, %v6496_v33 }
 0x1d4   :  { %v2605_v34 = vpop.permute.xlu0 %2604  ;;  %4276 = vmatmul.mubr.msk.bf16.gmra.mrb[72].mxu1 %vm7763_vm1, %v2925_v46 }
 0x1d5   :  { %vm2697_vm0 = vcmp.eq.s32.totalorder %v2605_v34, 1 }
 0x1d6   :  { %v2590_v61 = vpop.permute.xlu1 %2589  ;;  %vm2761_vm1 = vmand %vm2377_vm12, %vm2697_vm0 }
 0x1d7   :  { %v6911_v11 = vpop.f32.mrb[8].mxu1  ;;  %vm2692_vm6 = vcmp.eq.s32.totalorder %v2590_v61, 1  ;;  %v6916_v57 = vpop.f32.mrb[8].mxu0  ;;  %v3891_v54 = vsel %vm2761_vm1, 1.0, %v7569_v1 }
 0x1d8   :  { %v6914_v51 = vpop.f32.mrb[9].mxu1  ;;  %vm2756_vm11 = vmand %vm2372_vm5, %vm2692_vm6  ;;  %v2291_v27 = vpop.permute.xlu0 %2290 }
 0x1d9   :  { %v6918_v42 = vpop.f32.mrb[10].mxu1  ;;  %v3886_v7 = vsel %vm2756_vm11, 1.0, %v7569_v1  ;;  %v6922_v35 = vpop.f32.mrb[9].mxu0  ;;  %vm7766_vm11 = vmmov %vm7764_vm2  ;;  %vm2379_vm13 = vcmp.eq.s32.totalorder %v2291_v27, %v6496_v33 }
 0x1da   :  { %v6924_v62 = vpop.f32.mrb[11].mxu1  ;;  %v2926_v29 = vpack.c.bf16 %v3887_v43, %v3886_v7  ;;  %v6926_v48 = vpop.f32.mrb[10].mxu0 }
 0x1db   :  { %v2276_v26 = vpop.permute.xlu1 %2275  ;;  %v6928_v3 = vpop.f32.mrb[11].mxu0 }
 0x1dc   :  { %v2611_v28 = vpop.permute.xlu0 %2610  ;;  %4279 = vmatprep.mubr.msk.bf16.mxu1 %vm7764_vm2, %v2926_v29  ;;  %vm2374_vm4 = vcmp.eq.s32.totalorder %v2276_v26, %v6496_v33 }
 0x1dd   :  { %vm2699_vm6 = vcmp.eq.s32.totalorder %v2611_v28, 1 }
 0x1de   :  { %vm2763_vm2 = vmand %vm2379_vm13, %vm2699_vm6 }
 0x1df   :  { %v6933_v22 = vpop.f32.mrb[12].mxu1  ;;  %v2596_v30 = vpop.permute.xlu1 %2595 }
 0x1e0   :  { %vm2694_vm9 = vcmp.eq.s32.totalorder %v2596_v30, 1  ;;  %v6936_v14 = vpop.f32.mrb[13].mxu1  ;;  %v6938_v44 = vpop.f32.mrb[12].mxu0  ;;  %v3893_v30 = vsel %vm2763_vm2, 1.0, %v7569_v1 }
 0x1e1   :  { %vm2758_vm10 = vmand %vm2374_vm4, %vm2694_vm9  ;;  %v2297_v2 = vpop.permute.xlu0 %2296  ;;  %v6940_v45 = vpop.f32.mrb[14].mxu1 }
 0x1e2   :  { %v3888_v15 = vsel %vm2758_vm10, 1.0, %v7569_v1  ;;  %v6944_v13 = vpop.f32.mrb[13].mxu0  ;;  %v6946_v52 = vpop.f32.mrb[15].mxu1  ;;  %vm7771_vm10 = vmmov %vm7766_vm11  ;;  %vm2381_vm0 = vcmp.eq.s32.totalorder %v2297_v2, %v6496_v33 }
 0x1e3   :  { %v2927_v53 = vpack.c.bf16 %v3889_v31, %v3888_v15  ;;  %v6948_v49 = vpop.f32.mrb[14].mxu0  ;;  %v2282_v4 = vpop.permute.xlu1 %2281 }
 0x1e4   :  { %v6950_v55 = vpop.f32.mrb[15].mxu0  ;;  %vm2376_vm3 = vcmp.eq.s32.totalorder %v2282_v4, %v6496_v33 }
 0x1e5   :  { %v2617_v38 = vpop.permute.xlu0 %2616  ;;  %4280 = vmatmul.mubr.msk.bf16.gmra.mrb[76].mxu1 %vm7765_vm14, %v2927_v53 }
 0x1e6   :  { %vm2701_vm9 = vcmp.eq.s32.totalorder %v2617_v38, 1 }
 0x1e7   :  { %v6954_v36 = vpop.f32.mrb[16].mxu1  ;;  %v2602_v19 = vpop.permute.xlu1 %2601  ;;  %vm2765_vm14 = vmand %vm2381_vm0, %vm2701_vm9 }
 0x1e8   :  { %vm2696_vm7 = vcmp.eq.s32.totalorder %v2602_v19, 1  ;;  %v6957_v56 = vpop.f32.mrb[17].mxu1  ;;  %v6959_v10 = vpop.f32.mrb[16].mxu0 }
 0x1e9   :  { %vm2760_vm5 = vmand %vm2376_vm3, %vm2696_vm7  ;;  %v6961_v58 = vpop.permute.xlu0 %2302  ;;  %v6963_v6 = vpop.f32.mrb[18].mxu1 }
 0x1ea   :  { %v3890_v23 = vsel %vm2760_vm5, 1.0, %v7569_v1  ;;  %v6967_v39 = vpop.f32.mrb[17].mxu0  ;;  %v6969_v60 = vpop.f32.mrb[19].mxu1  ;;  %vm7776_vm5 = vmmov %vm7771_vm10  ;;  %vm2383_vm6 = vcmp.eq.s32.totalorder %v6961_v58, %v6496_v33  ;;  %v1558_v58 = vmax.f32 %v6901_v16, 1.1754944e-38 }
 0x1eb   :  { %v2928_v9 = vpack.c.bf16 %v3891_v54, %v3890_v23  ;;  %v6971_v41 = vpop.f32.mrb[18].mxu0  ;;  %v2288_v46 = vpop.permute.xlu1 %2287 }
 0x1ec   :  { %v6973_v17 = vpop.f32.mrb[19].mxu0  ;;  %vm2378_vm8 = vcmp.eq.s32.totalorder %v2288_v46, %v6496_v33  ;;  %v1554_v46 = vmax.f32 %v6880_v40, 1.1754944e-38  ;;  %v3895_v40 = vsel %vm2765_vm14, 1.0, %v7569_v1 }
 0x1ed   :  { %v2623_v34 = vpop.permute.xlu0 %2622  ;;  %4283 = vmatprep.mubr.msk.bf16.mxu1 %vm7766_vm11, %v2928_v9  ;;  %v1556_v9 = vmax.f32 %v6874_v12, 1.1754944e-38 }
 0x1ee   :  { %vm2703_vm7 = vcmp.eq.s32.totalorder %v2623_v34, 1 }
 0x1ef   :  { %v6977_v61 = vpop.f32.mrb[20].mxu1  ;;  %v2608_v43 = vpop.permute.xlu1 %2607  ;;  %4503 = vlog2.f32 %v1556_v9  ;;  %vm2767_vm11 = vmand %vm2383_vm6, %vm2703_vm7 }
 0x1f0   :  { %vm2698_vm15 = vcmp.eq.s32.totalorder %v2608_v43, 1  ;;  %v6980_v7 = vpop.f32.mrb[21].mxu1  ;;  %v6982_v29 = vpop.f32.mrb[20].mxu0  ;;  %4505 = vlog2.f32 %v1554_v46 }
 0x1f1   :  { %7767 = vst [vmem:[#allocation82_spill] sm:$0xff] %v6982_v29  ;;  %vm2762_vm4 = vmand %vm2378_vm8, %vm2698_vm15  ;;  %v6984_v26 = vpop.permute.xlu0 %2308  ;;  %v6986_v28 = vpop.f32.mrb[22].mxu1  ;;  %v1564_v29 = vmax.f32 %v6916_v57, 1.1754944e-38 }
 0x1f2   :  { %v3892_v27 = vsel %vm2762_vm4, 1.0, %v7569_v1  ;;  %v6990_v31 = vpop.f32.mrb[21].mxu0  ;;  %v6992_v15 = vpop.f32.mrb[23].mxu1  ;;  %vm7785_vm4 = vmmov %vm7776_vm5  ;;  %vm2385_vm9 = vcmp.eq.s32.totalorder %v6984_v26, %v6496_v33 }
 0x1f3   :  { %7768 = vst [vmem:[#allocation78_spill] sm:$0xff] %v6990_v31  ;;  %v2929_v53 = vpack.c.bf16 %v3893_v30, %v3892_v27  ;;  %v6994_v4 = vpop.f32.mrb[22].mxu0  ;;  %v2294_v19 = vpop.permute.xlu1 %2293  ;;  %v1557_v27 = vmax.f32 %v6884_v0, 1.1754944e-38 }
 0x1f4   :  { %7769 = vst [vmem:[#allocation70_spill] sm:$0xff] %v6994_v4  ;;  %v6996_v54 = vpop.f32.mrb[23].mxu0  ;;  %vm2380_vm12 = vcmp.eq.s32.totalorder %v2294_v19, %v6496_v33  ;;  %v1555_v19 = vmax.f32 %v6886_v24, 1.1754944e-38 }
 0x1f5   :  { %7770 = vst [vmem:[#allocation25_spill] sm:$0xff] %v6996_v54  ;;  %v6998_v23 = vpop.permute.xlu0 %2628  ;;  %4284 = vmatmul.mubr.msk.bf16.gmra.mrb[80].mxu1 %vm7771_vm10, %v2929_v53  ;;  %4507 = vlog2.f32 %v1557_v27 }
 0x1f6   :  { %4509 = vlog2.f32 %v1555_v19  ;;  %v3897_v19 = vsel %vm2767_vm11, 1.0, %v7569_v1  ;;  %vm2705_vm15 = vcmp.eq.s32.totalorder %v6998_v23, 1 }
 0x1f7   :  { %v7004_v43 = vpop.f32.mrb[24].mxu1  ;;  %v2614_v30 = vpop.permute.xlu1 %2613  ;;  %vm2769_vm10 = vmand %vm2385_vm9, %vm2705_vm15 }
 0x1f8   :  { %vm2700_vm1 = vcmp.eq.s32.totalorder %v2614_v30, 1  ;;  %v7008_v38 = vpop.f32.mrb[25].mxu1  ;;  %v7010_v8 = vpop.f32.mrb[24].mxu0 }
 0x1f9   :  { %7772 = vst [vmem:[#allocation75_spill] sm:$0xff] %v7010_v8  ;;  %vm2764_vm3 = vmand %vm2380_vm12, %vm2700_vm1  ;;  %v7012_v53 = vpop.permute.xlu0 %2314  ;;  %v7014_v12 = vpop.f32.mrb[26].mxu1 }
 0x1fa   :  { %v3894_v2 = vsel %vm2764_vm3, 1.0, %v7569_v1  ;;  %v7018_v54 = vpop.f32.mrb[25].mxu0  ;;  %v7020_v0 = vpop.f32.mrb[27].mxu1  ;;  %vm7790_vm3 = vmmov %vm7785_vm4  ;;  %vm2387_vm7 = vcmp.eq.s32.totalorder %v7012_v53, %v6496_v33  ;;  %v1562_v53 = vmax.f32 %v6922_v35, 1.1754944e-38  ;;  %v1565_v35 = vmax.f32 %v6926_v48, 1.1754944e-38 }
 0x1fb   :  { %7773 = vst [vmem:[#allocation80_spill] sm:$0xff] %v7018_v54  ;;  %v2930_v30 = vpack.c.bf16 %v3895_v40, %v3894_v2  ;;  %v7023_v4 = vpop.f32.mrb[26].mxu0  ;;  %v2300_v8 = vpop.permute.xlu1 %2299  ;;  %v1560_v40 = vmax.f32 %v6895_v59, 1.1754944e-38  ;;  %vm7796_vm15 = vmmov %vm7790_vm3 }
 0x1fc   :  { %7774 = vst [vmem:[#allocation79_spill] sm:$0xff] %v7023_v4  ;;  %v7025_v31 = vpop.f32.mrb[27].mxu0  ;;  %vm2382_vm13 = vcmp.eq.s32.totalorder %v2300_v8, %v6496_v33  ;;  %v4504_v54 = vpop.eup %4503 }
 0x1fd   :  { %7775 = vst [vmem:[#allocation81_spill] sm:$0xff] %v7025_v31  ;;  %4287 = vmatprep.mubr.msk.bf16.mxu1 %vm7776_vm5, %v2930_v30  ;;  %v7030_v9 = vpop.permute.xlu0 %2634  ;;  %4511 = vlog2.f32 %v1560_v40  ;;  %v4506_v16 = vpop.eup %4505 }
 0x1fe   :  { %4513 = vlog2.f32 %v1558_v58  ;;  %vm2707_vm1 = vcmp.eq.s32.totalorder %v7030_v9, 1 }
 0x1ff   :  { %v7032_v46 = vpop.f32.mrb[28].mxu1  ;;  %v2620_v24 = vpop.permute.xlu1 %2619  ;;  %vm7086_vm5 = vmand %vm2387_vm7, %vm2707_vm1 }
 0x200   :  { %7777 = vst [vmem:[#allocation83_spill] sm:$0xff] %v7032_v46  ;;  %vm2702_vm2 = vcmp.eq.s32.totalorder %v2620_v24, 1  ;;  %v7036_v34 = vpop.f32.mrb[29].mxu1  ;;  %v7038_v27 = vpop.f32.mrb[28].mxu0 }
 0x201   :  { %7778 = vst [vmem:[#allocation84_spill] sm:$0xff] %v7036_v34  ;;  %7779 = vst [vmem:[#allocation85_spill] sm:$0xff] %v7038_v27  ;;  %v7040_v2 = vpop.f32.mrb[30].mxu1  ;;  %v7045_v31 = vpop.f32.mrb[29].mxu0  ;;  %v1561_v34 = vmax.f32 %v6905_v18, 1.1754944e-38 }
 0x202   :  { %vm2766_vm8 = vmand %vm2382_vm13, %vm2702_vm2  ;;  %7780 = vst [vmem:[#allocation86_spill] sm:$0xff] %v7040_v2  ;;  %v7047_v4 = vpop.f32.mrb[31].mxu1  ;;  %v7049_v8 = vpop.f32.mrb[30].mxu0 }
 0x203   :  { %v3896_v30 = vsel %vm2766_vm8, 1.0, %v7569_v1  ;;  %7781 = vst [vmem:[#allocation87_spill] sm:$0xff] %v7045_v31  ;;  %7782 = vst [vmem:[#allocation88_spill] sm:$0xff] %v7047_v4  ;;  %v2306_v24 = vpop.permute.xlu1 %2305  ;;  %v7052_v27 = vpop.permute.xlu0 %2320  ;;  %4515 = vlog2.f32 %v1561_v34 }
 0x204   :  { %v2931_v59 = vpack.c.bf16 %v3897_v19, %v3896_v30  ;;  %7783 = vst [vmem:[#allocation89_spill] sm:$0xff] %v7049_v8  ;;  %v7054_v2 = vpop.f32.mrb[31].mxu0  ;;  %v4508_v31 = vpop.eup %4507  ;;  %v1559_v19 = vmax.f32 %v6907_v50, 1.1754944e-38  ;;  %v1623_v30 = vmul.f32 0.6931472, %v4504_v54  ;;  %vm2384_vm0 = vcmp.eq.s32.totalorder %v2306_v24, %v6496_v33  ;;  %vm7795_vm8 = vmmov %vm7790_vm3 }
 0x205   :  { %7784 = vst [vmem:[#allocation90_spill] sm:$0xff] %v7054_v2  ;;  %v4510_v2 = vpop.eup %4509  ;;  %v1619_v8 = vmul.f32 0.6931472, %v4506_v16  ;;  %v1625_v4 = vmul.f32 0.6931472, %v4508_v31  ;;  %v3899_v50 = vsel %vm2769_vm10, 1.0, %v7569_v1  ;;  %vm2389_vm9 = vcmp.eq.s32.totalorder %v7052_v27, %v6496_v33  ;;  %vm7798_vm10 = vmmov %vm7790_vm3 }
 0x206   :  { %4288 = vmatmul.mubr.msk.bf16.gmra.mrb[84].mxu1 %vm7785_vm4, %v2931_v59  ;;  %4517 = vlog2.f32 %v1559_v19  ;;  %vm7797_vm4 = vmmov %vm7790_vm3 }
 0x207   :  { %v2626_v40 = vpop.permute.xlu1 %2625  ;;  %v7066_v26 = vpop.permute.xlu0 %2640  ;;  %4519 = vlog2.f32 %v1564_v29 }
 0x208   :  { %vm2704_vm14 = vcmp.eq.s32.totalorder %v2626_v40, 1  ;;  %v4203_v23 = vpop.f32.mrb[32].mxu0  ;;  %vm2709_vm2 = vcmp.eq.s32.totalorder %v7066_v26, 1  ;;  %4521 = vlog2.f32 %v1562_v53 }
 0x209   :  { %vm2768_vm12 = vmand %vm2384_vm0, %vm2704_vm14  ;;  %v7063_v18 = vadd.f32 %v4203_v23, %v6870_v25  ;;  %v1427_v58 = vpop.f32.mrb[33].mxu0  ;;  %v7788_v25 = vld [vmem:[#allocation12_spill] sm:$0xff]  ;;  %v4237_v46 = vpop.f32.mrb[32].mxu1  ;;  %4523 = vlog2.f32 %v1565_v35 }
 0x20a   :  { %v3898_v54 = vsel %vm2768_vm12, 1.0, %v7569_v1  ;;  %v7070_v59 = vadd.f32 %v1427_v58, %v6872_v21  ;;  %v4204_v24 = vpop.f32.mrb[34].mxu0  ;;  %v1748_v23 = vsub.f32 %v7788_v25, %v1623_v30  ;;  %v7789_v58 = vld [vmem:[#allocation13_spill] sm:$0xff]  ;;  %vm7123_vm0 = vmand %vm2389_vm9, %vm2709_vm2 }
 0x20b   :  { %7786 = vst [vmem:[#allocation91_spill] sm:$0xff] %v7063_v18  ;;  %v2932_v40 = vpack.c.bf16 %v3899_v50, %v3898_v54  ;;  %v7073_v31 = vadd.f32 %v4204_v24, %v6878_v32  ;;  %v1430_v34 = vpop.f32.mrb[35].mxu0  ;;  %v2312_v16 = vpop.permute.xlu1 %2311  ;;  %v1621_v18 = vmul.f32 0.6931472, %v4510_v2  ;;  %v7791_v32 = vld [vmem:[#allocation15_spill] sm:$0xff]  ;;  %vm7803_vm14 = vmmov %vm7790_vm3 }
 0x20c   :  { %7787 = vst [vmem:[#allocation92_spill] sm:$0xff] %v7070_v59  ;;  %v7078_v19 = vadd.f32 %v1430_v34, %v6882_v47  ;;  %v3328_v21 = vmul.f32 %v4237_v46, %v1748_v23  ;;  %v1746_v59 = vsub.f32 %v7789_v58, %v1619_v8  ;;  %v3070_v50 = vpop.f32.mrb[33].mxu1  ;;  %v1749_v54 = vsub.f32 %v7791_v32, %v1625_v4  ;;  %v4512_v24 = vpop.eup %4511 }
 0x20d   :  { %4291 = vmatprep.mubr.msk.bf16.mxu1 %vm7790_vm3, %v2932_v40  ;;  %v4238_v2 = vpop.f32.mrb[34].mxu1  ;;  %v4514_v34 = vpop.eup %4513  ;;  %vm2386_vm6 = vcmp.eq.s32.totalorder %v2312_v16, %v6496_v33  ;;  %v7794_v40 = vld [vmem:[#allocation16_spill] sm:$0xff]  ;;  %v1631_v23 = vmul.f32 0.6931472, %v4512_v24 }
 0x20e   :  { %v3326_v47 = vmul.f32 %v3070_v50, %v1746_v59  ;;  %v3329_v30 = vmul.f32 %v4238_v2, %v1749_v54  ;;  %v3073_v46 = vpop.f32.mrb[35].mxu1  ;;  %v7090_v8 = vpop.permute.xlu0 %2326  ;;  %v1747_v25 = vsub.f32 %v7794_v40, %v1621_v18  ;;  %v3901_v50 = vsel %vm7086_vm5, 1.0, %v7569_v1  ;;  %vm7806_vm5 = vmmov %vm7797_vm4 }
 0x20f   :  { %v2632_v57 = vpop.permute.xlu1 %2631  ;;  %v4516_v24 = vpop.eup %4515  ;;  %v1627_v29 = vmul.f32 0.6931472, %v4514_v34  ;;  %v1563_v34 = vmax.f32 %v6928_v3, 1.1754944e-38  ;;  %vm7809_vm9 = vmmov %vm7806_vm5 }
 0x210   :  { %vm2706_vm11 = vcmp.eq.s32.totalorder %v2632_v57, 1  ;;  %v4207_v4 = vpop.f32.mrb[36].mxu0  ;;  %v3327_v16 = vmul.f32 %v3073_v46, %v1747_v25  ;;  %v4518_v40 = vpop.eup %4517  ;;  %v3390_v9 = vsel %vm7795_vm8, %v3326_v47, 0.0  ;;  %v3395_v27 = vsel %vm7803_vm14, %v3329_v30, 0.0  ;;  %vm7808_vm8 = vmmov %vm7797_vm4 }
 0x211   :  { %vm2770_vm13 = vmand %vm2386_vm6, %vm2706_vm11  ;;  %v7096_v58 = vadd.f32 %v4207_v4, %v6890_v63  ;;  %v1443_v59 = vpop.f32.mrb[37].mxu0  ;;  %4525 = vlog2.f32 %v1563_v34  ;;  %vm2391_vm11 = vcmp.eq.s32.totalorder %v7090_v8, %v6496_v33 }
 0x212   :  { %v3900_v32 = vsel %vm2770_vm13, 1.0, %v7569_v1  ;;  %v7103_v54 = vadd.f32 %v1443_v59, %v6893_v20  ;;  %v4208_v18 = vpop.f32.mrb[38].mxu0  ;;  %v3391_v46 = vsel %vm7796_vm15, %v3327_v16, 0.0  ;;  %v2647_v25 = vpop.permute.xlu0 %2646  ;;  %v3393_v59 = vsel %vm7798_vm10, %v3328_v21, 0.0  ;;  %vm7807_vm6 = vmmov %vm7797_vm4 }
 0x213   :  { %v2933_v2 = vpack.c.bf16 %v3901_v50, %v3900_v32  ;;  %v7107_v63 = vadd.f32 %v4208_v18, %v6897_v5  ;;  %v1446_v57 = vpop.f32.mrb[39].mxu0  ;;  %v2318_v4 = vpop.permute.xlu1 %2317  ;;  %v3392_v48 = vadd.f32 %v3391_v46, %v3390_v9  ;;  %v1633_v5 = vmul.f32 0.6931472, %v4516_v24  ;;  %v7799_v50 = vld [vmem:[#allocation24_spill] sm:$0xff]  ;;  %v7802_v18 = vld [vmem:[#allocation19_spill] sm:$0xff]  ;;  %vm7810_vm10 = vmmov %vm7806_vm5 }
 0x214   :  { %v7113_v20 = vadd.f32 %v1446_v57, %v6903_v37  ;;  %v1752_v47 = vsub.f32 %v7799_v50, %v1631_v23  ;;  %v1629_v32 = vmul.f32 0.6931472, %v4518_v40  ;;  %v1750_v24 = vsub.f32 %v7802_v18, %v1627_v29  ;;  %v4520_v50 = vpop.eup %4519 }
 0x215   :  { %4292 = vmatmul.mubr.msk.bf16.gmra.mrb[88].mxu1 %vm7797_vm4, %v2933_v2  ;;  %v3394_v3 = vadd.f32 %v3393_v59, %v3392_v48  ;;  %v4241_v16 = vpop.f32.mrb[36].mxu1  ;;  %vm2388_vm12 = vcmp.eq.s32.totalorder %v2318_v4, %v6496_v33  ;;  %v3903_v29 = vsel %vm7123_vm0, 1.0, %v7569_v1  ;;  %v7804_v48 = vld [vmem:[#allocation23_spill] sm:$0xff]  ;;  %vm2711_vm7 = vcmp.eq.s32.totalorder %v2647_v25, 1  ;;  %vm7811_vm0 = vmmov %vm7806_vm5 }
 0x216   :  { %v3332_v23 = vmul.f32 %v4241_v16, %v1752_v47  ;;  %v3086_v2 = vpop.f32.mrb[37].mxu1  ;;  %v1753_v34 = vsub.f32 %v7804_v48, %v1633_v5  ;;  %v7805_v16 = vld [vmem:[#allocation18_spill] sm:$0xff]  ;;  %vm2775_vm13 = vmand %vm2391_vm11, %vm2711_vm7 }
 0x217   :  { %v2638_v53 = vpop.permute.xlu1 %2637  ;;  %v3330_v57 = vmul.f32 %v3086_v2, %v1750_v24  ;;  %v3396_v40 = vadd.f32 %v3395_v27, %v3394_v3  ;;  %v4242_v9 = vpop.f32.mrb[38].mxu1  ;;  %v1751_v18 = vsub.f32 %v7805_v16, %v1629_v32  ;;  %v1568_v2 = vmax.f32 %v6938_v44, 1.1754944e-38  ;;  %vm7815_vm14 = vmmov %vm7811_vm0 }
 0x218   :  { %vm2708_vm1 = vcmp.eq.s32.totalorder %v2638_v53, 1  ;;  %v4211_v21 = vpop.f32.mrb[40].mxu0  ;;  %v3089_v59 = vpop.f32.mrb[39].mxu1  ;;  %v3401_v44 = vsel %vm7809_vm9, %v3332_v23, 0.0  ;;  %v1567_v16 = vmax.f32 %v6950_v55, 1.1754944e-38  ;;  %vm7823_vm7 = vmmov %vm7811_vm0 }
 0x219   :  { %vm2772_vm3 = vmand %vm2388_vm12, %vm2708_vm1  ;;  %v7131_v26 = vadd.f32 %v4211_v21, %v6911_v11  ;;  %v1459_v35 = vpop.f32.mrb[41].mxu0  ;;  %v3397_v37 = vsel %vm7806_vm5, %v3330_v57, 0.0  ;;  %v3331_v5 = vmul.f32 %v3089_v59, %v1751_v18  ;;  %v1566_v57 = vmax.f32 %v6944_v13, 1.1754944e-38 }
 0x21a   :  { %v3902_v30 = vsel %vm2772_vm3, 1.0, %v7569_v1  ;;  %v7138_v4 = vadd.f32 %v1459_v35, %v6914_v51  ;;  %v4212_v46 = vpop.f32.mrb[42].mxu0  ;;  %v3333_v51 = vmul.f32 %v4242_v9, %v1753_v34  ;;  %v3398_v27 = vadd.f32 %v3397_v37, %v3396_v40  ;;  %vm7817_vm12 = vmmov %vm7811_vm0 }
 0x21b   :  { %v2934_v11 = vpack.c.bf16 %v3903_v29, %v3902_v30  ;;  %v7142_v47 = vadd.f32 %v4212_v46, %v6918_v42  ;;  %v1462_v3 = vpop.f32.mrb[43].mxu0  ;;  %v2324_v53 = vpop.permute.xlu1 %2323  ;;  %v3399_v25 = vsel %vm7808_vm8, %v3331_v5, 0.0  ;;  %v1639_v35 = vmul.f32 0.6931472, %v4520_v50  ;;  %v7813_v5 = vld [vmem:[#allocation27_spill] sm:$0xff]  ;;  %vm7818_vm1 = vmmov %vm7811_vm0 }
 0x21c   :  { %v7147_v24 = vadd.f32 %v1462_v3, %v6924_v62  ;;  %v4522_v42 = vpop.eup %4521  ;;  %vm2390_vm2 = vcmp.eq.s32.totalorder %v2324_v53, %v6496_v33  ;;  %v3400_v40 = vadd.f32 %v3399_v25, %v3398_v27  ;;  %v3905_v29 = vsel %vm2775_vm13, 1.0, %v7569_v1  ;;  %v7814_v25 = vld [vmem:[#allocation31_spill] sm:$0xff]  ;;  %vm7819_vm3 = vmmov %vm7811_vm0 }
 0x21d   :  { %4295 = vmatprep.mubr.msk.bf16.mxu1 %vm7807_vm6, %v2934_v11  ;;  %v4524_v32 = vpop.eup %4523  ;;  %v1635_v34 = vmul.f32 0.6931472, %v4522_v42  ;;  %v1569_v13 = vmax.f32 %v6948_v49, 1.1754944e-38  ;;  %v3403_v3 = vsel %vm7810_vm10, %v3333_v51, 0.0  ;;  %4527 = vlog2.f32 %v1568_v2  ;;  %v7812_v49 = vld [vmem:[#allocation32_spill] sm:$0xff]  ;;  %vm7825_vm5 = vmmov %vm7811_vm0 }
 0x21e   :  { %v4526_v48 = vpop.eup %4525  ;;  %v3402_v59 = vadd.f32 %v3401_v44, %v3400_v40  ;;  %4529 = vlog2.f32 %v1566_v57  ;;  %v1756_v18 = vsub.f32 %v7812_v49, %v1639_v35  ;;  %vm7827_vm6 = vmmov %vm7811_vm0 }
 0x21f   :  { %v2644_v21 = vpop.permute.xlu1 %2643  ;;  %v1637_v37 = vmul.f32 0.6931472, %v4526_v48  ;;  %4531 = vlog2.f32 %v1569_v13  ;;  %v1754_v51 = vsub.f32 %v7813_v5, %v1635_v34  ;;  %vm7832_vm11 = vmmov %vm7811_vm0 }
 0x220   :  { %vm2710_vm15 = vcmp.eq.s32.totalorder %v2644_v21, 1  ;;  %v4215_v62 = vpop.f32.mrb[44].mxu0  ;;  %4533 = vlog2.f32 %v1567_v16  ;;  %vm7840_vm13 = vmmov %vm7811_vm0 }
 0x221   :  { %vm2774_vm4 = vmand %vm2390_vm2, %vm2710_vm15  ;;  %v7157_v8 = vadd.f32 %v4215_v62, %v6933_v22  ;;  %v1475_v9 = vpop.f32.mrb[45].mxu0  ;;  %v1641_v22 = vmul.f32 0.6931472, %v4524_v32 }
 0x222   :  { %v3904_v33 = vsel %vm2774_vm4, 1.0, %v7569_v1  ;;  %v7163_v30 = vadd.f32 %v1475_v9, %v6936_v14  ;;  %v4216_v46 = vpop.f32.mrb[46].mxu0  ;;  %v3404_v14 = vadd.f32 %v3403_v3, %v3402_v59  ;;  %vm7841_vm2 = vmmov %vm7811_vm0 }
 0x223   :  { %v2935_v50 = vpack.c.bf16 %v3905_v29, %v3904_v33  ;;  %v1478_v11 = vpop.f32.mrb[47].mxu0  ;;  %v7168_v53 = vadd.f32 %v4216_v46, %v6940_v45  ;;  %v7816_v46 = vld [vmem:[#allocation26_spill] sm:$0xff]  ;;  %vm7842_vm8 = vmmov %vm7811_vm0 }
 0x224   :  { %v7171_v23 = vadd.f32 %v1478_v11, %v6946_v52  ;;  %v1757_v52 = vsub.f32 %v7814_v25, %v1641_v22  ;;  %v1755_v48 = vsub.f32 %v7816_v46, %v1637_v37  ;;  %vm7844_vm15 = vmmov %vm7811_vm0 }
 0x225   :  { %4296 = vmatmul.mubr.msk.bf16.gmra.mrb[92].mxu1 %vm7811_vm0, %v2935_v50  ;;  %v4245_v27 = vpop.f32.mrb[40].mxu1  ;;  %vm7852_vm4 = vmmov %vm7811_vm0 }
 0x226   :  { %v3336_v45 = vmul.f32 %v4245_v27, %v1756_v18  ;;  %v3102_v21 = vpop.f32.mrb[41].mxu1  ;;  %vm7853_vm9 = vmmov %vm7811_vm0 }
 0x227   :  { %v3334_v32 = vmul.f32 %v3102_v21, %v1754_v51  ;;  %v4246_v57 = vpop.f32.mrb[42].mxu1  ;;  %v4528_v59 = vpop.eup %4527  ;;  %vm7854_vm10 = vmmov %vm7811_vm0 }
 0x228   :  { %v4219_v42 = vpop.f32.mrb[48].mxu0  ;;  %v3337_v40 = vmul.f32 %v4246_v57, %v1757_v52  ;;  %v3105_v9 = vpop.f32.mrb[43].mxu1  ;;  %v3409_v16 = vsel %vm7818_vm1, %v3336_v45, 0.0  ;;  %v1571_v52 = vmax.f32 %v6973_v17, 1.1754944e-38  ;;  %vm7865_vm1 = vmmov %vm7811_vm0 }
 0x229   :  { %v7179_v2 = vadd.f32 %v4219_v42, %v6954_v36  ;;  %v1491_v62 = vpop.f32.mrb[49].mxu0  ;;  %v3405_v44 = vsel %vm7815_vm14, %v3334_v32, 0.0  ;;  %v3335_v13 = vmul.f32 %v3105_v9, %v1755_v48  ;;  %v4530_v50 = vpop.eup %4529  ;;  %v1573_v42 = vmax.f32 %v6971_v41, 1.1754944e-38  ;;  %vm7863_vm14 = vmmov %vm7811_vm0 }
 0x22a   :  { %v7182_v55 = vadd.f32 %v1491_v62, %v6957_v56  ;;  %v4220_v35 = vpop.f32.mrb[50].mxu0  ;;  %v3406_v36 = vadd.f32 %v3405_v44, %v3404_v14  ;;  %v4532_v3 = vpop.eup %4531  ;;  %v1647_v14 = vmul.f32 0.6931472, %v4528_v59  ;;  %v1643_v51 = vmul.f32 0.6931472, %v4530_v50 }
 0x22b   :  { %v7185_v29 = vadd.f32 %v4220_v35, %v6963_v6  ;;  %v1494_v33 = vpop.f32.mrb[51].mxu0  ;;  %v3407_v56 = vsel %vm7817_vm12, %v3335_v13, 0.0  ;;  %v1572_v6 = vmax.f32 %v6959_v10, 1.1754944e-38  ;;  %v3411_v21 = vsel %vm7819_vm3, %v3337_v40, 0.0  ;;  %v7821_v35 = vld [vmem:[#allocation34_spill] sm:$0xff]  ;;  %vm7864_vm12 = vmmov %vm7811_vm0 }
 0x22c   :  { %v7190_v34 = vadd.f32 %v1494_v33, %v6969_v60  ;;  %v3408_v11 = vadd.f32 %v3407_v56, %v3406_v36  ;;  %v1570_v60 = vmax.f32 %v6967_v39, 1.1754944e-38  ;;  %v1649_v25 = vmul.f32 0.6931472, %v4532_v3  ;;  %v7822_v33 = vld [vmem:[#allocation35_spill] sm:$0xff]  ;;  %vm7867_vm3 = vmmov %vm7811_vm0 }
 0x22d   :  { %4535 = vlog2.f32 %v1572_v6  ;;  %v1758_v40 = vsub.f32 %v7821_v35, %v1643_v51  ;;  %v7824_v6 = vld [vmem:[#allocation33_spill] sm:$0xff] }
 0x22e   :  { %v3410_v37 = vadd.f32 %v3409_v16, %v3408_v11  ;;  %4537 = vlog2.f32 %v1570_v60  ;;  %v1761_v46 = vsub.f32 %v7822_v33, %v1649_v25 }
 0x22f   :  { %4539 = vlog2.f32 %v1573_v42 }
 0x230   :  { %v4223_v22 = vpop.f32.mrb[52].mxu0  ;;  %v3412_v62 = vadd.f32 %v3411_v21, %v3410_v37  ;;  %4541 = vlog2.f32 %v1571_v52  ;;  %v7826_v21 = vld [vmem:[#allocation82_spill] sm:$0xff] }
 0x231   :  { %v7196_v49 = vadd.f32 %v4223_v22, %v6977_v61  ;;  %v1507_v18 = vpop.f32.mrb[53].mxu0  ;;  %v4534_v61 = vpop.eup %4533 }
 0x232   :  { %v7200_v27 = vadd.f32 %v1507_v18, %v6980_v7  ;;  %v4224_v5 = vpop.f32.mrb[54].mxu0  ;;  %v7820_v7 = vld [vmem:[#allocation36_spill] sm:$0xff]  ;;  %v1645_v57 = vmul.f32 0.6931472, %v4534_v61  ;;  %v7828_v61 = vld [vmem:[#allocation83_spill] sm:$0xff] }
 0x233   :  { %v7205_v10 = vadd.f32 %v4224_v5, %v6986_v28  ;;  %v1510_v45 = vpop.f32.mrb[55].mxu0  ;;  %v1760_v32 = vsub.f32 %v7820_v7, %v1647_v14 }
 0x234   :  { %v7209_v39 = vadd.f32 %v1510_v45, %v6992_v15  ;;  %v1759_v16 = vsub.f32 %v7824_v6, %v1645_v57 }
 0x235   :  { %v4249_v41 = vpop.f32.mrb[44].mxu1 }
 0x236   :  { %v3340_v9 = vmul.f32 %v4249_v41, %v1760_v32  ;;  %v3118_v44 = vpop.f32.mrb[45].mxu1  ;;  %v7830_v41 = vld [vmem:[#allocation84_spill] sm:$0xff] }
 0x237   :  { %v3338_v48 = vmul.f32 %v3118_v44, %v1758_v40  ;;  %v4250_v36 = vpop.f32.mrb[46].mxu1  ;;  %v4536_v60 = vpop.eup %4535  ;;  %v7831_v44 = vld [vmem:[#allocation70_spill] sm:$0xff] }
 0x238   :  { %v4227_v28 = vpop.f32.mrb[56].mxu0  ;;  %v3341_v56 = vmul.f32 %v4250_v36, %v1761_v46  ;;  %v3121_v50 = vpop.f32.mrb[47].mxu1  ;;  %v3417_v45 = vsel %vm7827_vm6, %v3340_v9, 0.0  ;;  %v1655_v7 = vmul.f32 0.6931472, %v4536_v60  ;;  %v1577_v33 = vmax.f32 %v7831_v44, 1.1754944e-38  ;;  %vm7875_vm6 = vmmov %vm7811_vm0 }
 0x239   :  { %v7215_v17 = vadd.f32 %v4227_v28, %v7004_v43  ;;  %v1523_v15 = vpop.f32.mrb[57].mxu0  ;;  %v3413_v22 = vsel %vm7823_vm7, %v3338_v48, 0.0  ;;  %v3339_v14 = vmul.f32 %v3121_v50, %v1759_v16  ;;  %v4538_v37 = vpop.eup %4537  ;;  %vm7873_vm7 = vmmov %vm7811_vm0 }
 0x23a   :  { %v7218_v13 = vadd.f32 %v1523_v15, %v7008_v38  ;;  %v4228_v59 = vpop.f32.mrb[58].mxu0  ;;  %v3414_v18 = vadd.f32 %v3413_v22, %v3412_v62  ;;  %v4540_v42 = vpop.eup %4539  ;;  %v1651_v28 = vmul.f32 0.6931472, %v4538_v37  ;;  %v3419_v46 = vsel %vm7832_vm11, %v3341_v56, 0.0  ;;  %v7833_v15 = vld [vmem:[#allocation86_spill] sm:$0xff]  ;;  %v7835_v22 = vld [vmem:[#allocation88_spill] sm:$0xff]  ;;  %vm7876_vm11 = vmmov %vm7811_vm0 }
 0x23b   :  { %v7221_v11 = vadd.f32 %v4228_v59, %v7014_v12  ;;  %v1526_v3 = vpop.f32.mrb[59].mxu0  ;;  %v3415_v38 = vsel %vm7825_vm5, %v3339_v14, 0.0  ;;  %v1576_v12 = vmax.f32 %v7826_v21, 1.1754944e-38  ;;  %v4542_v62 = vpop.eup %4541  ;;  %v1657_v36 = vmul.f32 0.6931472, %v4540_v42  ;;  %v7834_v59 = vld [vmem:[#allocation25_spill] sm:$0xff]  ;;  %vm7874_vm5 = vmmov %vm7811_vm0 }
 0x23c   :  { %v7226_v43 = vadd.f32 %v1526_v3, %v7020_v0  ;;  %v3416_v5 = vadd.f32 %v3415_v38, %v3414_v18  ;;  %v7829_v0 = vld [vmem:[#allocation78_spill] sm:$0xff]  ;;  %v1575_v50 = vmax.f32 %v7834_v59, 1.1754944e-38  ;;  %v1653_v16 = vmul.f32 0.6931472, %v4542_v62  ;;  %v7836_v18 = vld [vmem:[#allocation40_spill] sm:$0xff] }
 0x23d   :  { %v1574_v32 = vmax.f32 %v7829_v0, 1.1754944e-38  ;;  %4543 = vlog2.f32 %v1576_v12  ;;  %v1764_v14 = vsub.f32 %v7836_v18, %v1655_v7  ;;  %v7837_v38 = vld [vmem:[#allocation38_spill] sm:$0xff] }
 0x23e   :  { %v3418_v57 = vadd.f32 %v3417_v45, %v3416_v5  ;;  %v1762_v56 = vsub.f32 %v7837_v38, %v1651_v28 }
 0x23f   :  { %4545 = vlog2.f32 %v1574_v32 }
 0x240   :  { %v4231_v51 = vpop.f32.mrb[60].mxu0  ;;  %v3420_v6 = vadd.f32 %v3419_v46, %v3418_v57  ;;  %4547 = vlog2.f32 %v1577_v33 }
 0x241   :  { %v7232_v25 = vadd.f32 %v4231_v51, %v7828_v61  ;;  %v1539_v52 = vpop.f32.mrb[61].mxu0  ;;  %4549 = vlog2.f32 %v1575_v50  ;;  %v7838_v51 = vld [vmem:[#allocation39_spill] sm:$0xff]  ;;  %v7839_v61 = vld [vmem:[#allocation37_spill] sm:$0xff] }
 0x242   :  { %v7236_v35 = vadd.f32 %v1539_v52, %v7830_v41  ;;  %v4232_v40 = vpop.f32.mrb[62].mxu0  ;;  %v1765_v42 = vsub.f32 %v7838_v51, %v1657_v36  ;;  %v1763_v52 = vsub.f32 %v7839_v61, %v1653_v16 }
 0x243   :  { %v7241_v9 = vadd.f32 %v4232_v40, %v7833_v15  ;;  %v1542_v48 = vpop.f32.mrb[63].mxu0  ;;  %v7843_v15 = vld [vmem:[#allocation75_spill] sm:$0xff] }
 0x244   :  { %v7245_v3 = vadd.f32 %v1542_v48, %v7835_v22  ;;  %v1580_v48 = vmax.f32 %v7843_v15, 1.1754944e-38  ;;  %v7845_v22 = vld [vmem:[#allocation80_spill] sm:$0xff] }
 0x245   :  { %v4253_v60 = vpop.f32.mrb[48].mxu1  ;;  %v1578_v16 = vmax.f32 %v7845_v22, 1.1754944e-38 }
 0x246   :  { %v3344_v37 = vmul.f32 %v4253_v60, %v1764_v14  ;;  %v3134_v5 = vpop.f32.mrb[49].mxu1  ;;  %4551 = vlog2.f32 %v1580_v48 }
 0x247   :  { %v3342_v21 = vmul.f32 %v3134_v5, %v1762_v56  ;;  %v4254_v45 = vpop.f32.mrb[50].mxu1  ;;  %v4544_v40 = vpop.eup %4543  ;;  %v7847_v56 = vld [vmem:[#allocation81_spill] sm:$0xff]  ;;  %4553 = vlog2.f32 %v1578_v16 }
 0x248   :  { %v3345_v0 = vmul.f32 %v4254_v45, %v1765_v42  ;;  %v3137_v57 = vpop.f32.mrb[51].mxu1  ;;  %v3425_v28 = vsel %vm7842_vm8, %v3344_v37, 0.0  ;;  %v1663_v50 = vmul.f32 0.6931472, %v4544_v40  ;;  %v1579_v5 = vmax.f32 %v7847_v56, 1.1754944e-38  ;;  %v7848_v37 = vld [vmem:[#allocation44_spill] sm:$0xff] }
 0x249   :  { %v3421_v12 = vsel %vm7840_vm13, %v3342_v21, 0.0  ;;  %v3343_v62 = vmul.f32 %v3137_v57, %v1763_v52  ;;  %v4546_v44 = vpop.eup %4545  ;;  %v7849_v45 = vld [vmem:[#allocation42_spill] sm:$0xff]  ;;  %v7850_v57 = vld [vmem:[#allocation43_spill] sm:$0xff]  ;;  %vm7881_vm13 = vmmov %vm7811_vm0  ;;  %vm70_vm8 = vcmask 57344  }
 0x24a   :  { %v3422_v32 = vadd.f32 %v3421_v12, %v3420_v6  ;;  %v4548_v46 = vpop.eup %4547  ;;  %v3427_v36 = vsel %vm7844_vm15, %v3345_v0, 0.0  ;;  %v1659_v14 = vmul.f32 0.6931472, %v4546_v44  ;;  %v7846_v6 = vld [vmem:[#allocation79_spill] sm:$0xff]  ;;  %v1768_v42 = vsub.f32 %v7848_v37, %v1663_v50  ;;  %vm7883_vm15 = vmmov %vm7811_vm0  ;;  %71 = vst.msk [vmem:[#allocation2] sm:$0x1] %vm70_vm8, %v7569_v1 }
 0x24b   :  { %v3423_v7 = vsel %vm7841_vm2, %v3343_v62, 0.0  ;;  %v4550_v59 = vpop.eup %4549  ;;  %v1581_v60 = vmax.f32 %v7846_v6, 1.1754944e-38  ;;  %v1665_v38 = vmul.f32 0.6931472, %v4548_v46  ;;  %vm7882_vm2 = vmmov %vm7811_vm0 }
 0x24c   :  { %v3424_v41 = vadd.f32 %v3423_v7, %v3422_v32  ;;  %v1661_v51 = vmul.f32 0.6931472, %v4550_v59  ;;  %v1766_v61 = vsub.f32 %v7849_v45, %v1659_v14  ;;  %v7851_v7 = vld [vmem:[#allocation41_spill] sm:$0xff] }
 0x24d   :  { %4555 = vlog2.f32 %v1581_v60  ;;  %v1769_v12 = vsub.f32 %v7850_v57, %v1665_v38  ;;  %v7855_v14 = vld [vmem:[#allocation85_spill] sm:$0xff] }
 0x24e   :  { %v3426_v33 = vadd.f32 %v3425_v28, %v3424_v41  ;;  %4557 = vlog2.f32 %v1579_v5  ;;  %v1767_v41 = vsub.f32 %v7851_v7, %v1661_v51  ;;  %v1584_v6 = vmax.f32 %v7855_v14, 1.1754944e-38  ;;  %v7856_v5 = vld [vmem:[#allocation87_spill] sm:$0xff] }
 0x24f   :  { %v1582_v51 = vmax.f32 %v7856_v5, 1.1754944e-38 }
 0x250   :  { %v3428_v18 = vadd.f32 %v3427_v36, %v3426_v33  ;;  %v4552_v36 = vpop.eup %4551  ;;  %4559 = vlog2.f32 %v1584_v6 }
 0x251   :  { %v4554_v50 = vpop.eup %4553  ;;  %v1671_v56 = vmul.f32 0.6931472, %v4552_v36  ;;  %4561 = vlog2.f32 %v1582_v51 }
 0x255   :  { %v4257_v21 = vpop.f32.mrb[52].mxu1 }
 0x256   :  { %v3348_v52 = vmul.f32 %v4257_v21, %v1768_v42  ;;  %v3150_v0 = vpop.f32.mrb[53].mxu1  ;;  %v1667_v42 = vmul.f32 0.6931472, %v4554_v50 }
 0x257   :  { %v3346_v62 = vmul.f32 %v3150_v0, %v1766_v61  ;;  %v4258_v32 = vpop.f32.mrb[54].mxu1  ;;  %v4556_v16 = vpop.eup %4555  ;;  %v7858_v61 = vld [vmem:[#allocation90_spill] sm:$0xff] }
 0x258   :  { %v3349_v40 = vmul.f32 %v4258_v32, %v1769_v12  ;;  %v3153_v28 = vpop.f32.mrb[55].mxu1  ;;  %v3433_v59 = vsel %vm7854_vm10, %v3348_v52, 0.0  ;;  %v4558_v38 = vpop.eup %4557  ;;  %v1673_v45 = vmul.f32 0.6931472, %v4556_v16  ;;  %v1583_v0 = vmax.f32 %v7858_v61, 1.1754944e-38  ;;  %v7859_v52 = vld [vmem:[#allocation48_spill] sm:$0xff]  ;;  %vm7890_vm10 = vmmov %vm7811_vm0 }
 0x259   :  { %v3429_v44 = vsel %vm7852_vm4, %v3346_v62, 0.0  ;;  %v3347_v33 = vmul.f32 %v3153_v28, %v1767_v41  ;;  %v1669_v57 = vmul.f32 0.6931472, %v4558_v38  ;;  %v1772_v12 = vsub.f32 %v7859_v52, %v1671_v56  ;;  %v7860_v32 = vld [vmem:[#allocation46_spill] sm:$0xff]  ;;  %v7861_v28 = vld [vmem:[#allocation47_spill] sm:$0xff]  ;;  %vm7884_vm4 = vmmov %vm7811_vm0 }
 0x25a   :  { %v3430_v46 = vadd.f32 %v3429_v44, %v3428_v18  ;;  %v3435_v60 = vsel %vm7811_vm0, %v3349_v40, 0.0  ;;  %v7857_v18 = vld [vmem:[#allocation89_spill] sm:$0xff]  ;;  %v1770_v7 = vsub.f32 %v7860_v32, %v1667_v42  ;;  %v1773_v44 = vsub.f32 %v7861_v28, %v1673_v45  ;;  %v7866_v42 = vld [vmem:[#allocation91_spill] sm:$0xff] }
 0x25b   :  { %v3431_v15 = vsel %vm7853_vm9, %v3347_v33, 0.0  ;;  %v1585_v21 = vmax.f32 %v7857_v18, 1.1754944e-38  ;;  %v1588_v18 = vmax.f32 %v7866_v42, 1.1754944e-38  ;;  %v1587_v32 = vmax.f32 %v7078_v19, 1.1754944e-38  ;;  %vm7889_vm9 = vmmov %vm7811_vm0 }
 0x25c   :  { %v3432_v48 = vadd.f32 %v3431_v15, %v3430_v46  ;;  %v7862_v15 = vld [vmem:[#allocation45_spill] sm:$0xff] }
 0x25d   :  { %4563 = vlog2.f32 %v1585_v21 }
 0x25e   :  { %v3434_v22 = vadd.f32 %v3433_v59, %v3432_v48  ;;  %4565 = vlog2.f32 %v1583_v0  ;;  %v1771_v48 = vsub.f32 %v7862_v15, %v1669_v57  ;;  %v7868_v0 = vld [vmem:[#allocation92_spill] sm:$0xff] }
 0x25f   :  { %v1586_v57 = vmax.f32 %v7868_v0, 1.1754944e-38  ;;  %4567 = vlog2.f32 %v1588_v18 }
 0x260   :  { %v3436_v37 = vadd.f32 %v3435_v60, %v3434_v22  ;;  %v4560_v60 = vpop.eup %4559 }
 0x261   :  { %v4562_v56 = vpop.eup %4561  ;;  %v1679_v61 = vmul.f32 0.6931472, %v4560_v60  ;;  %4569 = vlog2.f32 %v1586_v57 }
 0x265   :  { %v4261_v62 = vpop.f32.mrb[56].mxu1 }
 0x266   :  { %v3352_v41 = vmul.f32 %v4261_v62, %v1772_v12  ;;  %v3166_v40 = vpop.f32.mrb[57].mxu1  ;;  %v1675_v12 = vmul.f32 0.6931472, %v4562_v56 }
 0x267   :  { %v3350_v33 = vmul.f32 %v3166_v40, %v1770_v7  ;;  %v4262_v46 = vpop.f32.mrb[58].mxu1  ;;  %v4564_v51 = vpop.eup %4563 }
 0x268   :  { %v3353_v36 = vmul.f32 %v4262_v46, %v1773_v44  ;;  %v3169_v59 = vpop.f32.mrb[59].mxu1  ;;  %v3441_v38 = vsel %vm7865_vm1, %v3352_v41, 0.0  ;;  %v4566_v45 = vpop.eup %4565  ;;  %v1681_v62 = vmul.f32 0.6931472, %v4564_v51  ;;  %v7869_v41 = vld [vmem:[#allocation52_spill] sm:$0xff]  ;;  %v7870_v44 = vld [vmem:[#allocation50_spill] sm:$0xff]  ;;  %vm7897_vm1 = vmmov %vm7811_vm0 }
 0x269   :  { %v3437_v50 = vsel %vm7863_vm14, %v3350_v33, 0.0  ;;  %v3351_v22 = vmul.f32 %v3169_v59, %v1771_v48  ;;  %v1677_v7 = vmul.f32 0.6931472, %v4566_v45  ;;  %v1776_v40 = vsub.f32 %v7869_v41, %v1679_v61  ;;  %v7871_v48 = vld [vmem:[#allocation51_spill] sm:$0xff]  ;;  %vm7891_vm14 = vmmov %vm7811_vm0 }
 0x26a   :  { %v3438_v16 = vadd.f32 %v3437_v50, %v3436_v37  ;;  %v3443_v21 = vsel %vm7867_vm3, %v3353_v36, 0.0  ;;  %v1589_v37 = vmax.f32 %v7073_v31, 1.1754944e-38  ;;  %v1774_v33 = vsub.f32 %v7870_v44, %v1675_v12  ;;  %v7872_v31 = vld [vmem:[#allocation49_spill] sm:$0xff]  ;;  %v7878_v44 = vld [vmem:[#allocation54_spill] sm:$0xff]  ;;  %vm7898_vm3 = vmmov %vm7811_vm0 }
 0x26b   :  { %v3439_v14 = vsel %vm7864_vm12, %v3351_v22, 0.0  ;;  %v1777_v36 = vsub.f32 %v7871_v48, %v1681_v62  ;;  %v1775_v22 = vsub.f32 %v7872_v31, %v1677_v7  ;;  %v1592_v45 = vmax.f32 %v7096_v58, 1.1754944e-38  ;;  %vm7896_vm12 = vmmov %vm7811_vm0 }
 0x26c   :  { %v3440_v6 = vadd.f32 %v3439_v14, %v3438_v16  ;;  %4571 = vlog2.f32 %v1589_v37  ;;  %v1590_v12 = vmax.f32 %v7103_v54, 1.1754944e-38  ;;  %v1591_v7 = vmax.f32 %v7113_v20, 1.1754944e-38  ;;  %v7879_v54 = vld [vmem:[#allocation55_spill] sm:$0xff] }
 0x26d   :  { %4573 = vlog2.f32 %v1587_v32 }
 0x26e   :  { %v3442_v5 = vadd.f32 %v3441_v38, %v3440_v6  ;;  %4575 = vlog2.f32 %v1592_v45  ;;  %v1596_v45 = vmax.f32 %v7131_v26, 1.1754944e-38 }
 0x26f   :  { %4577 = vlog2.f32 %v1590_v12 }
 0x270   :  { %v3444_v52 = vadd.f32 %v3443_v21, %v3442_v5  ;;  %v4568_v5 = vpop.eup %4567 }
 0x271   :  { %v4570_v42 = vpop.eup %4569  ;;  %v1687_v57 = vmul.f32 0.6931472, %v4568_v5 }
 0x272   :  { %v1683_v62 = vmul.f32 0.6931472, %v4570_v42 }
 0x275   :  { %v4265_v28 = vpop.f32.mrb[60].mxu1 }
 0x276   :  { %v3356_v46 = vmul.f32 %v4265_v28, %v1776_v40  ;;  %v3182_v15 = vpop.f32.mrb[61].mxu1  ;;  %v4572_v21 = vpop.eup %4571  ;;  %v7877_v40 = vld [vmem:[#allocation56_spill] sm:$0xff] }
 0x277   :  { %v3354_v59 = vmul.f32 %v3182_v15, %v1774_v33  ;;  %v4266_v50 = vpop.f32.mrb[62].mxu1  ;;  %v4574_v0 = vpop.eup %4573  ;;  %v1689_v32 = vmul.f32 0.6931472, %v4572_v21  ;;  %v1780_v28 = vsub.f32 %v7877_v40, %v1687_v57  ;;  %v1778_v33 = vsub.f32 %v7878_v44, %v1683_v62  ;;  %v7886_v40 = vld [vmem:[#allocation58_spill] sm:$0xff]  ;;  %v7887_v44 = vld [vmem:[#allocation59_spill] sm:$0xff] }
 0x278   :  { %v3357_v16 = vmul.f32 %v4266_v50, %v1777_v36  ;;  %v3185_v19 = vpop.f32.mrb[63].mxu1  ;;  %v3449_v51 = vsel %vm7875_vm6, %v3356_v46, 0.0  ;;  %v1685_v41 = vmul.f32 0.6931472, %v4574_v0  ;;  %v1594_v57 = vmax.f32 %v7138_v4, 1.1754944e-38  ;;  %vm7905_vm6 = vmmov %vm7811_vm0 }
 0x279   :  { %v3445_v14 = vsel %vm7873_vm7, %v3354_v59, 0.0  ;;  %v3355_v6 = vmul.f32 %v3185_v19, %v1775_v22  ;;  %v1781_v48 = vsub.f32 %v7879_v54, %v1689_v32  ;;  %v7885_v32 = vld [vmem:[#allocation60_spill] sm:$0xff]  ;;  %vm7899_vm7 = vmmov %vm7811_vm0 }
 0x27a   :  { %v3446_v60 = vadd.f32 %v3445_v14, %v3444_v52  ;;  %v3451_v61 = vsel %vm7876_vm11, %v3357_v16, 0.0  ;;  %v1593_v52 = vmax.f32 %v7107_v63, 1.1754944e-38  ;;  %v7880_v63 = vld [vmem:[#allocation53_spill] sm:$0xff]  ;;  %vm7906_vm11 = vmmov %vm7811_vm0 }
 0x27b   :  { %v3447_v38 = vsel %vm7874_vm5, %v3355_v6, 0.0  ;;  %v1779_v50 = vsub.f32 %v7880_v63, %v1685_v41  ;;  %vm7904_vm5 = vmmov %vm7811_vm0 }
 0x27c   :  { %v3448_v56 = vadd.f32 %v3447_v38, %v3446_v60  ;;  %4579 = vlog2.f32 %v1593_v52  ;;  %v4576_v60 = vpop.eup %4575  ;;  %v1595_v52 = vmax.f32 %v7147_v24, 1.1754944e-38 }
 0x27d   :  { %4581 = vlog2.f32 %v1591_v7  ;;  %v1695_v21 = vmul.f32 0.6931472, %v4576_v60 }
 0x27e   :  { %v3450_v18 = vadd.f32 %v3449_v51, %v3448_v56  ;;  %v4578_v56 = vpop.eup %4577  ;;  %4583 = vlog2.f32 %v1596_v45 }
 0x27f   :  { %v1691_v0 = vmul.f32 0.6931472, %v4578_v56  ;;  %v1784_v7 = vsub.f32 %v7885_v32, %v1695_v21  ;;  %4585 = vlog2.f32 %v1594_v57  ;;  %v1599_v21 = vmax.f32 %v7171_v23, 1.1754944e-38 }
 0x280   :  { %v3452_v37 = vadd.f32 %v3451_v61, %v3450_v18 }
 0x285   :  { %v4269_v58 = vpop.f32.mrb[64].mxu1 }
 0x286   :  { %v3360_v46 = vmul.f32 %v4269_v58, %v1780_v28  ;;  %v3198_v15 = vpop.f32.mrb[65].mxu1  ;;  %v4580_v51 = vpop.eup %4579  ;;  %v1782_v28 = vsub.f32 %v7886_v40, %v1691_v0 }
 0x287   :  { %v3358_v36 = vmul.f32 %v3198_v15, %v1778_v33  ;;  %v4270_v59 = vpop.f32.mrb[66].mxu1  ;;  %v4582_v18 = vpop.eup %4581  ;;  %v1697_v12 = vmul.f32 0.6931472, %v4580_v51  ;;  %v7888_v15 = vld [vmem:[#allocation57_spill] sm:$0xff] }
 0x288   :  { %v3361_v31 = vmul.f32 %v4270_v59, %v1781_v48  ;;  %v3201_v20 = vpop.f32.mrb[67].mxu1  ;;  %v3457_v38 = vsel %vm7883_vm15, %v3360_v46, 0.0  ;;  %v1693_v62 = vmul.f32 0.6931472, %v4582_v18  ;;  %vm7913_vm15 = vmmov %vm7811_vm0 }
 0x289   :  { %v3453_v22 = vsel %vm7881_vm13, %v3358_v36, 0.0  ;;  %v3359_v16 = vmul.f32 %v3201_v20, %v1779_v50  ;;  %v1785_v33 = vsub.f32 %v7887_v44, %v1697_v12  ;;  %v4584_v20 = vpop.eup %4583  ;;  %v7893_v12 = vld [vmem:[#allocation10_spill] sm:$0xff]  ;;  %vm7907_vm13 = vmmov %vm7811_vm0 }
 0x28a   :  { %v3454_v19 = vadd.f32 %v3453_v22, %v3452_v37  ;;  %v3459_v42 = vsel %vm7884_vm4, %v3361_v31, 0.0  ;;  %v1597_v37 = vmax.f32 %v7142_v47, 1.1754944e-38  ;;  %v1783_v47 = vsub.f32 %v7888_v15, %v1693_v62  ;;  %vm7914_vm4 = vmmov %vm7811_vm0 }
 0x28b   :  { %v3455_v14 = vsel %vm7882_vm2, %v3359_v16, 0.0  ;;  %v4586_v16 = vpop.eup %4585  ;;  %v1703_v56 = vmul.f32 0.6931472, %v4584_v20  ;;  %v1605_v20 = vmax.f32 %v7185_v29, 1.1754944e-38  ;;  %v7903_v29 = vld [vmem:[#allocation20_spill] sm:$0xff]  ;;  %vm7912_vm2 = vmmov %vm7811_vm0 }
 0x28c   :  { %v3456_v6 = vadd.f32 %v3455_v14, %v3454_v19  ;;  %4587 = vlog2.f32 %v1597_v37  ;;  %v1699_v51 = vmul.f32 0.6931472, %v4586_v16  ;;  %v1603_v16 = vmax.f32 %v7190_v34, 1.1754944e-38 }
 0x28d   :  { %4589 = vlog2.f32 %v1595_v52  ;;  %v7894_v52 = vld [vmem:[#allocation61_spill] sm:$0xff] }
 0x28e   :  { %v3458_v5 = vadd.f32 %v3457_v38, %v3456_v6  ;;  %v1600_v6 = vmax.f32 %v7157_v8, 1.1754944e-38  ;;  %v1786_v8 = vsub.f32 %v7893_v12, %v1699_v51 }
 0x290   :  { %v3460_v61 = vadd.f32 %v3459_v42, %v3458_v5  ;;  %v1598_v5 = vmax.f32 %v7163_v30, 1.1754944e-38  ;;  %v1601_v42 = vmax.f32 %v7168_v53, 1.1754944e-38  ;;  %4591 = vlog2.f32 %v1600_v6  ;;  %v7895_v53 = vld [vmem:[#allocation17_spill] sm:$0xff] }
 0x292   :  { %4593 = vlog2.f32 %v1598_v5 }
 0x293   :  { %4595 = vlog2.f32 %v1601_v42 }
 0x294   :  { %4597 = vlog2.f32 %v1599_v21 }
 0x295   :  { %v4273_v41 = vpop.f32.mrb[68].mxu1 }
 0x296   :  { %v3364_v58 = vmul.f32 %v4273_v41, %v1784_v7  ;;  %v3214_v26 = vpop.f32.mrb[69].mxu1  ;;  %v4588_v14 = vpop.eup %4587 }
 0x297   :  { %v3362_v4 = vmul.f32 %v3214_v26, %v1782_v28  ;;  %v4274_v46 = vpop.f32.mrb[70].mxu1  ;;  %v4590_v38 = vpop.eup %4589  ;;  %v1705_v18 = vmul.f32 0.6931472, %v4588_v14  ;;  %v7900_v14 = vld [vmem:[#allocation65_spill] sm:$0xff] }
 0x298   :  { %v3365_v54 = vmul.f32 %v4274_v46, %v1785_v33  ;;  %v3217_v48 = vpop.f32.mrb[71].mxu1  ;;  %v3465_v31 = vsel %vm7811_vm0, %v3364_v58, 0.0  ;;  %v1701_v45 = vmul.f32 0.6931472, %v4590_v38 }
 0x299   :  { %v3461_v24 = vsel %vm7889_vm9, %v3362_v4, 0.0  ;;  %v3363_v36 = vmul.f32 %v3217_v48, %v1783_v47  ;;  %v1789_v30 = vsub.f32 %v7894_v52, %v1705_v18  ;;  %v1604_v48 = vmax.f32 %v7179_v2, 1.1754944e-38  ;;  %vm7915_vm9 = vmmov %vm7811_vm0 }
 0x29a   :  { %v3462_v59 = vadd.f32 %v3461_v24, %v3460_v61  ;;  %v3467_v19 = vsel %vm7891_vm14, %v3365_v54, 0.0  ;;  %v7892_v61 = vld [vmem:[#allocation62_spill] sm:$0xff]  ;;  %v1787_v41 = vsub.f32 %v7895_v53, %v1701_v45  ;;  %v4592_v4 = vpop.eup %4591  ;;  %vm7921_vm14 = vmmov %vm7811_vm0 }
 0x29b   :  { %v3463_v63 = vsel %vm7890_vm10, %v3363_v36, 0.0  ;;  %v1788_v0 = vsub.f32 %v7892_v61, %v1703_v56  ;;  %4599 = vlog2.f32 %v1604_v48  ;;  %vm7920_vm10 = vmmov %vm7811_vm0 }
 0x29c   :  { %v3464_v50 = vadd.f32 %v3463_v63, %v3462_v59  ;;  %v4594_v15 = vpop.eup %4593  ;;  %v1711_v59 = vmul.f32 0.6931472, %v4592_v4  ;;  %v1602_v63 = vmax.f32 %v7182_v55, 1.1754944e-38  ;;  %v7902_v55 = vld [vmem:[#allocation64_spill] sm:$0xff] }
 0x29d   :  { %v4596_v54 = vpop.eup %4595 }
 0x29e   :  { %v3466_v22 = vadd.f32 %v3465_v31, %v3464_v50  ;;  %v4598_v36 = vpop.eup %4597  ;;  %v1707_v31 = vmul.f32 0.6931472, %v4594_v15  ;;  %4601 = vlog2.f32 %v1602_v63  ;;  %v1792_v6 = vsub.f32 %v7900_v14, %v1711_v59 }
 0x29f   :  { %4603 = vlog2.f32 %v1605_v20 }
 0x2a0   :  { %v3468_v60 = vadd.f32 %v3467_v19, %v3466_v22  ;;  %v1713_v22 = vmul.f32 0.6931472, %v4596_v54  ;;  %v1709_v19 = vmul.f32 0.6931472, %v4598_v36  ;;  %4605 = vlog2.f32 %v1603_v16 }
 0x2a2   :  { %v1793_v51 = vsub.f32 %v7902_v55, %v1713_v22  ;;  %v1791_v21 = vsub.f32 %v7903_v29, %v1709_v19 }
 0x2a7   :  { %v4277_v57 = vpop.f32.mrb[72].mxu1 }
 0x2a8   :  { %v3368_v37 = vmul.f32 %v4277_v57, %v1788_v0  ;;  %v3230_v62 = vpop.f32.mrb[73].mxu1 }
 0x2a9   :  { %v3366_v32 = vmul.f32 %v3230_v62, %v1786_v8  ;;  %v4278_v7 = vpop.f32.mrb[74].mxu1 }
 0x2aa   :  { %v3369_v40 = vmul.f32 %v4278_v7, %v1789_v30  ;;  %v3233_v23 = vpop.f32.mrb[75].mxu1  ;;  %v3473_v46 = vsel %vm7898_vm3, %v3368_v37, 0.0  ;;  %v4600_v37 = vpop.eup %4599  ;;  %v1608_v7 = vmax.f32 %v7196_v49, 1.1754944e-38  ;;  %vm7928_vm3 = vmmov %vm7811_vm0 }
 0x2ab   :  { %v3469_v28 = vsel %vm7896_vm12, %v3366_v32, 0.0  ;;  %v3367_v58 = vmul.f32 %v3233_v23, %v1787_v41  ;;  %v4602_v52 = vpop.eup %4601  ;;  %v1606_v23 = vmax.f32 %v7200_v27, 1.1754944e-38  ;;  %v7910_v27 = vld [vmem:[#allocation11_spill] sm:$0xff]  ;;  %vm7922_vm12 = vmmov %vm7811_vm0 }
 0x2ac   :  { %v3470_v26 = vadd.f32 %v3469_v28, %v3468_v60  ;;  %v3475_v24 = vsel %vm7899_vm7, %v3369_v40, 0.0  ;;  %v7901_v60 = vld [vmem:[#allocation63_spill] sm:$0xff]  ;;  %v4604_v32 = vpop.eup %4603  ;;  %v1719_v40 = vmul.f32 0.6931472, %v4600_v37  ;;  %4607 = vlog2.f32 %v1608_v7  ;;  %vm7929_vm7 = vmmov %vm7811_vm0 }
 0x2ad   :  { %v3471_v44 = vsel %vm7897_vm1, %v3367_v58, 0.0  ;;  %v1790_v38 = vsub.f32 %v7901_v60, %v1707_v31  ;;  %v4606_v41 = vpop.eup %4605  ;;  %v1715_v58 = vmul.f32 0.6931472, %v4602_v52  ;;  %4609 = vlog2.f32 %v1606_v23  ;;  %vm7927_vm1 = vmmov %vm7811_vm0 }
 0x2ae   :  { %v3472_v33 = vadd.f32 %v3471_v44, %v3470_v26  ;;  %v1609_v26 = vmax.f32 %v7205_v10, 1.1754944e-38  ;;  %v1721_v44 = vmul.f32 0.6931472, %v4604_v32  ;;  %v1717_v4 = vmul.f32 0.6931472, %v4606_v41  ;;  %v7911_v10 = vld [vmem:[#allocation30_spill] sm:$0xff] }
 0x2b0   :  { %v3474_v47 = vadd.f32 %v3473_v46, %v3472_v33  ;;  %v1607_v33 = vmax.f32 %v7209_v39, 1.1754944e-38  ;;  %v7908_v46 = vld [vmem:[#allocation21_spill] sm:$0xff]  ;;  %4611 = vlog2.f32 %v1609_v26  ;;  %v1797_v36 = vsub.f32 %v7910_v27, %v1721_v44 }
 0x2b1   :  { %v1796_v15 = vsub.f32 %v7908_v46, %v1719_v40 }
 0x2b2   :  { %v3476_v50 = vadd.f32 %v3475_v24, %v3474_v47  ;;  %v7909_v47 = vld [vmem:[#allocation66_spill] sm:$0xff]  ;;  %4613 = vlog2.f32 %v1607_v33 }
 0x2b3   :  { %v1794_v54 = vsub.f32 %v7909_v47, %v1715_v58 }
 0x2b8   :  { %v4281_v2 = vpop.f32.mrb[76].mxu1 }
 0x2b9   :  { %v3372_v56 = vmul.f32 %v4281_v2, %v1792_v6  ;;  %v3246_v5 = vpop.f32.mrb[77].mxu1  ;;  %v4608_v6 = vpop.eup %4607 }
 0x2ba   :  { %v3370_v42 = vmul.f32 %v3246_v5, %v1790_v38  ;;  %v4282_v18 = vpop.f32.mrb[78].mxu1  ;;  %v4610_v60 = vpop.eup %4609  ;;  %v1612_v5 = vmax.f32 %v7215_v17, 1.1754944e-38 }
 0x2bb   :  { %v3373_v45 = vmul.f32 %v4282_v18, %v1793_v51  ;;  %v3249_v34 = vpop.f32.mrb[79].mxu1  ;;  %v3481_v62 = vsel %vm7906_vm11, %v3372_v56, 0.0  ;;  %v4612_v56 = vpop.eup %4611  ;;  %v1610_v18 = vmax.f32 %v7218_v13, 1.1754944e-38  ;;  %v7918_v13 = vld [vmem:[#allocation14_spill] sm:$0xff]  ;;  %vm7936_vm11 = vmmov %vm7811_vm0 }
 0x2bc   :  { %v3477_v61 = vsel %vm7904_vm5, %v3370_v42, 0.0  ;;  %v3371_v0 = vmul.f32 %v3249_v34, %v1791_v21  ;;  %v4614_v51 = vpop.eup %4613  ;;  %v1727_v42 = vmul.f32 0.6931472, %v4608_v6  ;;  %v1723_v21 = vmul.f32 0.6931472, %v4610_v60  ;;  %vm7930_vm5 = vmmov %vm7811_vm0 }
 0x2bd   :  { %v3478_v57 = vadd.f32 %v3477_v61, %v3476_v50  ;;  %v3483_v53 = vsel %vm7907_vm13, %v3373_v45, 0.0  ;;  %v1795_v50 = vsub.f32 %v7911_v10, %v1717_v4  ;;  %v1613_v45 = vmax.f32 %v7221_v11, 1.1754944e-38  ;;  %v7919_v11 = vld [vmem:[#allocation67_spill] sm:$0xff]  ;;  %vm7937_vm13 = vmmov %vm7811_vm0 }
 0x2be   :  { %v3479_v12 = vsel %vm7905_vm6, %v3371_v0, 0.0  ;;  %v1729_v34 = vmul.f32 0.6931472, %v4612_v56  ;;  %v1611_v61 = vmax.f32 %v7226_v43, 1.1754944e-38  ;;  %v1725_v0 = vmul.f32 0.6931472, %v4614_v51  ;;  %vm7935_vm6 = vmmov %vm7811_vm0 }
 0x2bf   :  { %v3480_v8 = vadd.f32 %v3479_v12, %v3478_v57  ;;  %4615 = vlog2.f32 %v1612_v5  ;;  %v7916_v57 = vld [vmem:[#allocation69_spill] sm:$0xff]  ;;  %v1615_v10 = vmax.f32 %v7245_v3, 1.1754944e-38 }
 0x2c0   :  { %4617 = vlog2.f32 %v1610_v18  ;;  %v1800_v12 = vsub.f32 %v7916_v57, %v1727_v42 }
 0x2c1   :  { %v3482_v30 = vadd.f32 %v3481_v62, %v3480_v8  ;;  %4619 = vlog2.f32 %v1613_v45  ;;  %v7917_v8 = vld [vmem:[#allocation68_spill] sm:$0xff] }
 0x2c2   :  { %v1798_v37 = vsub.f32 %v7917_v8, %v1723_v21  ;;  %4621 = vlog2.f32 %v1611_v61 }
 0x2c3   :  { %v3484_v28 = vadd.f32 %v3483_v53, %v3482_v30  ;;  %v1801_v30 = vsub.f32 %v7918_v13, %v1729_v34  ;;  %v1799_v53 = vsub.f32 %v7919_v11, %v1725_v0 }
 0x2c8   :  { %v4285_v49 = vpop.f32.mrb[80].mxu1 }
 0x2c9   :  { %v3376_v48 = vmul.f32 %v4285_v49, %v1796_v15  ;;  %v3262_v24 = vpop.f32.mrb[81].mxu1  ;;  %v4616_v44 = vpop.eup %4615  ;;  %v1616_v49 = vmax.f32 %v7232_v25, 1.1754944e-38 }
 0x2ca   :  { %v3374_v59 = vmul.f32 %v3262_v24, %v1794_v54  ;;  %v4286_v63 = vpop.f32.mrb[82].mxu1  ;;  %v4618_v4 = vpop.eup %4617  ;;  %v1614_v24 = vmax.f32 %v7236_v35, 1.1754944e-38  ;;  %v7925_v35 = vld [vmem:[#allocation72_spill] sm:$0xff] }
 0x2cb   :  { %v3377_v31 = vmul.f32 %v4286_v63, %v1797_v36  ;;  %v3265_v39 = vpop.f32.mrb[83].mxu1  ;;  %v3489_v2 = vsel %vm7914_vm4, %v3376_v48, 0.0  ;;  %v4620_v15 = vpop.eup %4619  ;;  %v1735_v48 = vmul.f32 0.6931472, %v4616_v44  ;;  %v1731_v36 = vmul.f32 0.6931472, %v4618_v4 }
 0x2cc   :  { %v3485_v20 = vsel %vm7912_vm2, %v3374_v59, 0.0  ;;  %v3375_v22 = vmul.f32 %v3265_v39, %v1795_v50  ;;  %v4622_v54 = vpop.eup %4621  ;;  %v1617_v59 = vmax.f32 %v7241_v9, 1.1754944e-38  ;;  %v1737_v63 = vmul.f32 0.6931472, %v4620_v15  ;;  %v7926_v9 = vld [vmem:[#allocation28_spill] sm:$0xff]  ;;  %vm7938_vm2 = vmmov %vm7811_vm0 }
 0x2cd   :  { %v3486_v16 = vadd.f32 %v3485_v20, %v3484_v28  ;;  %v3491_v55 = vsel %vm7915_vm9, %v3377_v31, 0.0  ;;  %v1733_v50 = vmul.f32 0.6931472, %v4622_v54  ;;  %4623 = vlog2.f32 %v1616_v49  ;;  %v7923_v31 = vld [vmem:[#allocation73_spill] sm:$0xff]  ;;  %v7924_v20 = vld [vmem:[#allocation71_spill] sm:$0xff] }
 0x2ce   :  { %v3487_v19 = vsel %vm7913_vm15, %v3375_v22, 0.0  ;;  %4625 = vlog2.f32 %v1614_v24  ;;  %v1804_v39 = vsub.f32 %v7923_v31, %v1735_v48  ;;  %v1802_v22 = vsub.f32 %v7924_v20, %v1731_v36  ;;  %v7939_v31 = vld [vmem:[#allocation29_spill] sm:$0xff] }
 0x2cf   :  { %v3488_v14 = vadd.f32 %v3487_v19, %v3486_v16  ;;  %4627 = vlog2.f32 %v1617_v59  ;;  %v1803_v60 = vsub.f32 %v7926_v9, %v1733_v50  ;;  %vm72_vm15 = vcmask 0  }
 0x2d0   :  { %4629 = vlog2.f32 %v1615_v10  ;;  %v3325_v10 = vld [vmem:[#allocation2] sm:$0x1]  ;;  %73 = vst.msk [vmem:[#allocation3] sm:$0x1] %vm72_vm15, %v7569_v1 }
 0x2d1   :  { %v3490_v38 = vadd.f32 %v3489_v2, %v3488_v14  ;;  %v1805_v14 = vsub.f32 %v7925_v35, %v1737_v63 }
 0x2d3   :  { %v3492_v29 = vadd.f32 %v3491_v55, %v3490_v38 }
 0x2d7   :  { %v4624_v18 = vpop.eup %4623 }
 0x2d8   :  { %v4626_v21 = vpop.eup %4625  ;;  %v1743_v57 = vmul.f32 0.6931472, %v4624_v18 }
 0x2d9   :  { %v4289_v17 = vpop.f32.mrb[84].mxu1  ;;  %v4628_v34 = vpop.eup %4627 }
 0x2da   :  { %v3380_v62 = vmul.f32 %v4289_v17, %v1800_v12  ;;  %v3278_v52 = vpop.f32.mrb[85].mxu1  ;;  %v4630_v0 = vpop.eup %4629  ;;  %v1739_v17 = vmul.f32 0.6931472, %v4626_v21  ;;  %v1745_v8 = vmul.f32 0.6931472, %v4628_v34 }
 0x2db   :  { %v3378_v32 = vmul.f32 %v3278_v52, %v1798_v37  ;;  %v4290_v7 = vpop.f32.mrb[86].mxu1  ;;  %v1741_v37 = vmul.f32 0.6931472, %v4630_v0 }
 0x2dc   :  { %v3381_v41 = vmul.f32 %v4290_v7, %v1801_v30  ;;  %v3281_v43 = vpop.f32.mrb[87].mxu1  ;;  %v3497_v33 = vsel %vm7921_vm14, %v3380_v62, 0.0  ;;  %v7931_v62 = vld [vmem:[#allocation77_spill] sm:$0xff]  ;;  %v7932_v30 = vld [vmem:[#allocation74_spill] sm:$0xff] }
 0x2dd   :  { %v3493_v40 = vsel %vm7920_vm10, %v3378_v32, 0.0  ;;  %v3379_v23 = vmul.f32 %v3281_v43, %v1799_v53  ;;  %v1808_v52 = vsub.f32 %v7931_v62, %v1743_v57  ;;  %v1806_v32 = vsub.f32 %v7932_v30, %v1739_v17  ;;  %v7933_v53 = vld [vmem:[#allocation76_spill] sm:$0xff] }
 0x2de   :  { %v3494_v28 = vadd.f32 %v3493_v40, %v3492_v29  ;;  %v3499_v47 = vsel %vm7922_vm12, %v3381_v41, 0.0  ;;  %v1809_v41 = vsub.f32 %v7933_v53, %v1745_v8 }
 0x2df   :  { %v3495_v58 = vsel %vm7811_vm0, %v3379_v23, 0.0  ;;  %v7934_v23 = vld [vmem:[#allocation22_spill] sm:$0xff] }
 0x2e0   :  { %v3496_v26 = vadd.f32 %v3495_v58, %v3494_v28  ;;  %v1807_v28 = vsub.f32 %v7934_v23, %v1741_v37 }
 0x2e2   :  { %v3498_v46 = vadd.f32 %v3497_v33, %v3496_v26 }
 0x2e4   :  { %v3500_v27 = vadd.f32 %v3499_v47, %v3498_v46 }
 0x2e8   :  { %v4293_v25 = vpop.f32.mrb[88].mxu1 }
 0x2e9   :  { %v3384_v16 = vmul.f32 %v4293_v25, %v1804_v39  ;;  %v3294_v19 = vpop.f32.mrb[89].mxu1  ;;  %v3719_v39 = vrot.slane %v7939_v31, 4 }
 0x2ea   :  { %v3382_v6 = vmul.f32 %v3294_v19, %v1802_v22  ;;  %v4294_v2 = vpop.f32.mrb[90].mxu1 }
 0x2eb   :  { %v3385_v38 = vmul.f32 %v4294_v2, %v1805_v14  ;;  %v3297_v3 = vpop.f32.mrb[91].mxu1  ;;  %v3505_v29 = vsel %vm7929_vm7, %v3384_v16, 0.0  ;;  %v3720_v20 = vadd.f32 %v3719_v39, %v7939_v31  ;;  %v3526_v2 = vld [vmem:[#allocation3] sm:$0x1] }
 0x2ec   :  { %v3501_v56 = vsel %vm7927_vm1, %v3382_v6, 0.0  ;;  %v3383_v5 = vmul.f32 %v3297_v3, %v1803_v60 }
 0x2ed   :  { %v3502_v55 = vadd.f32 %v3501_v56, %v3500_v27  ;;  %v3507_v61 = vsel %vm7930_vm5, %v3385_v38, 0.0  ;;  %v3721_v22 = vrot.slane %v3720_v20, 2 }
 0x2ee   :  { %v3503_v51 = vsel %vm7928_vm3, %v3383_v5, 0.0 }
 0x2ef   :  { %v3504_v42 = vadd.f32 %v3503_v51, %v3502_v55  ;;  %v3722_v35 = vadd.f32 %v3721_v22, %v3720_v20 }
 0x2f1   :  { %v3506_v45 = vadd.f32 %v3505_v29, %v3504_v42  ;;  %v3723_v14 = vrot.slane %v3722_v35, 1 }
 0x2f3   :  { %v3508_v12 = vadd.f32 %v3507_v61, %v3506_v45  ;;  %v3724_v6 = vadd.f32 %v3723_v14, %v3722_v35 }
 0x2f5   :  { %v3725_v9 = vadd.f32 %v3724_v6, %v3526_v2 }
 0x2f7   :  { %3727 = vst.msk [vmem:[#allocation3] sm:$0x1] %vm72_vm15, %v3725_v9 }
 0x2f8   :  { %v4297_v13 = vpop.f32.mrb[92].mxu1 }
 0x2f9   :  { %v3388_v7 = vmul.f32 %v4297_v13, %v1808_v52  ;;  %v3310_v11 = vpop.f32.mrb[93].mxu1 }
 0x2fa   :  { %v3386_v43 = vmul.f32 %v3310_v11, %v1806_v32  ;;  %v4298_v40 = vpop.f32.mrb[94].mxu1 }
 0x2fb   :  { %v3389_v58 = vmul.f32 %v4298_v40, %v1809_v41  ;;  %v3313_v26 = vpop.f32.mrb[95].mxu1  ;;  %v3513_v49 = vsel %vm7937_vm13, %v3388_v7, 0.0 }
 0x2fc   :  { %v3509_v44 = vsel %vm7935_vm6, %v3386_v43, 0.0  ;;  %v3387_v33 = vmul.f32 %v3313_v26, %v1807_v28 }
 0x2fd   :  { %v3510_v4 = vadd.f32 %v3509_v44, %v3508_v12  ;;  %v3515_v54 = vsel %vm7938_vm2, %v3389_v58, 0.0 }
 0x2fe   :  { %v3511_v46 = vsel %vm7936_vm11, %v3387_v33, 0.0  ;;  %v3736_v60 = vld [vmem:[#allocation3] sm:$0x1] }
 0x2ff   :  { %v3512_v15 = vadd.f32 %v3511_v46, %v3510_v4  ;;  %3737 = vst.msk [vmem:[#allocation6] sm:$0x1] %vm72_vm15, %v3736_v60 }
 0x301   :  { %v3514_v47 = vadd.f32 %v3513_v49, %v3512_v15 }
 0x303   :  { %v3516_v48 = vadd.f32 %v3515_v54, %v3514_v47 }
 0x305   :  { %v3517_v24 = vrot.slane %v3516_v48, 4 }
 0x307   :  { %v3518_v27 = vadd.f32 %v3517_v24, %v3516_v48 }
 0x309   :  { %v3519_v36 = vrot.slane %v3518_v27, 2 }
 0x30b   :  { %v3520_v59 = vadd.f32 %v3519_v36, %v3518_v27 }
 0x30d   :  { %v3521_v63 = vrot.slane %v3520_v59, 1 }
 0x30f   :  { %v3522_v50 = vadd.f32 %v3521_v63, %v3520_v59 }
 0x311   :  { %v3523_v25 = vsub.f32 %v3325_v10, %v3522_v50 }
 0x313   :  { %3525 = vst.msk [vmem:[#allocation2] sm:$0x1] %vm70_vm8, %v3523_v25 }
 0x31a   :  { %v3731_v16 = vld [vmem:[#allocation2] sm:$0x1] }
 0x31b   :  { %v3732_v19 = vsel %vm70_vm8, %v3731_v16, 0.0 }
 0x31c   :  { %3733 = vadd.xlane.f32.xlu1 %v3732_v19 }
 0x31d   :  { %4707 = shalt.err (!%p4704_p4)
}
 0x31e   :  { %s4708_s15 = scalar_lea.hbm %s7423_s5, 16 }
 0x31f   :  { %p4709_p5 = scmp.ne.s32.totalorder %s7423_s5, %s4708_s15  ;;  %p4712_p6 = scmp.lt.u32.totalorder %s4708_s15, %s7423_s5 }
 0x321   :  { %p4714_p7 = pnand %p4712_p6, %p4709_p5 }
 0x323   :  { %4717 = shalt.err (!%p4714_p7)
}
 0x324   :  { %3757 = dma.vmem_to_hbm [thread:$0]  %s3755_s11, 16, %s7423_s5, [#allocation7]  }
 0x325   :  { %s4747_s0 = smov [#allocation4]  }
 0x326   :  { %s3744_s21 = sshll.u32 %s4747_s0, 4  ;;  %s3745_s21 = int_to_ptr.vmem [resolvable:$true] %s3744_s21 }
 0x327   :  { %s4718_s22 = scalar_lea.vmem %s3745_s21, 16  ;;  %s4722_s23 = scalar_lea.vmem %s3745_s21, 32 }
 0x328   :  { %p4719_p8 = scmp.ne.s32.totalorder %s3745_s21, %s4718_s22  ;;  %p4723_p9 = scmp.lt.s32.totalorder %s3745_s21, %s3745_s21 }
 0x329   :  { %p4724_p10 = scmp.lt.s32.totalorder %s4722_s23, %s4718_s22 }
 0x32b   :  { %p4725_p11 = por %p4724_p10, %p4723_p9 }
 0x32d   :  { %p4726_p12 = pnand %p4725_p11, %p4719_p8 }
 0x3a9   :  { %v3734_v1 = vpop.xlane.xlu1 %3733 }
 0x3aa   :  { %3735 = vst.msk [vmem:[#allocation4] sm:$0x1] %vm72_vm15, %v3734_v1 }
 0x3ab   :  { %4729 = shalt.err (!%p4726_p12)
}
 0x3ac   :  { %s4730_s26 = scalar_lea.hbm %s7422_s4, 16 }
 0x3ad   :  { %p4731_p13 = scmp.ne.s32.totalorder %s7422_s4, %s4730_s26  ;;  %p4734_p0 = scmp.lt.u32.totalorder %s4730_s26, %s7422_s4 }
 0x3af   :  { %p4736_p1 = pnand %p4734_p0, %p4731_p13 }
 0x3b1   :  { %4739 = shalt.err (!%p4736_p1)
}
 0x3b2   :  { %3747 = dma.vmem_to_hbm [thread:$0]  %s3745_s21, 16, %s7422_s4, [#allocation5]  }
 0x3b3   :  { %4740 = dma.done.wait [#allocation5], 16  }
 0x3b4   :  { %4741 = vsyncadd [#allocation5], 4294967280 }
 0x3b5   :  { %4742 = dma.done.wait [#allocation7], 16  }
 0x3b6   :  { %4743 = vsyncadd [#allocation7], 4294967280 }
 0x3b7   :  { %3764 = vsyncpa [#allocation5], 1 }
 0x3b8   :  { %3765 = vsyncpa [#allocation7], 1 }

</bundles_post_ra>
